<compile_context>
chip_gen: v7x
topology: tpu7x:2x2x1
jax: 0.10.0
libtpu: 0.0.40
codegen_flags: <defaults>
</compile_context>

<pallas_src>
import jax
import jax.numpy as jnp
from jax.experimental import pallas as pl
from jax.experimental.pallas import tpu as pltpu

EPS = 1e-5  # nn.BatchNorm2d default


def _fold_bn(gamma, beta, mean, var):
    """Eval-mode BN as per-channel f32 (scale, bias)."""
    scale = (gamma / jnp.sqrt(var + EPS)).astype(jnp.float32)
    bias = (beta - mean * scale).astype(jnp.float32)
    return scale, bias


def _make_block_kernel(H, W, cin, cmid, cout):
    """Fused BasicBlock kernel for one batch element (whole image per step).

    Ref layout (channels on lanes, flattened padded spatial positions on
    sublanes; WP = W + 2, L = H*WP, NP = (H+3)*WP):
      xp3_ref : (1, NP, 3*cin) bf16   padded input with the 3 dx taps
                                      side-by-side along channels
      w1_ref  : (3, 3*cin, cmid) bf16 conv1 taps grouped over dx (K = 3*cin)
      s1,b1   : (1, cmid) f32         folded BN1 scale / bias
      w2_ref  : (9, cmid, cout) bf16  conv2 taps (dy, dx) row-major
      s2,b2   : (1, cout) f32         folded BN2 scale / bias
      mask_ref: (L, 1) f32            1.0 for real columns, 0.0 for the 2
                                      flat-layout garbage columns per row
      o_ref   : (1, L, cout) f32      output in the same flat layout
      hp_ref  : (NP, cmid) bf16       VMEM scratch: padded conv2 input
    """
    WP = W + 2
    L = H * WP
    NP = (H + 3) * WP

    def kernel(xp3_ref, w1_ref, s1_ref, b1_ref, w2_ref, s2_ref, b2_ref,
               mask_ref, o_ref, hp_ref):
        # Zero the scratch so all padding rows/cols of the conv2 input are 0.
        # (Cheap; the interior is overwritten below.)
        hp_ref[...] = jnp.zeros_like(hp_ref)

        # ---- conv1: 3 grouped matmuls, K = 3*cin -------------------------
        acc1 = jnp.zeros((L, cmid), jnp.float32)
        for dy in range(3):
            lhs = xp3_ref[0, pl.ds(dy * WP, L), :]        # (L, 3*cin) contiguous bf16
            acc1 = acc1 + jnp.dot(lhs, w1_ref[dy],
                                  preferred_element_type=jnp.float32)
        h = jnp.maximum(acc1 * s1_ref[...] + b1_ref[...], 0.0)  # BN1 + ReLU (f32)
        h = h * mask_ref[...]                              # zero garbage columns

        # Intermediate never leaves VMEM: stored bf16, shifted by WP+1 so it
        # lands as a correctly zero-padded conv2 input (garbage columns fall
        # exactly on the pad columns and were masked to zero above).
        hp_ref[pl.ds(WP + 1, L), :] = h.astype(jnp.bfloat16)

        # ---- conv2: 9 taps, K = cmid -------------------------------------
        acc2 = jnp.zeros((L, cout), jnp.float32)
        for dy in range(3):
            for dx in range(3):
                slab = hp_ref[pl.ds(dy * WP + dx, L), :]   # (L, cmid) bf16
                acc2 = acc2 + jnp.dot(slab, w2_ref[dy * 3 + dx],
                                      preferred_element_type=jnp.float32)

        # BN2 + identity residual (read from the resident padded input) + ReLU.
        res = xp3_ref[0, pl.ds(WP + 1, L), 0:cin].astype(jnp.float32)
        y = acc2 * s2_ref[...] + b2_ref[...] + res
        o_ref[0] = jnp.maximum(y, 0.0).astype(o_ref.dtype)

    return kernel


def basic_block_forward(x_nchw, params):
    """Reproduces BasicBlock.forward (stride=1, downsample=None) with one fused kernel."""
    x = jnp.transpose(x_nchw, (0, 2, 3, 1))                # NCHW -> NHWC, f32
    B, H, W, Cin = x.shape
    w1 = params["conv1_w"]                                 # (3,3,Cin,Cmid) HWIO
    w2 = params["conv2_w"]                                 # (3,3,Cmid,Cout)
    Cmid, Cout = w1.shape[-1], w2.shape[-1]
    assert w1.shape == (3, 3, Cin, Cmid) and w2.shape == (3, 3, Cmid, Cout)
    assert Cin == Cout, "identity residual requires inplanes == planes"

    WP = W + 2
    L = H * WP
    NP = (H + 3) * WP

    # Eval-mode BN folded to per-channel f32 scale/bias (applied in-kernel).
    s1, b1 = _fold_bn(params["bn1_gamma"], params["bn1_beta"],
                      params["bn1_mean"], params["bn1_var"])
    s2, b2 = _fold_bn(params["bn2_gamma"], params["bn2_beta"],
                      params["bn2_mean"], params["bn2_var"])
    s1, b1 = s1.reshape(1, Cmid), b1.reshape(1, Cmid)
    s2, b2 = s2.reshape(1, Cout), b2.reshape(1, Cout)

    # Padded input (1 top, 3 bottom, 1 left, 1 right), flattened over (H, W),
    # with the three dx taps laid side-by-side along channels:
    #   xp3[b, j, dx*Cin:(dx+1)*Cin] = xp_flat[b, j + dx]
    # so each conv1 dy-group reads ONE contiguous (L, 3*Cin) slab.
    xp = jnp.pad(x, ((0, 0), (1, 3), (1, 1), (0, 0))).astype(jnp.bfloat16)
    xpf = xp.reshape(B, (H + 4) * WP, Cin)
    xp3 = jnp.concatenate(
        [xpf[:, 0:NP], xpf[:, 1:NP + 1], xpf[:, 2:NP + 2]], axis=-1)

    # Weights: conv1 grouped along K (dx-major, matching xp3's lane order);
    # conv2 as 9 separate (Cmid, Cout) taps.
    w1g = w1.reshape(3, 3 * Cin, Cmid).astype(jnp.bfloat16)
    w2t = w2.reshape(9, Cmid, Cout).astype(jnp.bfloat16)

    # 1.0 for real columns, 0.0 for the 2 flat-layout garbage columns per row.
    col = jnp.arange(L, dtype=jnp.int32) % WP
    colmask = (col < W).astype(jnp.float32).reshape(L, 1)

    kernel = _make_block_kernel(H, W, Cin, Cmid, Cout)

    out_flat = pl.pallas_call(
        kernel,
        out_shape=jax.ShapeDtypeStruct((B, L, Cout), jnp.float32),
        grid=(B,),
        in_specs=[
            # Whole padded image per batch element (VMEM resident for the step).
            pl.BlockSpec((1, NP, 3 * Cin), lambda b: (b, 0, 0)),
            # Constant-index blocks: fetched once across the (tiny) grid.
            pl.BlockSpec((3, 3 * Cin, Cmid), lambda b: (0, 0, 0)),
            pl.BlockSpec((1, Cmid), lambda b: (0, 0)),
            pl.BlockSpec((1, Cmid), lambda b: (0, 0)),
            pl.BlockSpec((9, Cmid, Cout), lambda b: (0, 0, 0)),
            pl.BlockSpec((1, Cout), lambda b: (0, 0)),
            pl.BlockSpec((1, Cout), lambda b: (0, 0)),
            pl.BlockSpec((L, 1), lambda b: (0, 0)),
        ],
        out_specs=pl.BlockSpec((1, L, Cout), lambda b: (b, 0, 0)),
        scratch_shapes=[pltpu.VMEM((NP, Cmid), jnp.bfloat16)],
        compiler_params=pltpu.CompilerParams(
            dimension_semantics=("parallel",)),    # batch-only sharding (v7x safe)
    )(xp3, w1g, s1, b1, w2t, s2, b2, colmask)

    # Drop the 2 width-padding columns and restore NCHW.
    out = out_flat.reshape(B, H, WP, Cout)[:, :, :W, :]
    return jnp.transpose(out, (0, 3, 1, 2))


def init_params(key, inplanes, planes):
    """Deterministic synthetic parameters matching BasicBlock(inplanes, planes)."""
    ks = jax.random.split(key, 4)

    def conv_w(k, cin, cout):
        return 0.05 * jax.random.normal(k, (3, 3, cin, cout), jnp.float32)  # HWIO

    def bn(k, c, prefix, out):
        k1, k2, k3, k4 = jax.random.split(k, 4)
        out[f"{prefix}_gamma"] = 1.0 + 0.1 * jax.random.normal(k1, (c,), jnp.float32)
        out[f"{prefix}_beta"] = 0.1 * jax.random.normal(k2, (c,), jnp.float32)
        out[f"{prefix}_mean"] = 0.1 * jax.random.normal(k3, (c,), jnp.float32)
        out[f"{prefix}_var"] = jax.random.uniform(k4, (c,), jnp.float32, 0.5, 1.5)

    p = {}
    p["conv1_w"] = conv_w(ks[0], inplanes, planes)
    bn(ks[1], planes, "bn1", p)
    p["conv2_w"] = conv_w(ks[2], planes, planes)
    bn(ks[3], planes, "bn2", p)
    return p


def _reference_forward(x_nchw, params):
    """Pure-JAX (XLA) reference of BasicBlock.forward for the correctness check."""
    x = jnp.transpose(x_nchw, (0, 2, 3, 1)).astype(jnp.float32)

    def conv_bn(inp, w, g, b, m, v):
        y = jax.lax.conv_general_dilated(inp, w, (1, 1), ((1, 1), (1, 1)),
                                         dimension_numbers=("NHWC", "HWIO", "NHWC"))
        s = g / jnp.sqrt(v + EPS)
        return y * s + (b - m * s)

    h = jnp.maximum(conv_bn(x, params["conv1_w"], params["bn1_gamma"], params["bn1_beta"],
                            params["bn1_mean"], params["bn1_var"]), 0.0)
    out = conv_bn(h, params["conv2_w"], params["bn2_gamma"], params["bn2_beta"],
                  params["bn2_mean"], params["bn2_var"]) + x
    return jnp.transpose(jnp.maximum(out, 0.0), (0, 3, 1, 2))


if __name__ == "__main__":
    key = jax.random.PRNGKey(0)
    k_x, k_p = jax.random.split(key)

    # BasicBlock(64, 64), stride=1, downsample=None (ResNet18 layer1 block).
    B, C, H, W = 2, 64, 16, 16
    x = jax.random.normal(k_x, (B, C, H, W), jnp.float32)
    params = init_params(k_p, C, C)

    out = basic_block_forward(x, params)
    jax.block_until_ready(out)

    assert out.shape == (B, C, H, W)
    assert bool(jnp.all(jnp.isfinite(out)))

    # Loose tolerance: bf16 MXU operands / bf16 residual, f32 accumulation.
    ref = _reference_forward(x, params)
    err = float(jnp.max(jnp.abs(out - ref)))
    tol = float(3e-2 + 3e-2 * jnp.max(jnp.abs(ref)))
    assert err <= tol, f"max abs err {err} > tol {tol}"

    print("KERNEL_OK")
</pallas_src>

<mosaic_0001>
module attributes {stable_mosaic.version = 11 : i64} {
  func.func @kernel(%arg0: i32, %arg1: memref<1x342x192xbf16, #tpu.memory_space<vmem>>, %arg2: memref<3x192x64xbf16, #tpu.memory_space<vmem>>, %arg3: memref<1x64xf32, #tpu.memory_space<vmem>>, %arg4: memref<1x64xf32, #tpu.memory_space<vmem>>, %arg5: memref<9x64x64xbf16, #tpu.memory_space<vmem>>, %arg6: memref<1x64xf32, #tpu.memory_space<vmem>>, %arg7: memref<1x64xf32, #tpu.memory_space<vmem>>, %arg8: memref<288x1xf32, #tpu.memory_space<vmem>>, %arg9: memref<1x288x64xf32, #tpu.memory_space<vmem>>, %arg10: memref<342x64xbf16, #tpu.memory_space<vmem>>) attributes {dimension_semantics = [#tpu.dimension_semantics<parallel>], iteration_bounds = array<i64: 2>, scalar_prefetch = 0 : i64, scratch_operands = 1 : i64, tpu.core_type = #tpu.core_type<tc>, window_params = [{transform_indices = @transform_0, window_bounds = array<i64: 1, 342, 192>}, {pipeline_mode = #tpu.pipeline_mode<synchronous>, transform_indices = @transform_1, window_bounds = array<i64: 3, 192, 64>}, {pipeline_mode = #tpu.pipeline_mode<synchronous>, transform_indices = @transform_2, window_bounds = array<i64: 1, 64>}, {pipeline_mode = #tpu.pipeline_mode<synchronous>, transform_indices = @transform_3, window_bounds = array<i64: 1, 64>}, {pipeline_mode = #tpu.pipeline_mode<synchronous>, transform_indices = @transform_4, window_bounds = array<i64: 9, 64, 64>}, {pipeline_mode = #tpu.pipeline_mode<synchronous>, transform_indices = @transform_5, window_bounds = array<i64: 1, 64>}, {pipeline_mode = #tpu.pipeline_mode<synchronous>, transform_indices = @transform_6, window_bounds = array<i64: 1, 64>}, {pipeline_mode = #tpu.pipeline_mode<synchronous>, transform_indices = @transform_7, window_bounds = array<i64: 288, 1>}, {transform_indices = @transform_8, window_bounds = array<i64: 1, 288, 64>}]} {
    %cst = arith.constant 0.000000e+00 : bf16
    %0 = vector.broadcast %cst : bf16 to vector<342x64xbf16>
    %c0 = arith.constant 0 : index
    %c0_0 = arith.constant 0 : index
    %1 = vector.load %arg10[%c0, %c0_0] : memref<342x64xbf16, #tpu.memory_space<vmem>>, vector<342x64xbf16>
    tpu.vector_store %arg10[%c0, %c0_0], %0 {strides = array<i32>} : memref<342x64xbf16, #tpu.memory_space<vmem>>, vector<342x64xbf16>,
    %cst_1 = arith.constant 0.000000e+00 : f32
    %2 = vector.broadcast %cst_1 : f32 to vector<288x64xf32>
    %c0_2 = arith.constant 0 : index
    %c0_3 = arith.constant 0 : index
    %c0_4 = arith.constant 0 : index
    %3 = vector.load %arg1[%c0_2, %c0_3, %c0_4] : memref<1x342x192xbf16, #tpu.memory_space<vmem>>, vector<1x288x192xbf16>
    %4 = vector.shape_cast %3 : vector<1x288x192xbf16> to vector<288x192xbf16>
    %c0_5 = arith.constant 0 : index
    %c0_6 = arith.constant 0 : index
    %c0_7 = arith.constant 0 : index
    %5 = vector.load %arg2[%c0_5, %c0_6, %c0_7] : memref<3x192x64xbf16, #tpu.memory_space<vmem>>, vector<1x192x64xbf16>
    %6 = vector.shape_cast %5 : vector<1x192x64xbf16> to vector<192x64xbf16>
    %cst_8 = arith.constant dense<0.000000e+00> : vector<288x64xf32>
    %7 = tpu.matmul %4, %6, %cst_8 {dimension_numbers = #tpu.dot_dimension_numbers<[1], [0], [0], [1], [0, 0, 1, 1], [], []>} : vector<288x192xbf16>, vector<192x64xbf16>, vector<288x64xf32> -> vector<288x64xf32>
    %8 = arith.addf %2, %7 : vector<288x64xf32>
    %c0_9 = arith.constant 0 : index
    %c18 = arith.constant 18 : index
    %c0_10 = arith.constant 0 : index
    %9 = vector.load %arg1[%c0_9, %c18, %c0_10] : memref<1x342x192xbf16, #tpu.memory_space<vmem>>, vector<1x288x192xbf16>
    %10 = vector.shape_cast %9 : vector<1x288x192xbf16> to vector<288x192xbf16>
    %c1 = arith.constant 1 : index
    %c0_11 = arith.constant 0 : index
    %c0_12 = arith.constant 0 : index
    %11 = vector.load %arg2[%c1, %c0_11, %c0_12] : memref<3x192x64xbf16, #tpu.memory_space<vmem>>, vector<1x192x64xbf16>
    %12 = vector.shape_cast %11 : vector<1x192x64xbf16> to vector<192x64xbf16>
    %cst_13 = arith.constant dense<0.000000e+00> : vector<288x64xf32>
    %13 = tpu.matmul %10, %12, %cst_13 {dimension_numbers = #tpu.dot_dimension_numbers<[1], [0], [0], [1], [0, 0, 1, 1], [], []>} : vector<288x192xbf16>, vector<192x64xbf16>, vector<288x64xf32> -> vector<288x64xf32>
    %14 = arith.addf %8, %13 : vector<288x64xf32>
    %c0_14 = arith.constant 0 : index
    %c36 = arith.constant 36 : index
    %c0_15 = arith.constant 0 : index
    %15 = vector.load %arg1[%c0_14, %c36, %c0_15] : memref<1x342x192xbf16, #tpu.memory_space<vmem>>, vector<1x288x192xbf16>
    %16 = vector.shape_cast %15 : vector<1x288x192xbf16> to vector<288x192xbf16>
    %c2 = arith.constant 2 : index
    %c0_16 = arith.constant 0 : index
    %c0_17 = arith.constant 0 : index
    %17 = vector.load %arg2[%c2, %c0_16, %c0_17] : memref<3x192x64xbf16, #tpu.memory_space<vmem>>, vector<1x192x64xbf16>
    %18 = vector.shape_cast %17 : vector<1x192x64xbf16> to vector<192x64xbf16>
    %cst_18 = arith.constant dense<0.000000e+00> : vector<288x64xf32>
    %19 = tpu.matmul %16, %18, %cst_18 {dimension_numbers = #tpu.dot_dimension_numbers<[1], [0], [0], [1], [0, 0, 1, 1], [], []>} : vector<288x192xbf16>, vector<192x64xbf16>, vector<288x64xf32> -> vector<288x64xf32>
    %20 = arith.addf %14, %19 : vector<288x64xf32>
    %c0_19 = arith.constant 0 : index
    %c0_20 = arith.constant 0 : index
    %21 = vector.load %arg3[%c0_19, %c0_20] : memref<1x64xf32, #tpu.memory_space<vmem>>, vector<1x64xf32>
    %22 = vector.broadcast %21 : vector<1x64xf32> to vector<288x64xf32>
    %23 = arith.mulf %20, %22 : vector<288x64xf32>
    %c0_21 = arith.constant 0 : index
    %c0_22 = arith.constant 0 : index
    %24 = vector.load %arg4[%c0_21, %c0_22] : memref<1x64xf32, #tpu.memory_space<vmem>>, vector<1x64xf32>
    %25 = vector.broadcast %24 : vector<1x64xf32> to vector<288x64xf32>
    %26 = arith.addf %23, %25 : vector<288x64xf32>
    %cst_23 = arith.constant 0.000000e+00 : f32
    %27 = vector.broadcast %cst_23 : f32 to vector<288x64xf32>
    %28 = arith.maximumf %26, %27 : vector<288x64xf32>
    %c0_24 = arith.constant 0 : index
    %c0_25 = arith.constant 0 : index
    %29 = vector.load %arg8[%c0_24, %c0_25] : memref<288x1xf32, #tpu.memory_space<vmem>>, vector<288x1xf32>
    %30 = vector.broadcast %29 : vector<288x1xf32> to vector<288x64xf32>
    %31 = arith.mulf %28, %30 : vector<288x64xf32>
    %32 = arith.truncf %31 : vector<288x64xf32> to vector<288x64xbf16>
    %c19 = arith.constant 19 : index
    %c0_26 = arith.constant 0 : index
    %33 = vector.load %arg10[%c19, %c0_26] : memref<342x64xbf16, #tpu.memory_space<vmem>>, vector<288x64xbf16>
    tpu.vector_store %arg10[%c19, %c0_26], %32 {strides = array<i32>} : memref<342x64xbf16, #tpu.memory_space<vmem>>, vector<288x64xbf16>,
    %cst_27 = arith.constant 0.000000e+00 : f32
    %34 = vector.broadcast %cst_27 : f32 to vector<288x64xf32>
    %c0_28 = arith.constant 0 : index
    %c0_29 = arith.constant 0 : index
    %35 = vector.load %arg10[%c0_28, %c0_29] : memref<342x64xbf16, #tpu.memory_space<vmem>>, vector<288x64xbf16>
    %c0_30 = arith.constant 0 : index
    %c0_31 = arith.constant 0 : index
    %c0_32 = arith.constant 0 : index
    %36 = vector.load %arg5[%c0_30, %c0_31, %c0_32] : memref<9x64x64xbf16, #tpu.memory_space<vmem>>, vector<1x64x64xbf16>
    %37 = vector.shape_cast %36 : vector<1x64x64xbf16> to vector<64x64xbf16>
    %cst_33 = arith.constant dense<0.000000e+00> : vector<288x64xf32>
    %38 = tpu.matmul %35, %37, %cst_33 {dimension_numbers = #tpu.dot_dimension_numbers<[1], [0], [0], [1], [0, 0, 1, 1], [], []>} : vector<288x64xbf16>, vector<64x64xbf16>, vector<288x64xf32> -> vector<288x64xf32>
    %39 = arith.addf %34, %38 : vector<288x64xf32>
    %c1_34 = arith.constant 1 : index
    %c0_35 = arith.constant 0 : index
    %40 = vector.load %arg10[%c1_34, %c0_35] : memref<342x64xbf16, #tpu.memory_space<vmem>>, vector<288x64xbf16>
    %c1_36 = arith.constant 1 : index
    %c0_37 = arith.constant 0 : index
    %c0_38 = arith.constant 0 : index
    %41 = vector.load %arg5[%c1_36, %c0_37, %c0_38] : memref<9x64x64xbf16, #tpu.memory_space<vmem>>, vector<1x64x64xbf16>
    %42 = vector.shape_cast %41 : vector<1x64x64xbf16> to vector<64x64xbf16>
    %cst_39 = arith.constant dense<0.000000e+00> : vector<288x64xf32>
    %43 = tpu.matmul %40, %42, %cst_39 {dimension_numbers = #tpu.dot_dimension_numbers<[1], [0], [0], [1], [0, 0, 1, 1], [], []>} : vector<288x64xbf16>, vector<64x64xbf16>, vector<288x64xf32> -> vector<288x64xf32>
    %44 = arith.addf %39, %43 : vector<288x64xf32>
    %c2_40 = arith.constant 2 : index
    %c0_41 = arith.constant 0 : index
    %45 = vector.load %arg10[%c2_40, %c0_41] : memref<342x64xbf16, #tpu.memory_space<vmem>>, vector<288x64xbf16>
    %c2_42 = arith.constant 2 : index
    %c0_43 = arith.constant 0 : index
    %c0_44 = arith.constant 0 : index
    %46 = vector.load %arg5[%c2_42, %c0_43, %c0_44] : memref<9x64x64xbf16, #tpu.memory_space<vmem>>, vector<1x64x64xbf16>
    %47 = vector.shape_cast %46 : vector<1x64x64xbf16> to vector<64x64xbf16>
    %cst_45 = arith.constant dense<0.000000e+00> : vector<288x64xf32>
    %48 = tpu.matmul %45, %47, %cst_45 {dimension_numbers = #tpu.dot_dimension_numbers<[1], [0], [0], [1], [0, 0, 1, 1], [], []>} : vector<288x64xbf16>, vector<64x64xbf16>, vector<288x64xf32> -> vector<288x64xf32>
    %49 = arith.addf %44, %48 : vector<288x64xf32>
    %c18_46 = arith.constant 18 : index
    %c0_47 = arith.constant 0 : index
    %50 = vector.load %arg10[%c18_46, %c0_47] : memref<342x64xbf16, #tpu.memory_space<vmem>>, vector<288x64xbf16>
    %c3 = arith.constant 3 : index
    %c0_48 = arith.constant 0 : index
    %c0_49 = arith.constant 0 : index
    %51 = vector.load %arg5[%c3, %c0_48, %c0_49] : memref<9x64x64xbf16, #tpu.memory_space<vmem>>, vector<1x64x64xbf16>
    %52 = vector.shape_cast %51 : vector<1x64x64xbf16> to vector<64x64xbf16>
    %cst_50 = arith.constant dense<0.000000e+00> : vector<288x64xf32>
    %53 = tpu.matmul %50, %52, %cst_50 {dimension_numbers = #tpu.dot_dimension_numbers<[1], [0], [0], [1], [0, 0, 1, 1], [], []>} : vector<288x64xbf16>, vector<64x64xbf16>, vector<288x64xf32> -> vector<288x64xf32>
    %54 = arith.addf %49, %53 : vector<288x64xf32>
    %c19_51 = arith.constant 19 : index
    %c0_52 = arith.constant 0 : index
    %55 = vector.load %arg10[%c19_51, %c0_52] : memref<342x64xbf16, #tpu.memory_space<vmem>>, vector<288x64xbf16>
    %c4 = arith.constant 4 : index
    %c0_53 = arith.constant 0 : index
    %c0_54 = arith.constant 0 : index
    %56 = vector.load %arg5[%c4, %c0_53, %c0_54] : memref<9x64x64xbf16, #tpu.memory_space<vmem>>, vector<1x64x64xbf16>
    %57 = vector.shape_cast %56 : vector<1x64x64xbf16> to vector<64x64xbf16>
    %cst_55 = arith.constant dense<0.000000e+00> : vector<288x64xf32>
    %58 = tpu.matmul %55, %57, %cst_55 {dimension_numbers = #tpu.dot_dimension_numbers<[1], [0], [0], [1], [0, 0, 1, 1], [], []>} : vector<288x64xbf16>, vector<64x64xbf16>, vector<288x64xf32> -> vector<288x64xf32>
    %59 = arith.addf %54, %58 : vector<288x64xf32>
    %c20 = arith.constant 20 : index
    %c0_56 = arith.constant 0 : index
    %60 = vector.load %arg10[%c20, %c0_56] : memref<342x64xbf16, #tpu.memory_space<vmem>>, vector<288x64xbf16>
    %c5 = arith.constant 5 : index
    %c0_57 = arith.constant 0 : index
    %c0_58 = arith.constant 0 : index
    %61 = vector.load %arg5[%c5, %c0_57, %c0_58] : memref<9x64x64xbf16, #tpu.memory_space<vmem>>, vector<1x64x64xbf16>
    %62 = vector.shape_cast %61 : vector<1x64x64xbf16> to vector<64x64xbf16>
    %cst_59 = arith.constant dense<0.000000e+00> : vector<288x64xf32>
    %63 = tpu.matmul %60, %62, %cst_59 {dimension_numbers = #tpu.dot_dimension_numbers<[1], [0], [0], [1], [0, 0, 1, 1], [], []>} : vector<288x64xbf16>, vector<64x64xbf16>, vector<288x64xf32> -> vector<288x64xf32>
    %64 = arith.addf %59, %63 : vector<288x64xf32>
    %c36_60 = arith.constant 36 : index
    %c0_61 = arith.constant 0 : index
    %65 = vector.load %arg10[%c36_60, %c0_61] : memref<342x64xbf16, #tpu.memory_space<vmem>>, vector<288x64xbf16>
    %c6 = arith.constant 6 : index
    %c0_62 = arith.constant 0 : index
    %c0_63 = arith.constant 0 : index
    %66 = vector.load %arg5[%c6, %c0_62, %c0_63] : memref<9x64x64xbf16, #tpu.memory_space<vmem>>, vector<1x64x64xbf16>
    %67 = vector.shape_cast %66 : vector<1x64x64xbf16> to vector<64x64xbf16>
    %cst_64 = arith.constant dense<0.000000e+00> : vector<288x64xf32>
    %68 = tpu.matmul %65, %67, %cst_64 {dimension_numbers = #tpu.dot_dimension_numbers<[1], [0], [0], [1], [0, 0, 1, 1], [], []>} : vector<288x64xbf16>, vector<64x64xbf16>, vector<288x64xf32> -> vector<288x64xf32>
    %69 = arith.addf %64, %68 : vector<288x64xf32>
    %c37 = arith.constant 37 : index
    %c0_65 = arith.constant 0 : index
    %70 = vector.load %arg10[%c37, %c0_65] : memref<342x64xbf16, #tpu.memory_space<vmem>>, vector<288x64xbf16>
    %c7 = arith.constant 7 : index
    %c0_66 = arith.constant 0 : index
    %c0_67 = arith.constant 0 : index
    %71 = vector.load %arg5[%c7, %c0_66, %c0_67] : memref<9x64x64xbf16, #tpu.memory_space<vmem>>, vector<1x64x64xbf16>
    %72 = vector.shape_cast %71 : vector<1x64x64xbf16> to vector<64x64xbf16>
    %cst_68 = arith.constant dense<0.000000e+00> : vector<288x64xf32>
    %73 = tpu.matmul %70, %72, %cst_68 {dimension_numbers = #tpu.dot_dimension_numbers<[1], [0], [0], [1], [0, 0, 1, 1], [], []>} : vector<288x64xbf16>, vector<64x64xbf16>, vector<288x64xf32> -> vector<288x64xf32>
    %74 = arith.addf %69, %73 : vector<288x64xf32>
    %c38 = arith.constant 38 : index
    %c0_69 = arith.constant 0 : index
    %75 = vector.load %arg10[%c38, %c0_69] : memref<342x64xbf16, #tpu.memory_space<vmem>>, vector<288x64xbf16>
    %c8 = arith.constant 8 : index
    %c0_70 = arith.constant 0 : index
    %c0_71 = arith.constant 0 : index
    %76 = vector.load %arg5[%c8, %c0_70, %c0_71] : memref<9x64x64xbf16, #tpu.memory_space<vmem>>, vector<1x64x64xbf16>
    %77 = vector.shape_cast %76 : vector<1x64x64xbf16> to vector<64x64xbf16>
    %cst_72 = arith.constant dense<0.000000e+00> : vector<288x64xf32>
    %78 = tpu.matmul %75, %77, %cst_72 {dimension_numbers = #tpu.dot_dimension_numbers<[1], [0], [0], [1], [0, 0, 1, 1], [], []>} : vector<288x64xbf16>, vector<64x64xbf16>, vector<288x64xf32> -> vector<288x64xf32>
    %79 = arith.addf %74, %78 : vector<288x64xf32>
    %c0_73 = arith.constant 0 : index
    %c19_74 = arith.constant 19 : index
    %c0_75 = arith.constant 0 : index
    %80 = vector.load %arg1[%c0_73, %c19_74, %c0_75] : memref<1x342x192xbf16, #tpu.memory_space<vmem>>, vector<1x288x64xbf16>
    %81 = vector.shape_cast %80 : vector<1x288x64xbf16> to vector<288x64xbf16>
    %82 = arith.extf %81 : vector<288x64xbf16> to vector<288x64xf32>
    %c0_76 = arith.constant 0 : index
    %c0_77 = arith.constant 0 : index
    %83 = vector.load %arg6[%c0_76, %c0_77] : memref<1x64xf32, #tpu.memory_space<vmem>>, vector<1x64xf32>
    %84 = vector.broadcast %83 : vector<1x64xf32> to vector<288x64xf32>
    %85 = arith.mulf %79, %84 : vector<288x64xf32>
    %c0_78 = arith.constant 0 : index
    %c0_79 = arith.constant 0 : index
    %86 = vector.load %arg7[%c0_78, %c0_79] : memref<1x64xf32, #tpu.memory_space<vmem>>, vector<1x64xf32>
    %87 = vector.broadcast %86 : vector<1x64xf32> to vector<288x64xf32>
    %88 = arith.addf %85, %87 : vector<288x64xf32>
    %89 = arith.addf %88, %82 : vector<288x64xf32>
    %cst_80 = arith.constant 0.000000e+00 : f32
    %90 = vector.broadcast %cst_80 : f32 to vector<288x64xf32>
    %91 = arith.maximumf %89, %90 : vector<288x64xf32>
    %c0_81 = arith.constant 0 : index
    %c0_82 = arith.constant 0 : index
    %c0_83 = arith.constant 0 : index
    %92 = vector.load %arg9[%c0_81, %c0_82, %c0_83] : memref<1x288x64xf32, #tpu.memory_space<vmem>>, vector<1x288x64xf32>
    %93 = vector.shape_cast %92 : vector<1x288x64xf32> to vector<288x64xf32>
    %94 = vector.shape_cast %91 : vector<288x64xf32> to vector<1x288x64xf32>
    tpu.vector_store %arg9[%c0_81, %c0_82, %c0_83], %94 {strides = array<i32>} : memref<1x288x64xf32, #tpu.memory_space<vmem>>, vector<1x288x64xf32>,
    return
  }
  func.func @transform_0(%arg0: i32) -> (i32, i32, i32) {
    %c0_i32 = arith.constant 0 : i32
    %c0_i32_0 = arith.constant 0 : i32
    %c0_i32_1 = arith.constant 0 : i32
    return %arg0, %c0_i32, %c0_i32_0 : i32, i32, i32
  }
  func.func @transform_1(%arg0: i32) -> (i32, i32, i32) {
    %c0_i32 = arith.constant 0 : i32
    %c0_i32_0 = arith.constant 0 : i32
    %c0_i32_1 = arith.constant 0 : i32
    %c0_i32_2 = arith.constant 0 : i32
    return %c0_i32, %c0_i32_0, %c0_i32_1 : i32, i32, i32
  }
  func.func @transform_2(%arg0: i32) -> (i32, i32) {
    %c0_i32 = arith.constant 0 : i32
    %c0_i32_0 = arith.constant 0 : i32
    %c0_i32_1 = arith.constant 0 : i32
    return %c0_i32, %c0_i32_0 : i32, i32
  }
  func.func @transform_3(%arg0: i32) -> (i32, i32) {
    %c0_i32 = arith.constant 0 : i32
    %c0_i32_0 = arith.constant 0 : i32
    %c0_i32_1 = arith.constant 0 : i32
    return %c0_i32, %c0_i32_0 : i32, i32
  }
  func.func @transform_4(%arg0: i32) -> (i32, i32, i32) {
    %c0_i32 = arith.constant 0 : i32
    %c0_i32_0 = arith.constant 0 : i32
    %c0_i32_1 = arith.constant 0 : i32
    %c0_i32_2 = arith.constant 0 : i32
    return %c0_i32, %c0_i32_0, %c0_i32_1 : i32, i32, i32
  }
  func.func @transform_5(%arg0: i32) -> (i32, i32) {
    %c0_i32 = arith.constant 0 : i32
    %c0_i32_0 = arith.constant 0 : i32
    %c0_i32_1 = arith.constant 0 : i32
    return %c0_i32, %c0_i32_0 : i32, i32
  }
  func.func @transform_6(%arg0: i32) -> (i32, i32) {
    %c0_i32 = arith.constant 0 : i32
    %c0_i32_0 = arith.constant 0 : i32
    %c0_i32_1 = arith.constant 0 : i32
    return %c0_i32, %c0_i32_0 : i32, i32
  }
  func.func @transform_7(%arg0: i32) -> (i32, i32) {
    %c0_i32 = arith.constant 0 : i32
    %c0_i32_0 = arith.constant 0 : i32
    %c0_i32_1 = arith.constant 0 : i32
    return %c0_i32, %c0_i32_0 : i32, i32
  }
  func.func @transform_8(%arg0: i32) -> (i32, i32, i32) {
    %c0_i32 = arith.constant 0 : i32
    %c0_i32_0 = arith.constant 0 : i32
    %c0_i32_1 = arith.constant 0 : i32
    return %arg0, %c0_i32, %c0_i32_0 : i32, i32, i32
  }
}

</mosaic_0001>

<bundles_post_ra>
// kernel: tpu_custom_call.1
= control target key start
LH: loop header
LB: loop body
LE: loop exit
PB: predicated region body
PF: predicated region fallthrough
CT: control target
= control target key end

     0   :  { %s8991_s27 = smov 0   ;;  %s11391_s0 = inlined_call_operand.vmem [shape: bf16[2,342,192], index: 0, kind: input, shape index: {}]   ;;  %s11392_s1 = inlined_call_operand.vmem [shape: bf16[3,192,64], index: 1, kind: input, shape index: {}]   ;;  %s11393_s2 = inlined_call_operand.vmem [shape: f32[1,64], index: 2, kind: input, shape index: {}]   ;;  %s11394_s3 = inlined_call_operand.vmem [shape: f32[1,64], index: 3, kind: input, shape index: {}]   ;;  %s11395_s4 = inlined_call_operand.vmem [shape: bf16[9,64,64], index: 4, kind: input, shape index: {}]   ;;  %s11396_s5 = inlined_call_operand.vmem [shape: f32[1,64], index: 5, kind: input, shape index: {}]   ;;  %s11397_s6 = inlined_call_operand.vmem [shape: f32[1,64], index: 6, kind: input, shape index: {}]   ;;  %s11398_s7 = inlined_call_operand.vmem [shape: f32[288,1], index: 7, kind: input, shape index: {}]   ;;  %s11399_s8 = inlined_call_operand.vmem [shape: f32[2,288,64], index: 8, kind: output, shape index: {}]  }
   0x1 LB: > { %s7057_s28 = sadd.s32 4294967295, %s8943_s27   ;;  %p7061_p0 = scmp.ge.s32.totalorder %s8943_s27, 1  ;;  %s8943_s27 = sphi %s8991_s27, %s18_s27  }
   0x2   : > { %p262_p1 = scmp.lt.s32.totalorder %s8943_s27, 3 }
   0x4   : > { %p263_p2 = pnand %p7061_p0, %p262_p1 }
   0x6   : > { %266 = sbr.rel (%p263_p2) target bundleno = 1447 (0x5a7), region = 52 }
   0xd   : > { %v8945_v0 = vmov 0   ;;  %v8731_v1 = vld [vmem:[%s11392_s1 + $0x60] sm:$0xff]   ;;  %p296_p3 = scmp.lt.s32.totalorder %s7057_s28, 1  ;;  %v8732_v2 = vld [vmem:[%s11392_s1 + $0x68] sm:$0xff]   ;;  %v8733_v3 = vld [vmem:[%s11392_s1 + $0x70] sm:$0xff]   ;;  %vm590_vm0 = vcmask 1046528  }
   0xe   : > { %810 = vmatprep.subr.bf16.mxu0 %v8945_v0  ;;  %8729 = vset.pattern.permute.xlu0 %v8945_v0  ;;  %v8734_v4 = vld [vmem:[%s11392_s1 + $0x78] sm:$0xff]   ;;  %v8735_v11 = vld [vmem:[%s11392_s1 + $0x80] sm:$0xff]   ;;  %vm755_vm1 = vcmask 523264   ;;  %v8736_v15 = vld [vmem:[%s11392_s1 + $0x88] sm:$0xff]   ;;  %vm1532_vm2 = vcmask 1045504   ;;  %vm307_vm3 = vcmask 519168  }
   0xf   : > { %8730 = vset.pattern.permute.xlu1 %v8945_v0  ;;  %811 = vmatpush1.bf16.msra.mxu0 %v8731_v1  ;;  %s11539_s28 = smov (!%p296_p3, %s7057_s28), 1  ;;  %v8737_v16 = vld [vmem:[%s11392_s1 + $0x90] sm:$0xff]   ;;  %v8738_v17 = vld [vmem:[%s11392_s1 + $0x98] sm:$0xff]   ;;  %v8739_v18 = vld [vmem:[%s11392_s1 + $0xa0] sm:$0xff]   ;;  %310 = vst.msk [vmem:[#allocation2 + $0x8] sm:$0xf] %vm307_vm3, %v8945_v0 }
  0x10   : > { %812 = vmatprep.subr.bf16.mxu0 %v8945_v0  ;;  %s8718_s11 = smul.u32 344, %s11539_s28  ;;  %v8740_v19 = vld [vmem:[%s11392_s1 + $0xa8] sm:$0xff]   ;;  %v8741_v20 = vld [vmem:[%s11392_s1 + $0xb0] sm:$0xff]   ;;  %v8742_v24 = vld [vmem:[%s11392_s1 + $0xb8] sm:$0xff]   ;;  %308 = vst.msk [vmem:[#allocation2] sm:$0xf] %vm307_vm3, %v8945_v0 }
  0x11   : > { %v8747_v31 = vld [vmem:[%s11392_s1] sm:$0xff]   ;;  %v8751_v34 = vld [vmem:[%s11392_s1 + $0x8] sm:$0xff]   ;;  %v8758_v38 = vld [vmem:[%s11392_s1 + $0x10] sm:$0xff]   ;;  %309 = vst.msk [vmem:[#allocation2 + $0x4] sm:$0xf] %vm307_vm3, %v8945_v0  ;;  %vm2845_vm4 = vcmask 519169  }
  0x12   : > { %s9019_s16 = scalar_lea.vmem %s11391_s0, %s8718_s11  ;;  %v8762_v43 = vld [vmem:[%s11392_s1 + $0x18] sm:$0xff]   ;;  %v8769_v47 = vld [vmem:[%s11392_s1 + $0x20] sm:$0xff]   ;;  %v8773_v53 = vld [vmem:[%s11392_s1 + $0x28] sm:$0xff]   ;;  %311 = vst.msk [vmem:[#allocation2 + $0xc] sm:$0xf] %vm307_vm3, %v8945_v0  ;;  %vm2886_vm11 = vcmask 517120  }
  0x13   : > { %813 = vmatpush1.bf16.msra.mxu0 %v8732_v2  ;;  %v9026_v5 = vld [vmem:[%s9019_s16 + $0x18] sm:$0xff]  ;;  %v356_v6 = vld [vmem:[%s9019_s16 + $0x20] sm:$0xff]  ;;  %v357_v7 = vld [vmem:[%s9019_s16 + $0x28] sm:$0xff]  ;;  %312 = vst.msk [vmem:[#allocation2 + $0x10] sm:$0xf] %vm307_vm3, %v8945_v0  ;;  %vm6258_vm15 = vcmask 1044480  }
  0x14   : > { %814 = vmatprep.subr.bf16.mxu0 %v8945_v0  ;;  %v412_v8 = vld [vmem:[%s9019_s16 + $0x10] sm:$0xee]  ;;  %v9032_v10 = vcombine.high %v356_v6, %v357_v7  ;;  %v9065_v22 = vcombine.low %v356_v6, %v357_v7  ;;  %v9081_v29 = vld [vmem:[%s9019_s16 + $0x44] ss:$8 sps:$4 sm:$0xff]   ;;  %v9097_v36 = vld [vmem:[%s9019_s16 + $0x40] ss:$8 sps:$4 sm:$0xff]  }
  0x15   : > { %v7089_v9 = vcombine.high %v412_v8, %v9026_v5  ;;  %v7088_v21 = vcombine.low %v412_v8, %v9026_v5  ;;  %v9069_v23 = vld [vmem:[%s9019_s16 + $0x34] ss:$8 sps:$4 sm:$0xff]   ;;  %v9078_v28 = vld [vmem:[%s9019_s16 + $0x30] ss:$8 sps:$4 sm:$0xff]   ;;  %v603_v35 = vrot.slane %v9081_v29, 1  ;;  %v601_v41 = vrot.slane %v9097_v36, 1 }
  0x16   : > { %v595_v13 = vrot.slane %v9032_v10, 1  ;;  %v592_v26 = vrot.slane %v9065_v22, 1  ;;  %v599_v27 = vrot.slane %v9069_v23, 1  ;;  %v597_v33 = vrot.slane %v9078_v28, 1  ;;  %v9100_v37 = vld [vmem:[%s9019_s16 + $0x54] ss:$8 sps:$4 sm:$0xff]  }
  0x17   : > { %815 = vmatpush1.bf16.msra.mxu0 %v8733_v3  ;;  %v594_v12 = vrot.slane %v7089_v9, 1  ;;  %v591_v25 = vrot.slane %v7088_v21, 1  ;;  %v607_v42 = vrot.slane %v9100_v37, 1  ;;  %v9115_v44 = vld [vmem:[%s9019_s16 + $0x50] ss:$8 sps:$4 sm:$0xff]   ;;  %v8791_v61 = vld [vmem:[%s11392_s1 + $0x40] sm:$0xff]  }
  0x18   : > { %816 = vmatprep.subr.bf16.mxu0 %v8945_v0  ;;  %v600_v32 = vsel %vm590_vm0, %v595_v13, %v599_v27  ;;  %v598_v39 = vsel %vm590_vm0, %v592_v26, %v597_v33  ;;  %v604_v40 = vsel %vm590_vm0, %v599_v27, %v603_v35  ;;  %v9118_v45 = vld [vmem:[%s9019_s16 + $0x64] ss:$8 sps:$4 sm:$0xff]   ;;  %v9122_v46 = vld [vmem:[%s9019_s16 + $0x60] ss:$8 sps:$4 sm:$0xff]   ;;  %v602_v48 = vsel %vm590_vm0, %v597_v33, %v601_v41  ;;  %v9138_v54 = vld [vmem:[%s9019_s16 + $0x74] ss:$8 sps:$4 sm:$0xff]  }
  0x19   : > { %v596_v14 = vsel %vm590_vm0, %v594_v12, %v595_v13  ;;  %v593_v30 = vsel %vm590_vm0, %v591_v25, %v592_v26  ;;  %v608_v49 = vsel %vm590_vm0, %v603_v35, %v607_v42  ;;  %v605_v50 = vrot.slane %v9115_v44, 1  ;;  %v8780_v55 = vld [vmem:[%s11392_s1 + $0x30] sm:$0xff]   ;;  %v8784_v59 = vld [vmem:[%s11392_s1 + $0x38] sm:$0xff]   ;;  %v9160_v62 = vld [vmem:[%s9019_s16 + $0x84] ss:$8 sps:$4 sm:$0xff]   ;;  %s8719_s10 = smul.u32 288, %s11539_s28 }
  0x1a   : > { %7138 = vmatprep.mubr.msk.bf16.mxu0 %vm755_vm1, %v596_v14  ;;  %v611_v51 = vrot.slane %v9118_v45, 1  ;;  %v609_v52 = vrot.slane %v9122_v46, 1  ;;  %v615_v58 = vrot.slane %v9138_v54, 1  ;;  %v9154_v60 = vld [vmem:[%s9019_s16 + $0x70] ss:$8 sps:$4 sm:$0xff]   ;;  %v8795_v3 = vld [vmem:[%s11392_s1 + $0x48] sm:$0xff]  }
  0x1b   : > { %817 = vmatpush1.bf16.msra.mxu0 %v8734_v4  ;;  %v606_v56 = vsel %vm590_vm0, %v601_v41, %v605_v50  ;;  %v613_v2 = vrot.slane %v9154_v60, 1  ;;  %v619_v4 = vrot.slane %v9160_v62, 1  ;;  %v9174_v7 = vld [vmem:[%s9019_s16 + $0x80] ss:$8 sps:$4 sm:$0xff]   ;;  %v8802_v8 = vld [vmem:[%s11392_s1 + $0x50] sm:$0xff]   ;;  %v8806_v13 = vld [vmem:[%s11392_s1 + $0x58] sm:$0xff]   ;;  %s11171_s12 = scalar_lea.vmem %s11399_s8, %s8719_s10 }
  0x1c   : > { %818 = vmatprep.subr.bf16.mxu0 %v8945_v0  ;;  %v612_v57 = vsel %vm590_vm0, %v607_v42, %v611_v51  ;;  %v610_v63 = vsel %vm590_vm0, %v605_v50, %v609_v52  ;;  %v616_v1 = vsel %vm590_vm0, %v611_v51, %v615_v58  ;;  %v617_v12 = vrot.slane %v9174_v7, 1  ;;  %v9209_v26 = vld [vmem:[%s9019_s16 + $0xb4] ss:$8 sps:$4 sm:$0xff]   ;;  %v9242_v51 = vld [vmem:[%s9019_s16 + $0xe4] ss:$8 sps:$4 sm:$0xff]  }
  0x1d   : > { %v614_v6 = vsel %vm590_vm0, %v609_v52, %v613_v2  ;;  %v620_v9 = vsel %vm590_vm0, %v615_v58, %v619_v4  ;;  %v9231_v42 = vld [vmem:[%s9019_s16 + $0xd4] ss:$8 sps:$4 sm:$0xff]   ;;  %313 = vst.msk [vmem:[#allocation2 + $0x14] sm:$0xf] %vm307_vm3, %v8945_v0  ;;  %314 = vst.msk [vmem:[#allocation2 + $0x18] sm:$0xf] %vm307_vm3, %v8945_v0 }
  0x1e   : > { %v9253_v58 = vld [vmem:[%s9019_s16 + $0xf4] ss:$8 sps:$4 sm:$0xff]   ;;  %315 = vst.msk [vmem:[#allocation2 + $0x1c] sm:$0xf] %vm307_vm3, %v8945_v0  ;;  %316 = vst.msk [vmem:[#allocation2 + $0x20] sm:$0xf] %vm307_vm3, %v8945_v0 }
  0x1f   : > { %819 = vmatpush1.bf16.msra.mxu0 %v8735_v11  ;;  %v9181_v11 = vld [vmem:[%s9019_s16 + $0x94] ss:$8 sps:$4 sm:$0xff]   ;;  %317 = vst.msk [vmem:[#allocation2 + $0x24] sm:$0xf] %vm307_vm3, %v8945_v0  ;;  %318 = vst.msk [vmem:[#allocation2 + $0x28] sm:$0xf] %vm307_vm3, %v8945_v0 }
  0x20   : > { %820 = vmatprep.subr.bf16.mxu0 %v8945_v0  ;;  %v623_v14 = vrot.slane %v9181_v11, 1  ;;  %319 = vst.msk [vmem:[#allocation2 + $0x2c] sm:$0xf] %vm307_vm3, %v8945_v0  ;;  %320 = vst.msk [vmem:[#allocation2 + $0x30] sm:$0xf] %vm307_vm3, %v8945_v0 }
  0x21   : > { %321 = vst.msk [vmem:[#allocation2 + $0x34] sm:$0xf] %vm307_vm3, %v8945_v0  ;;  %322 = vst.msk [vmem:[#allocation2 + $0x38] sm:$0xf] %vm307_vm3, %v8945_v0  ;;  %vm2846_vm5 = vsmask.f32 7942 }
  0x22   : > { %323 = vst.msk [vmem:[#allocation2 + $0x3c] sm:$0xf] %vm307_vm3, %v8945_v0  ;;  %324 = vst.msk [vmem:[#allocation2 + $0x40] sm:$0xf] %vm307_vm3, %v8945_v0  ;;  %vm2446_vm6 = vsmask.f32 1280 }
  0x23   : > { %821 = vmatpush1.bf16.msra.mxu0 %v8736_v15  ;;  %v618_v15 = vsel %vm590_vm0, %v613_v2, %v617_v12  ;;  %325 = vst.msk [vmem:[#allocation2 + $0x44] sm:$0xf] %vm307_vm3, %v8945_v0  ;;  %326 = vst.msk [vmem:[#allocation2 + $0x48] sm:$0xf] %vm307_vm3, %v8945_v0  ;;  %vm2447_vm7 = vsmask.f32 5392 }
  0x24   : > { %822 = vmatprep.subr.bf16.mxu0 %v8945_v0  ;;  %327 = vst.msk [vmem:[#allocation2 + $0x4c] sm:$0xf] %vm307_vm3, %v8945_v0  ;;  %328 = vst.msk [vmem:[#allocation2 + $0x50] sm:$0xf] %vm307_vm3, %v8945_v0  ;;  %vm3038_vm10 = vsmask.f32 7424 }
  0x25   : > { %329 = vst.msk [vmem:[#allocation2 + $0x54] sm:$0xf] %vm307_vm3, %v8945_v0  ;;  %330 = vst.msk [vmem:[#allocation2 + $0x58] sm:$0xf] %vm307_vm3, %v8945_v0  ;;  %vm4500_vm13 = vsmask.f32 6400 }
  0x26   : > { %331 = vst.msk [vmem:[#allocation2 + $0x5c] sm:$0xf] %vm307_vm3, %v8945_v0  ;;  %332 = vst.msk [vmem:[#allocation2 + $0x60] sm:$0xf] %vm307_vm3, %v8945_v0  ;;  %vm5783_vm14 = vsmask.f32 5376 }
  0x27   : > { %823 = vmatpush1.bf16.msra.mxu0 %v8737_v16  ;;  %v9193_v16 = vld [vmem:[%s9019_s16 + $0x90] ss:$8 sps:$4 sm:$0xff]   ;;  %333 = vst.msk [vmem:[#allocation2 + $0x64] sm:$0xf] %vm307_vm3, %v8945_v0  ;;  %334 = vst.msk [vmem:[#allocation2 + $0x68] sm:$0xf] %vm307_vm3, %v8945_v0 }
  0x28   : > { %824 = vmatprep.subr.bf16.mxu0 %v8945_v0  ;;  %335 = vst.msk [vmem:[#allocation2 + $0x6c] sm:$0xf] %vm307_vm3, %v8945_v0  ;;  %336 = vst.msk [vmem:[#allocation2 + $0x70] sm:$0xf] %vm307_vm3, %v8945_v0 }
  0x29   : > { %337 = vst.msk [vmem:[#allocation2 + $0x74] sm:$0xf] %vm307_vm3, %v8945_v0  ;;  %338 = vst.msk [vmem:[#allocation2 + $0x78] sm:$0xf] %vm307_vm3, %v8945_v0 }
  0x2a   : > { %339 = vst.msk [vmem:[#allocation2 + $0x7c] sm:$0xf] %vm307_vm3, %v8945_v0  ;;  %340 = vst.msk [vmem:[#allocation2 + $0x80] sm:$0xf] %vm307_vm3, %v8945_v0 }
  0x2b   : > { %825 = vmatpush1.bf16.msra.mxu0 %v8738_v17  ;;  %v624_v17 = vsel %vm590_vm0, %v619_v4, %v623_v14  ;;  %341 = vst.msk [vmem:[#allocation2 + $0x84] sm:$0xf] %vm307_vm3, %v8945_v0  ;;  %342 = vst.msk [vmem:[#allocation2 + $0x88] sm:$0xf] %vm307_vm3, %v8945_v0 }
  0x2c   : > { %826 = vmatprep.subr.bf16.mxu0 %v8945_v0  ;;  %343 = vst.msk [vmem:[#allocation2 + $0x8c] sm:$0xf] %vm307_vm3, %v8945_v0  ;;  %344 = vst.msk [vmem:[#allocation2 + $0x90] sm:$0xf] %vm307_vm3, %v8945_v0 }
  0x2d   : > { %345 = vst.msk [vmem:[#allocation2 + $0x94] sm:$0xf] %vm307_vm3, %v8945_v0  ;;  %346 = vst.msk [vmem:[#allocation2 + $0x98] sm:$0xf] %vm307_vm3, %v8945_v0 }
  0x2e   : > { %347 = vst.msk [vmem:[#allocation2 + $0x9c] sm:$0xf] %vm307_vm3, %v8945_v0  ;;  %348 = vst.msk [vmem:[#allocation2 + $0xa0] sm:$0xf] %vm307_vm3, %v8945_v0 }
  0x2f   : > { %827 = vmatpush1.bf16.msra.mxu0 %v8739_v18  ;;  %v9197_v18 = vld [vmem:[%s9019_s16 + $0xa4] ss:$8 sps:$4 sm:$0xff]   ;;  %vm9810_vm8 = vmand %vm2845_vm4, %vm2846_vm5 }
  0x30   : > { %828 = vmatprep.subr.bf16.mxu0 %v8945_v0  ;;  %vm9819_vm9 = vmor %vm2446_vm6, %vm2447_vm7 }
  0x31   : > { %vm2887_vm12 = vmand %vm2886_vm11, %vm2446_vm6 }
  0x33   : > { %829 = vmatpush1.bf16.msra.mxu0 %v8740_v19  ;;  %v621_v19 = vrot.slane %v9193_v16, 1 }
  0x34   : > { %830 = vmatprep.subr.bf16.mxu0 %v8945_v0 }
  0x35   : > { %v622_v21 = vsel %vm590_vm0, %v617_v12, %v621_v19 }
  0x37   : > { %831 = vmatpush1.bf16.msra.mxu0 %v8741_v20  ;;  %v627_v20 = vrot.slane %v9197_v18, 1 }
  0x38   : > { %832 = vmatprep.subr.bf16.mxu0 %v8945_v0 }
  0x39   : > { %v628_v25 = vsel %vm590_vm0, %v623_v14, %v627_v20 }
  0x3b   : > { %833 = vmatpush1.bf16.msra.mxu0 %v8742_v24  ;;  %v9205_v24 = vld [vmem:[%s9019_s16 + $0xa0] ss:$8 sps:$4 sm:$0xff]  }
  0x3c   : > { %1144 = vmatprep.subr.bf16.mxu0 %v8945_v0  ;;  %v625_v27 = vrot.slane %v9205_v24, 1 }
  0x3e   : > { %843 = vmatmul.mubr.bf16.vlgmr.msra.gmra.mrb[0].mxu0 %v593_v30  ;;  %v631_v30 = vrot.slane %v9209_v26, 1 }
  0x3f   : > { %1145 = vmatpush1.bf16.msra.mxu0 %v8747_v31  ;;  %7139 = vmatprep.mubr.msk.bf16.mxu0 %vm755_vm1, %v600_v32  ;;  %v626_v31 = vsel %vm590_vm0, %v621_v19, %v625_v27  ;;  %v9216_v32 = vld [vmem:[%s9019_s16 + $0xb0] ss:$8 sps:$4 sm:$0xff]  }
  0x40   : > { %1146 = vmatprep.subr.bf16.mxu0 %v8945_v0  ;;  %v632_v33 = vsel %vm590_vm0, %v627_v20, %v631_v30  ;;  %v629_v35 = vrot.slane %v9216_v32, 1  ;;  %v9282_v19 = vld [vmem:[%s9019_s16 + $0x110] ss:$8 sps:$4 sm:$0xff]  }
  0x43   : > { %1147 = vmatpush1.bf16.msra.mxu0 %v8751_v34  ;;  %v9220_v34 = vld [vmem:[%s9019_s16 + $0xc4] ss:$8 sps:$4 sm:$0xff]  }
  0x44   : > { %1148 = vmatprep.subr.bf16.mxu0 %v8945_v0 }
  0x46   : > { %851 = vmatmul.mubr.bf16.gmra.mrb[4].mxu0 %v598_v39  ;;  %v630_v39 = vsel %vm590_vm0, %v625_v27, %v629_v35 }
  0x47   : > { %7140 = vmatprep.mubr.msk.bf16.mxu0 %vm755_vm1, %v604_v40  ;;  %1149 = vmatpush1.bf16.msra.mxu0 %v8758_v38  ;;  %v635_v38 = vrot.slane %v9220_v34, 1  ;;  %v9227_v40 = vld [vmem:[%s9019_s16 + $0xc0] ss:$8 sps:$4 sm:$0xff]  }
  0x48   : > { %1150 = vmatprep.subr.bf16.mxu0 %v8945_v0 }
  0x49   : > { %v636_v41 = vsel %vm590_vm0, %v631_v30, %v635_v38  ;;  %v415_v30 = vld [vmem:[%s9019_s16 + $0x130] sm:$0x11] }
  0x4b   : > { %1151 = vmatpush1.bf16.msra.mxu0 %v8762_v43  ;;  %v633_v43 = vrot.slane %v9227_v40, 1 }
  0x4c   : > { %1152 = vmatprep.subr.bf16.mxu0 %v8945_v0 }
  0x4e   : > { %859 = vmatmul.mubr.bf16.gmra.mrb[8].mxu0 %v602_v48  ;;  %v634_v48 = vsel %vm590_vm0, %v629_v35, %v633_v43 }
  0x4f   : > { %7141 = vmatprep.mubr.msk.bf16.mxu0 %vm755_vm1, %v608_v49  ;;  %1153 = vmatpush1.bf16.msra.mxu0 %v8769_v47  ;;  %v639_v47 = vrot.slane %v9231_v42, 1  ;;  %v9238_v49 = vld [vmem:[%s9019_s16 + $0xd0] ss:$8 sps:$4 sm:$0xff]  }
  0x50   : > { %1154 = vmatprep.subr.bf16.mxu0 %v8945_v0  ;;  %v637_v52 = vrot.slane %v9238_v49, 1 }
  0x51   : > { %v640_v50 = vsel %vm590_vm0, %v635_v38, %v639_v47  ;;  %v7125_v38 = vcombine.high %v415_v30, %v415_v30 }
  0x53   : > { %1155 = vmatpush1.bf16.msra.mxu0 %v8773_v53  ;;  %v643_v53 = vrot.slane %v9242_v51, 1 }
  0x54   : > { %1156 = vmatprep.subr.bf16.mxu0 %v8945_v0 }
  0x56   : > { %867 = vmatmul.mubr.bf16.gmra.mrb[12].mxu0 %v606_v56  ;;  %v9249_v56 = vld [vmem:[%s9019_s16 + $0xe0] ss:$8 sps:$4 sm:$0xff]  }
  0x57   : > { %7142 = vmatprep.mubr.msk.bf16.mxu0 %vm755_vm1, %v612_v57  ;;  %1157 = vmatpush1.bf16.msra.mxu0 %v8780_v55  ;;  %v638_v55 = vsel %vm590_vm0, %v633_v43, %v637_v52  ;;  %v644_v57 = vsel %vm590_vm0, %v639_v47, %v643_v53  ;;  %v7124_v47 = vcombine.low %v415_v30, %v415_v30  ;;  %v2094_v30 = vld [vmem:[%s11398_s7 + $0x40] sm:$0xff] }
  0x58   : > { %1158 = vmatprep.subr.bf16.mxu0 %v8945_v0 }
  0x5b   : > { %1159 = vmatpush1.bf16.msra.mxu0 %v8784_v59  ;;  %v641_v59 = vrot.slane %v9249_v56, 1 }
  0x5c   : > { %1160 = vmatprep.subr.bf16.mxu0 %v8945_v0 }
  0x5e   : > { %875 = vmatmul.mubr.bf16.gmra.mrb[16].mxu0 %v610_v63  ;;  %v642_v63 = vsel %vm590_vm0, %v637_v52, %v641_v59 }
  0x5f   : > { %7143 = vmatprep.mubr.msk.bf16.mxu0 %vm755_vm1, %v616_v1  ;;  %1161 = vmatpush1.bf16.msra.mxu0 %v8791_v61  ;;  %v647_v61 = vrot.slane %v9253_v58, 1  ;;  %v9260_v1 = vld [vmem:[%s9019_s16 + $0xf0] ss:$8 sps:$4 sm:$0xff]  }
  0x60   : > { %1162 = vmatprep.subr.bf16.mxu0 %v8945_v0  ;;  %v645_v4 = vrot.slane %v9260_v1, 1 }
  0x61   : > { %v648_v2 = vsel %vm590_vm0, %v643_v53, %v647_v61  ;;  %v8811_v53 = vld [vmem:[%s9019_s16 + $0x4] ss:$8 sps:$4 sm:$0xff]  }
  0x63   : > { %1163 = vmatpush1.bf16.msra.mxu0 %v8795_v3  ;;  %v9264_v3 = vld [vmem:[%s9019_s16 + $0x104] ss:$8 sps:$4 sm:$0xff]  }
  0x64   : > { %1164 = vmatprep.subr.bf16.mxu0 %v8945_v0 }
  0x66   : > { %883 = vmatmul.mubr.bf16.gmra.mrb[20].mxu0 %v614_v6  ;;  %v651_v6 = vrot.slane %v9264_v3, 1 }
  0x67   : > { %7144 = vmatprep.mubr.msk.bf16.mxu0 %vm755_vm1, %v620_v9  ;;  %1165 = vmatpush1.bf16.msra.mxu0 %v8802_v8  ;;  %v646_v8 = vsel %vm590_vm0, %v641_v59, %v645_v4  ;;  %v9271_v9 = vld [vmem:[%s9019_s16 + $0x100] ss:$8 sps:$4 sm:$0xff]  }
  0x68   : > { %1166 = vmatprep.subr.bf16.mxu0 %v8945_v0  ;;  %v652_v12 = vsel %vm590_vm0, %v647_v61, %v651_v6  ;;  %v649_v14 = vrot.slane %v9271_v9, 1  ;;  %v8812_v59 = vld [vmem:[%s11392_s1 + $0xc0] sm:$0xff]  }
  0x6b   : > { %1167 = vmatpush1.bf16.msra.mxu0 %v8806_v13  ;;  %v9275_v13 = vld [vmem:[%s9019_s16 + $0x114] ss:$8 sps:$4 sm:$0xff]  }
  0x6c   : > { %1751 = vmatprep.subr.bf16.mxu0 %v8945_v0 }
  0x6e   : > { %891 = vmatmul.mubr.bf16.gmra.mrb[24].mxu0 %v618_v15  ;;  %v655_v15 = vrot.slane %v9275_v13, 1 }
  0x6f   : > { %7145 = vmatprep.mubr.msk.bf16.mxu0 %vm755_vm1, %v624_v17  ;;  %v650_v17 = vsel %vm590_vm0, %v645_v4, %v649_v14  ;;  %v8816_v4 = vld [vmem:[%s11392_s1 + $0xd0] sm:$0xff]  }
  0x70   : > { %v656_v20 = vsel %vm590_vm0, %v651_v6, %v655_v15  ;;  %v8817_v6 = vld [vmem:[%s11392_s1 + $0xd8] sm:$0xff]  }
  0x76   : > { %899 = vmatmul.mubr.bf16.gmra.mrb[28].mxu0 %v622_v21  ;;  %v9286_v21 = vld [vmem:[%s9019_s16 + $0x124] ss:$8 sps:$4 sm:$0xff]  }
  0x77   : > { %7146 = vmatprep.mubr.msk.bf16.mxu0 %vm755_vm1, %v628_v25  ;;  %v653_v25 = vrot.slane %v9282_v19, 1  ;;  %v659_v27 = vrot.slane %v9286_v21, 1 }
  0x79   : > { %v660_v35 = vsel %vm590_vm0, %v655_v15, %v659_v27  ;;  %v8824_v15 = vld [vmem:[%s11392_s1 + $0x110] sm:$0xff]  }
  0x7e   : > { %907 = vmatmul.mubr.bf16.gmra.mrb[32].mxu0 %v626_v31  ;;  %v654_v31 = vsel %vm590_vm0, %v649_v14, %v653_v25  ;;  %v8823_v14 = vld [vmem:[%s11392_s1 + $0x108] sm:$0xff]  }
  0x7f   : > { %7147 = vmatprep.mubr.msk.bf16.mxu0 %vm755_vm1, %v632_v33  ;;  %v9294_v33 = vld [vmem:[%s9019_s16 + $0x120] ss:$8 sps:$4 sm:$0xff]  }
  0x86   : > { %915 = vmatmul.mubr.bf16.gmra.mrb[36].mxu0 %v630_v39  ;;  %v657_v39 = vrot.slane %v9294_v33, 1 }
  0x87   : > { %7148 = vmatprep.mubr.msk.bf16.mxu0 %vm755_vm1, %v636_v41  ;;  %v663_v41 = vrot.slane %v7125_v38, 1  ;;  %v2097_v38 = vld [vmem:[%s11398_s7 + $0x58] sm:$0xff] }
  0x88   : > { %v658_v43 = vsel %vm590_vm0, %v653_v25, %v657_v39  ;;  %v2093_v25 = vld [vmem:[%s11398_s7 + $0x38] sm:$0xff] }
  0x89   : > { %2159 = vperm.xlu1 %8730, %v2093_v25   ;;  %v2089_v25 = vld [vmem:[%s11398_s7 + $0x18] sm:$0xff] }
  0x8d   : > { %2164 = vperm.xlu1 %8730, %v2094_v30   ;;  %v1321_v30 = vld [vmem:[%s9019_s16 + $0x20] sm:$0xcc] }
  0x8e   : > { %923 = vmatmul.mubr.bf16.gmra.mrb[40].mxu0 %v634_v48  ;;  %v664_v48 = vsel %vm590_vm0, %v659_v27, %v663_v41  ;;  %v2092_v27 = vld [vmem:[%s11398_s7 + $0x30] sm:$0xff]  ;;  %v2099_v41 = vld [vmem:[%s11398_s7 + $0x68] sm:$0xff] }
  0x8f   : > { %7149 = vmatprep.mubr.msk.bf16.mxu0 %vm755_vm1, %v640_v50  ;;  %v661_v50 = vrot.slane %v7124_v47, 1  ;;  %v2101_v47 = vld [vmem:[%s11398_s7 + $0x78] sm:$0xff] }
  0x91   : > { %v662_v52 = vsel %vm590_vm0, %v657_v39, %v661_v50  ;;  %v2098_v39 = vld [vmem:[%s11398_s7 + $0x60] sm:$0xff]  ;;  %v2103_v50 = vld [vmem:[%s11398_s7 + $0x88] sm:$0xff] }
  0x96   : > { %931 = vmatmul.mubr.bf16.gmra.mrb[44].mxu0 %v638_v55  ;;  %v354_v55 = vld [vmem:[%s9019_s16 + $0x10] sm:$0xff] }
  0x97   : > { %7150 = vmatprep.mubr.msk.bf16.mxu0 %vm755_vm1, %v644_v57  ;;  %v8809_v57 = vld [vmem:[%s9019_s16] ss:$8 sps:$4 sm:$0xff]   ;;  %v7159_v61 = vcombine.high %v354_v55, %v9026_v5 }
  0x9e   : > { %939 = vmatmul.mubr.bf16.gmra.mrb[48].mxu0 %v642_v63  ;;  %v8815_v63 = vld [vmem:[%s11392_s1 + $0xc8] sm:$0xff]  }
  0x9f   : > { %7151 = vmatprep.mubr.msk.bf16.mxu0 %vm755_vm1, %v648_v2  ;;  %v7158_v2 = vcombine.low %v354_v55, %v9026_v5  ;;  %v8818_v5 = vld [vmem:[%s11392_s1 + $0xe0] sm:$0xff]  }
  0xa0   : > { %v2106_v55 = vld [vmem:[%s11398_s7 + $0xa0] sm:$0xff] }
  0xa6   : > { %947 = vmatmul.mubr.bf16.gmra.mrb[52].mxu0 %v646_v8  ;;  %v8820_v8 = vld [vmem:[%s11392_s1 + $0xf0] sm:$0xff]  }
  0xa7   : > { %7152 = vmatprep.mubr.msk.bf16.mxu0 %vm755_vm1, %v652_v12  ;;  %v8822_v12 = vld [vmem:[%s11392_s1 + $0x100] sm:$0xff]  }
  0xae   : > { %955 = vmatmul.mubr.bf16.gmra.mrb[56].mxu0 %v650_v17  ;;  %v8825_v17 = vld [vmem:[%s11392_s1 + $0x118] sm:$0xff]  }
  0xaf   : > { %7153 = vmatprep.mubr.msk.bf16.mxu0 %vm755_vm1, %v656_v20  ;;  %v2091_v20 = vld [vmem:[%s11398_s7 + $0x28] sm:$0xff] }
  0xb0   : > { %2149 = vperm.xlu0 %8729, %v2091_v20   ;;  %v2088_v20 = vld [vmem:[%s11398_s7 + $0x10] sm:$0xff] }
  0xb4   : > { %2154 = vperm.xlu0 %8729, %v2092_v27   ;;  %v2090_v27 = vld [vmem:[%s11398_s7 + $0x20] sm:$0xff] }
  0xb6   : > { %963 = vmatmul.mubr.bf16.gmra.mrb[60].mxu0 %v654_v31  ;;  %v2095_v31 = vld [vmem:[%s11398_s7 + $0x48] sm:$0xff] }
  0xb7   : > { %7154 = vmatprep.mubr.msk.bf16.mxu0 %vm755_vm1, %v660_v35  ;;  %v2096_v35 = vld [vmem:[%s11398_s7 + $0x50] sm:$0xff] }
  0xb8   : > { %2169 = vperm.xlu0 %8729, %v2095_v31   ;;  %2174 = vperm.xlu1 %8730, %v2096_v35   ;;  %v8930_v31 = vld [vmem:[%s9019_s16 + $0x28] sm:$0xff] }
  0xb9   : > { %v7215_v35 = vcombine.high %v1321_v30, %v8930_v31 }
  0xbc   : > { %2179 = vperm.xlu0 %8729, %v2097_v38   ;;  %2184 = vperm.xlu1 %8730, %v2098_v39   ;;  %v1536_v38 = vrot.slane %v7215_v35, 2  ;;  %v1537_v39 = vrot.slane %v9069_v23, 2 }
  0xbe   : > { %971 = vmatmul.mubr.bf16.gmra.mrb[64].mxu0 %v658_v43  ;;  %v2100_v43 = vld [vmem:[%s11398_s7 + $0x70] sm:$0xff] }
  0xbf   : > { %7155 = vmatprep.mubr.msk.bf16.mxu0 %vm755_vm1, %v664_v48  ;;  %v2102_v48 = vld [vmem:[%s11398_s7 + $0x80] sm:$0xff] }
  0xc0   : > { %2189 = vperm.xlu0 %8729, %v2099_v41   ;;  %2194 = vperm.xlu1 %8730, %v2100_v43   ;;  %v7214_v41 = vcombine.low %v1321_v30, %v8930_v31  ;;  %v1538_v43 = vsel %vm1532_vm2, %v1536_v38, %v1537_v39 }
  0xc4   : > { %2199 = vperm.xlu0 %8729, %v2101_v47   ;;  %2204 = vperm.xlu1 %8730, %v2102_v48   ;;  %v1533_v47 = vrot.slane %v7214_v41, 2  ;;  %v1534_v48 = vrot.slane %v9078_v28, 2 }
  0xc6   : > { %979 = vmatmul.mubr.bf16.gmra.mrb[68].mxu0 %v662_v52  ;;  %v2104_v52 = vld [vmem:[%s11398_s7 + $0x90] sm:$0xff] }
  0xc7   : > { %7172 = vmatprep.mubr.msk.bf16.mxu0 %vm755_vm1, %v8811_v53  ;;  %v2105_v53 = vld [vmem:[%s11398_s7 + $0x98] sm:$0xff] }
  0xc8   : > { %2209 = vperm.xlu0 %8729, %v2103_v50   ;;  %2214 = vperm.xlu1 %8730, %v2104_v52   ;;  %v1541_v50 = vrot.slane %v9081_v29, 2  ;;  %v1535_v52 = vsel %vm1532_vm2, %v1533_v47, %v1534_v48 }
  0xcc   : > { %2219 = vperm.xlu0 %8729, %v2105_v53   ;;  %2224 = vperm.xlu1 %8730, %v2106_v55   ;;  %v1542_v53 = vsel %vm1532_vm2, %v1537_v39, %v1541_v50  ;;  %v1545_v55 = vrot.slane %v9100_v37, 2 }
  0xce   : > { %1177 = vmatmul.mubr.bf16.vlgmr.msra.gmra.mrb[0].mxu0 %v8809_v57  ;;  %v2107_v57 = vld [vmem:[%s11398_s7 + $0xa8] sm:$0xff] }
  0xcf   : > { %1752 = vmatpush1.bf16.msra.mxu0 %v8812_v59  ;;  %7173 = vmatprep.mubr.msk.bf16.mxu0 %vm755_vm1, %v7159_v61  ;;  %v2108_v59 = vld [vmem:[%s11398_s7 + $0xb0] sm:$0xff]  ;;  %v2109_v61 = vld [vmem:[%s11398_s7 + $0xb8] sm:$0xff] }
  0xd0   : > { %1753 = vmatprep.subr.bf16.mxu0 %v8945_v0  ;;  %2229 = vperm.xlu0 %8729, %v2107_v57  }
  0xd1   : > { %2234 = vperm.xlu1 %8730, %v2108_v59   ;;  %v1546_v59 = vsel %vm1532_vm2, %v1541_v50, %v1545_v55  ;;  %v8833_v50 = vld [vmem:[%s11395_s4 + $0x20] sm:$0xff]  }
  0xd3   : > { %1754 = vmatpush1.bf16.msra.mxu0 %v8815_v63  ;;  %v2110_v63 = vld [vmem:[%s11398_s7 + $0xc0] sm:$0xff] }
  0xd4   : > { %1755 = vmatprep.subr.bf16.mxu0 %v8945_v0  ;;  %2239 = vperm.xlu0 %8729, %v2109_v61   ;;  %v1543_v61 = vrot.slane %v9115_v44, 2 }
  0xd5   : > { %2244 = vperm.xlu1 %8730, %v2110_v63  }
  0xd6   : > { %1185 = vmatmul.mubr.bf16.gmra.mrb[4].mxu0 %v7158_v2  ;;  %v2111_v2 = vld [vmem:[%s11398_s7 + $0xc8] sm:$0xff] }
  0xd7   : > { %7174 = vmatprep.mubr.msk.bf16.mxu0 %vm755_vm1, %v9032_v10  ;;  %1756 = vmatpush1.bf16.msra.mxu0 %v8816_v4  ;;  %v8819_v10 = vld [vmem:[%s11392_s1 + $0xe8] sm:$0xff]   ;;  %v2112_v4 = vld [vmem:[%s11398_s7 + $0xd0] sm:$0xff] }
  0xd8   : > { %1757 = vmatprep.subr.bf16.mxu0 %v8945_v0  ;;  %2249 = vperm.xlu0 %8729, %v2111_v2   ;;  %v1547_v2 = vrot.slane %v9122_v46, 2 }
  0xd9   : > { %2254 = vperm.xlu1 %8730, %v2112_v4   ;;  %v1553_v4 = vrot.slane %v9138_v54, 2 }
  0xdb   : > { %1758 = vmatpush1.bf16.msra.mxu0 %v8817_v6  ;;  %v2113_v6 = vld [vmem:[%s11398_s7 + $0xd8] sm:$0xff] }
  0xdc   : > { %1759 = vmatprep.subr.bf16.mxu0 %v8945_v0  ;;  %2259 = vperm.xlu0 %8729, %v2113_v6   ;;  %v1548_v6 = vsel %vm1532_vm2, %v1543_v61, %v1547_v2 }
  0xde   : > { %1193 = vmatmul.mubr.bf16.gmra.mrb[8].mxu0 %v9065_v22  ;;  %v8821_v22 = vld [vmem:[%s11392_s1 + $0xf8] sm:$0xff]  }
  0xdf   : > { %7175 = vmatprep.mubr.msk.bf16.mxu0 %vm755_vm1, %v9069_v23  ;;  %1760 = vmatpush1.bf16.msra.mxu0 %v8818_v5  ;;  %v2114_v5 = vld [vmem:[%s11398_s7 + $0xe0] sm:$0xff]  ;;  %v1539_v23 = vrot.slane %v9097_v36, 2 }
  0xe0   : > { %1761 = vmatprep.subr.bf16.mxu0 %v8945_v0  ;;  %2264 = vperm.xlu1 %8730, %v2114_v5  }
  0xe1   : > { %v1540_v57 = vsel %vm1532_vm2, %v1534_v48, %v1539_v23 }
  0xe3   : > { %1762 = vmatpush1.bf16.msra.mxu0 %v8819_v10  ;;  %v2115_v10 = vld [vmem:[%s11398_s7 + $0xe8] sm:$0xff] }
  0xe4   : > { %1763 = vmatprep.subr.bf16.mxu0 %v8945_v0  ;;  %2269 = vperm.xlu0 %8729, %v2115_v10  }
  0xe6   : > { %1201 = vmatmul.mubr.bf16.gmra.mrb[12].mxu0 %v9078_v28  ;;  %v2120_v28 = vld [vmem:[%s11398_s7 + $0x110] sm:$0xff] }
  0xe7   : > { %7176 = vmatprep.mubr.msk.bf16.mxu0 %vm755_vm1, %v9081_v29  ;;  %1764 = vmatpush1.bf16.msra.mxu0 %v8820_v8  ;;  %v2116_v8 = vld [vmem:[%s11398_s7 + $0xf0] sm:$0xff]  ;;  %v2121_v29 = vld [vmem:[%s11398_s7 + $0x118] sm:$0xff] }
  0xe8   : > { %1765 = vmatprep.subr.bf16.mxu0 %v8945_v0  ;;  %2274 = vperm.xlu1 %8730, %v2116_v8  }
  0xeb   : > { %1766 = vmatpush1.bf16.msra.mxu0 %v8821_v22  ;;  %v2117_v22 = vld [vmem:[%s11398_s7 + $0xf8] sm:$0xff] }
  0xec   : > { %1767 = vmatprep.subr.bf16.mxu0 %v8945_v0  ;;  %2279 = vperm.xlu0 %8729, %v2117_v22  }
  0xee   : > { %1209 = vmatmul.mubr.bf16.gmra.mrb[16].mxu0 %v9097_v36  ;;  %v1549_v36 = vrot.slane %v9118_v45, 2 }
  0xef   : > { %7177 = vmatprep.mubr.msk.bf16.mxu0 %vm755_vm1, %v9100_v37  ;;  %1768 = vmatpush1.bf16.msra.mxu0 %v8822_v12  ;;  %v2118_v12 = vld [vmem:[%s11398_s7 + $0x100] sm:$0xff]  ;;  %v1544_v37 = vsel %vm1532_vm2, %v1539_v23, %v1543_v61 }
  0xf0   : > { %1769 = vmatprep.subr.bf16.mxu0 %v8945_v0  ;;  %2284 = vperm.xlu1 %8730, %v2118_v12   ;;  %v1550_v63 = vsel %vm1532_vm2, %v1545_v55, %v1549_v36  ;;  %v1554_v5 = vsel %vm1532_vm2, %v1549_v36, %v1553_v4  ;;  %v1357_v23 = vld [vmem:[%s9019_s16 + $0x140] sm:$0x33]  ;;  %v8835_v55 = vld [vmem:[%s11395_s4 + $0x30] sm:$0xff]  }
  0xf3   : > { %1770 = vmatpush1.bf16.msra.mxu0 %v8823_v14  ;;  %v2119_v14 = vld [vmem:[%s11398_s7 + $0x108] sm:$0xff] }
  0xf4   : > { %1771 = vmatprep.subr.bf16.mxu0 %v8945_v0  ;;  %2289 = vperm.xlu0 %8729, %v2119_v14  }
  0xf6   : > { %1217 = vmatmul.mubr.bf16.gmra.mrb[20].mxu0 %v9115_v44  ;;  %v1551_v44 = vrot.slane %v9154_v60, 2 }
  0xf7   : > { %7178 = vmatprep.mubr.msk.bf16.mxu0 %vm755_vm1, %v9118_v45  ;;  %1772 = vmatpush1.bf16.msra.mxu0 %v8824_v15  ;;  %v2086_v15 = vld [vmem:[%s11398_s7] sm:$0xff]  ;;  %v1557_v45 = vrot.slane %v9160_v62, 2 }
  0xf8   : > { %1773 = vmatprep.subr.bf16.mxu0 %v8945_v0  ;;  %2124 = vperm.xlu1 %8730, %v2086_v15   ;;  %v1552_v10 = vsel %vm1532_vm2, %v1547_v2, %v1551_v44  ;;  %v1591_v0 = vrot.slane %v9282_v19, 2 }
  0xf9   : > { %v1558_v8 = vsel %vm1532_vm2, %v1553_v4, %v1557_v45 }
  0xfb   : > { %1774 = vmatpush1.bf16.msra.mxu0 %v8825_v17  ;;  %v2087_v17 = vld [vmem:[%s11398_s7 + $0x8] sm:$0xff] }
  0xfc   : > { %2129 = vperm.xlu0 %8729, %v2087_v17   ;;  %2134 = vperm.xlu1 %8730, %v2088_v20  }
  0xfd   : > { %7882 = vmatprep.subr.bf16.mxu0 %v8833_v50 }
  0xfe   : > { %1225 = vmatmul.mubr.bf16.gmra.mrb[24].mxu0 %v9122_v46  ;;  %v1555_v46 = vrot.slane %v9174_v7, 2 }
  0xff   : > { %7179 = vmatprep.mubr.msk.bf16.mxu0 %vm755_vm1, %v9138_v54  ;;  %v1561_v54 = vrot.slane %v9181_v11, 2 }
 0x100   : > { %2139 = vperm.xlu0 %8729, %v2089_v25   ;;  %2144 = vperm.xlu1 %8730, %v2090_v27   ;;  %v1556_v22 = vsel %vm1532_vm2, %v1551_v44, %v1555_v46 }
 0x101   : > { %v1562_v12 = vsel %vm1532_vm2, %v1557_v45, %v1561_v54 }
 0x104   : > { %2294 = vperm.xlu0 %8729, %v2120_v28   ;;  %2299 = vperm.xlu1 %8730, %v2121_v29   ;;  %v7251_v29 = vcombine.high %v1357_v23, %v1357_v23 }
 0x106   : > { %1233 = vmatmul.mubr.bf16.gmra.mrb[28].mxu0 %v9154_v60  ;;  %v1559_v60 = vrot.slane %v9193_v16, 2  ;;  %v1605_v36 = vrot.slane %v7251_v29, 2 }
 0x107   : > { %7180 = vmatprep.mubr.msk.bf16.mxu0 %vm755_vm1, %v9160_v62  ;;  %v1565_v62 = vrot.slane %v9197_v18, 2 }
 0x108   : > { %v1560_v14 = vsel %vm1532_vm2, %v1555_v46, %v1559_v60  ;;  %v9704_v44 = vpop.permute.xlu1 %2159 }
 0x109   : > { %v1566_v15 = vsel %vm1532_vm2, %v1561_v54, %v1565_v62 }
 0x10c   : > { %v9719_v46 = vpop.permute.xlu1 %2164 }
 0x10e   : > { %1241 = vmatmul.mubr.bf16.gmra.mrb[32].mxu0 %v9174_v7  ;;  %v1563_v7 = vrot.slane %v9205_v24, 2 }
 0x10f   : > { %7181 = vmatprep.mubr.msk.bf16.mxu0 %vm755_vm1, %v9181_v11  ;;  %v1569_v11 = vrot.slane %v9209_v26, 2 }
 0x110   : > { %v1564_v17 = vsel %vm1532_vm2, %v1559_v60, %v1563_v7  ;;  %v9735_v60 = vld [vmem:[%s11395_s4 + $0x18] sm:$0xff]  }
 0x111   : > { %v1570_v20 = vsel %vm1532_vm2, %v1565_v62, %v1569_v11 }
 0x116   : > { %1249 = vmatmul.mubr.bf16.gmra.mrb[36].mxu0 %v9193_v16  ;;  %v1567_v16 = vrot.slane %v9216_v32, 2 }
 0x117   : > { %7182 = vmatprep.mubr.msk.bf16.mxu0 %vm755_vm1, %v9197_v18  ;;  %v1573_v18 = vrot.slane %v9220_v34, 2 }
 0x118   : > { %v1568_v25 = vsel %vm1532_vm2, %v1563_v7, %v1567_v16 }
 0x119   : > { %v1574_v27 = vsel %vm1532_vm2, %v1569_v11, %v1573_v18 }
 0x11e   : > { %1257 = vmatmul.mubr.bf16.gmra.mrb[40].mxu0 %v9205_v24  ;;  %v1571_v24 = vrot.slane %v9227_v40, 2 }
 0x11f   : > { %7183 = vmatprep.mubr.msk.bf16.mxu0 %vm755_vm1, %v9209_v26  ;;  %v1577_v26 = vrot.slane %v9231_v42, 2 }
 0x120   : > { %v1572_v30 = vsel %vm1532_vm2, %v1567_v16, %v1571_v24 }
 0x121   : > { %v1578_v31 = vsel %vm1532_vm2, %v1573_v18, %v1577_v26 }
 0x126   : > { %1265 = vmatmul.mubr.bf16.gmra.mrb[44].mxu0 %v9216_v32  ;;  %v1575_v32 = vrot.slane %v9238_v49, 2 }
 0x127   : > { %7184 = vmatprep.mubr.msk.bf16.mxu0 %vm755_vm1, %v9220_v34  ;;  %v1581_v34 = vrot.slane %v9242_v51, 2 }
 0x128   : > { %v1576_v35 = vsel %vm1532_vm2, %v1571_v24, %v1575_v32 }
 0x129   : > { %v1582_v38 = vsel %vm1532_vm2, %v1577_v26, %v1581_v34 }
 0x12e   : > { %1273 = vmatmul.mubr.bf16.gmra.mrb[48].mxu0 %v9227_v40  ;;  %v1579_v40 = vrot.slane %v9249_v56, 2 }
 0x12f   : > { %7185 = vmatprep.mubr.msk.bf16.mxu0 %vm755_vm1, %v9231_v42  ;;  %v1585_v42 = vrot.slane %v9253_v58, 2  ;;  %v9696_v4 = vpop.permute.xlu0 %2149 }
 0x130   : > { %v1580_v39 = vsel %vm1532_vm2, %v1575_v32, %v1579_v40 }
 0x131   : > { %v1586_v41 = vsel %vm1532_vm2, %v1581_v34, %v1585_v42 }
 0x136   : > { %1281 = vmatmul.mubr.bf16.gmra.mrb[52].mxu0 %v9238_v49  ;;  %v1583_v49 = vrot.slane %v9260_v1, 2 }
 0x137   : > { %7186 = vmatprep.mubr.msk.bf16.mxu0 %vm755_vm1, %v9242_v51  ;;  %v1589_v51 = vrot.slane %v9264_v3, 2 }
 0x13e   : > { %1289 = vmatmul.mubr.bf16.gmra.mrb[56].mxu0 %v9249_v56  ;;  %v1584_v56 = vsel %vm1532_vm2, %v1579_v40, %v1583_v49 }
 0x13f   : > { %7187 = vmatprep.mubr.msk.bf16.mxu0 %vm755_vm1, %v9253_v58  ;;  %v1590_v58 = vsel %vm1532_vm2, %v1585_v42, %v1589_v51 }
 0x146   : > { %1297 = vmatmul.mubr.bf16.gmra.mrb[60].mxu0 %v9260_v1  ;;  %v1587_v1 = vrot.slane %v9271_v9, 2 }
 0x147   : > { %7188 = vmatprep.mubr.msk.bf16.mxu0 %vm755_vm1, %v9264_v3  ;;  %v1597_v3 = vrot.slane %v9286_v21, 2 }
 0x148   : > { %v1588_v47 = vsel %vm1532_vm2, %v1583_v49, %v1587_v1 }
 0x14e   : > { %1305 = vmatmul.mubr.bf16.gmra.mrb[64].mxu0 %v9271_v9  ;;  %v1592_v9 = vsel %vm1532_vm2, %v1587_v1, %v1591_v0 }
 0x14f   : > { %7189 = vmatprep.mubr.msk.bf16.mxu0 %vm755_vm1, %v9275_v13 }
 0x156   : > { %1313 = vmatmul.mubr.bf16.gmra.mrb[68].mxu0 %v9282_v19  ;;  %v1595_v19 = vrot.slane %v9294_v33, 2  ;;  %v8838_v33 = vld [vmem:[%s11395_s4 + $0x38] sm:$0xff]  }
 0x157   : > { %7264 = vmatprep.mubr.msk.bf16.mxu0 %vm755_vm1, %v1538_v43  ;;  %v1593_v43 = vrot.slane %v9275_v13, 2 }
 0x159   : > { %v1594_v48 = vsel %vm1532_vm2, %v1589_v51, %v1593_v43  ;;  %v1598_v13 = vsel %vm1532_vm2, %v1593_v43, %v1597_v3 }
 0x15e   : > { %1784 = vmatmul.mubr.bf16.vlgmr.msra.gmra.mrb[0].mxu0 %v1535_v52  ;;  %v8828_v52 = vld [vmem:[%s9019_s16 + $0x134] ss:$8 sps:$4 sm:$0xff]  }
 0x15f   : > { %7265 = vmatprep.mubr.msk.bf16.mxu0 %vm755_vm1, %v1542_v53  ;;  %7883 = vmatpush3.bf16.msra.mxu0 %v8833_v50  ;;  %v8834_v53 = vld [vmem:[%s11395_s4 + $0x28] sm:$0xff]   ;;  %v1601_v21 = vrot.slane %v8828_v52, 2 }
 0x160   : > { %7884 = vmatprep.subr.bf16.mxu0 %v8834_v53 }
 0x161   : > { %v1602_v28 = vsel %vm1532_vm2, %v1597_v3, %v1601_v21  ;;  %v1606_v2 = vsel %vm1532_vm2, %v1601_v21, %v1605_v36 }
 0x163   : > { %7885 = vmatpush3.bf16.msra.mxu0 %v8834_v53 }
 0x164   : > { %7886 = vmatprep.subr.bf16.mxu0 %v8835_v55 }
 0x166   : > { %1792 = vmatmul.mubr.bf16.gmra.mrb[4].mxu0 %v1540_v57  ;;  %v1596_v57 = vsel %vm1532_vm2, %v1591_v0, %v1595_v19 }
 0x167   : > { %7266 = vmatprep.mubr.msk.bf16.mxu0 %vm755_vm1, %v1546_v59  ;;  %v8830_v59 = vld [vmem:[%s9019_s16 + $0x130] ss:$8 sps:$4 sm:$0xff]   ;;  %7887 = vmatpush3.bf16.msra.mxu0 %v8835_v55 }
 0x168   : > { %v1599_v61 = vrot.slane %v8830_v59, 2  ;;  %7888 = vmatprep.subr.bf16.mxu0 %v8838_v33 }
 0x16b   : > { %7889 = vmatpush3.bf16.msra.mxu0 %v8838_v33 }
 0x16e   : > { %1800 = vmatmul.mubr.bf16.gmra.mrb[8].mxu0 %v1544_v37  ;;  %v1600_v37 = vsel %vm1532_vm2, %v1595_v19, %v1599_v61 }
 0x16f   : > { %7267 = vmatprep.mubr.msk.bf16.mxu0 %vm755_vm1, %v1550_v63  ;;  %v7250_v63 = vcombine.low %v1357_v23, %v1357_v23 }
 0x176   : > { %1808 = vmatmul.mubr.bf16.gmra.mrb[12].mxu0 %v1548_v6  ;;  %v1603_v6 = vrot.slane %v7250_v63, 2 }
 0x177   : > { %7268 = vmatprep.mubr.msk.bf16.mxu0 %vm755_vm1, %v1554_v5  ;;  %v9702_v5 = vld [vmem:[%s11395_s4] sm:$0xff]  }
 0x178   : > { %8278 = vmatprep.subr.bf16.mxu1 %v9702_v5  ;;  %7926 = vmatprep.subr.bf16.mxu0 %v9702_v5  ;;  %v1604_v45 = vsel %vm1532_vm2, %v1599_v61, %v1603_v6  ;;  %v2892_v6 = vld [vmem:[#allocation2 + $0x4] sm:$0xf] }
 0x179   : > { %8282 = vmatpush3.bf16.msra.mxu1 %v9702_v5 }
 0x17e   : > { %1816 = vmatmul.mubr.bf16.gmra.mrb[16].mxu0 %v1552_v10  ;;  %v9710_v10 = vpop.permute.xlu0 %2154 }
 0x17f   : > { %7269 = vmatprep.mubr.msk.bf16.mxu0 %vm755_vm1, %v1558_v8  ;;  %v9715_v8 = vld [vmem:[%s11395_s4 + $0x8] sm:$0xff]  }
 0x180   : > { %8279 = vmatprep.subr.bf16.mxu1 %v9715_v8 }
 0x181   : > { %8283 = vmatpush3.bf16.msra.mxu1 %v9715_v8 }
 0x182   : > { %v9721_v54 = vpop.permute.xlu0 %2169 }
 0x186   : > { %1824 = vmatmul.mubr.bf16.gmra.mrb[20].mxu0 %v1556_v22  ;;  %v9726_v22 = vld [vmem:[%s11395_s4 + $0x10] sm:$0xff]   ;;  %v9737_v62 = vpop.permute.xlu0 %2179 }
 0x187   : > { %7270 = vmatprep.mubr.msk.bf16.mxu0 %vm755_vm1, %v1562_v12  ;;  %8280 = vmatprep.subr.bf16.mxu1 %v9726_v22  ;;  %v9730_v12 = vpop.permute.xlu1 %2174 }
 0x188   : > { %8284 = vmatpush3.bf16.msra.mxu1 %v9726_v22 }
 0x189   : > { %8281 = vmatprep.subr.bf16.mxu1 %v9735_v60 }
 0x18c   : > { %8285 = vmatpush3.bf16.msra.mxu1 %v9735_v60 }
 0x18e   : > { %1832 = vmatmul.mubr.bf16.gmra.mrb[24].mxu0 %v1560_v14  ;;  %v9741_v14 = vpop.permute.xlu1 %2184 }
 0x18f   : > { %7271 = vmatprep.mubr.msk.bf16.mxu0 %vm755_vm1, %v1566_v15  ;;  %v9743_v15 = vpop.permute.xlu0 %2189 }
 0x192   : > { %v9745_v7 = vpop.permute.xlu1 %2194 }
 0x193   : > { %v9747_v11 = vpop.permute.xlu0 %2199 }
 0x196   : > { %1840 = vmatmul.mubr.bf16.gmra.mrb[28].mxu0 %v1564_v17  ;;  %v9749_v17 = vpop.permute.xlu1 %2204 }
 0x197   : > { %7272 = vmatprep.mubr.msk.bf16.mxu0 %vm755_vm1, %v1570_v20  ;;  %v9751_v20 = vpop.permute.xlu0 %2209 }
 0x19a   : > { %v9753_v16 = vpop.permute.xlu1 %2214 }
 0x19b   : > { %v9755_v18 = vpop.permute.xlu0 %2219 }
 0x19e   : > { %1848 = vmatmul.mubr.bf16.gmra.mrb[32].mxu0 %v1568_v25  ;;  %v9757_v25 = vpop.permute.xlu1 %2224 }
 0x19f   : > { %7273 = vmatprep.mubr.msk.bf16.mxu0 %vm755_vm1, %v1574_v27  ;;  %v9759_v27 = vpop.permute.xlu0 %2229 }
 0x1a2   : > { %v9761_v24 = vpop.permute.xlu1 %2234 }
 0x1a3   : > { %v9763_v26 = vpop.permute.xlu0 %2239 }
 0x1a6   : > { %1856 = vmatmul.mubr.bf16.gmra.mrb[36].mxu0 %v1572_v30  ;;  %v9765_v30 = vpop.permute.xlu1 %2244 }
 0x1a7   : > { %7274 = vmatprep.mubr.msk.bf16.mxu0 %vm755_vm1, %v1578_v31  ;;  %v9767_v31 = vpop.permute.xlu0 %2249 }
 0x1aa   : > { %v9769_v32 = vpop.permute.xlu1 %2254 }
 0x1ab   : > { %v9771_v34 = vpop.permute.xlu0 %2259 }
 0x1ae   : > { %1864 = vmatmul.mubr.bf16.gmra.mrb[40].mxu0 %v1576_v35  ;;  %v9773_v35 = vpop.permute.xlu1 %2264 }
 0x1af   : > { %7275 = vmatprep.mubr.msk.bf16.mxu0 %vm755_vm1, %v1582_v38  ;;  %v9775_v38 = vpop.permute.xlu0 %2269 }
 0x1b2   : > { %v9777_v40 = vpop.permute.xlu1 %2274 }
 0x1b3   : > { %v9779_v42 = vpop.permute.xlu0 %2279 }
 0x1b6   : > { %1872 = vmatmul.mubr.bf16.gmra.mrb[44].mxu0 %v1580_v39  ;;  %v9784_v39 = vld [vmem:[%s11395_s4 + $0x40] sm:$0xff]   ;;  %v9791_v49 = vpop.permute.xlu1 %2284 }
 0x1b7   : > { %7276 = vmatprep.mubr.msk.bf16.mxu0 %vm755_vm1, %v1586_v41  ;;  %v9789_v41 = vld [vmem:[%s11393_s2] ss:$0 sm:$0xff]  ;;  %7970 = vmatprep.subr.bf16.mxu1 %v9784_v39 }
 0x1ba   : > { %v2125_v50 = vpop.permute.xlu1 %2124 }
 0x1be   : > { %1880 = vmatmul.mubr.bf16.gmra.mrb[48].mxu0 %v1584_v56  ;;  %v9797_v56 = vld [vmem:[%s11394_s3] ss:$0 sm:$0xff] }
 0x1bf   : > { %7277 = vmatprep.mubr.msk.bf16.mxu0 %vm755_vm1, %v1590_v58  ;;  %v9799_v58 = vpop.permute.xlu0 %2289 }
 0x1c3   : > { %v2130_v52 = vpop.permute.xlu0 %2129 }
 0x1c6   : > { %1888 = vmatmul.mubr.bf16.gmra.mrb[52].mxu0 %v1588_v47 }
 0x1c7   : > { %7278 = vmatprep.mubr.msk.bf16.mxu0 %vm755_vm1, %v1594_v48 }
 0x1ce   : > { %1896 = vmatmul.mubr.bf16.gmra.mrb[56].mxu0 %v1592_v9 }
 0x1cf   : > { %7279 = vmatprep.mubr.msk.bf16.mxu0 %vm755_vm1, %v1598_v13 }
 0x1d6   : > { %1904 = vmatmul.mubr.bf16.gmra.mrb[60].mxu0 %v1596_v57 }
 0x1d7   : > { %7280 = vmatprep.mubr.msk.bf16.mxu0 %vm755_vm1, %v1602_v28 }
 0x1de   : > { %1912 = vmatmul.mubr.bf16.gmra.mrb[64].mxu0 %v1600_v37 }
 0x1df   : > { %7281 = vmatprep.mubr.msk.bf16.mxu0 %vm755_vm1, %v1606_v2  ;;  %v2891_v2 = vld [vmem:[#allocation2] sm:$0xf] }
 0x1e6   : > { %1920 = vmatmul.mubr.bf16.gmra.mrb[68].mxu0 %v1604_v45 }
 0x231   : > { %v1785_v51 = vpop.f32.mrb[0].mxu0 }
 0x232   : > { %v1971_v1 = vmul.f32 %v9789_v41, %v1785_v51  ;;  %v1787_v43 = vpop.f32.mrb[1].mxu0 }
 0x233   : > { %v1788_v47 = vpop.f32.mrb[2].mxu0 }
 0x234   : > { %v2014_v48 = vadd.f32 %v9797_v56, %v1971_v1  ;;  %v1972_v0 = vmul.f32 %v9789_v41, %v1788_v47  ;;  %v1790_v3 = vpop.f32.mrb[3].mxu0  ;;  %v2135_v47 = vpop.permute.xlu1 %2134 }
 0x236   : > { %v2015_v9 = vadd.f32 %v9797_v56, %v1972_v0  ;;  %v2050_v13 = vmax.f32 %v2014_v48, 0.0  ;;  %v2848_v0 = vld [vmem:[#allocation2 + $0x8] sm:$0xe] }
 0x238   : > { %v2302_v53 = vmul.f32 %v2125_v50, %v2050_v13  ;;  %v2051_v19 = vmax.f32 %v2015_v9, 0.0 }
 0x239   : > { %v1793_v21 = vpop.f32.mrb[4].mxu0 }
 0x23a   : > { %v7648_v23 = vpack.c.bf16 %v2302_v53, %v2302_v53  ;;  %v2303_v55 = vmul.f32 %v2130_v52, %v2051_v19  ;;  %v1973_v57 = vmul.f32 %v9789_v41, %v1793_v21  ;;  %v1795_v59 = vpop.f32.mrb[5].mxu0  ;;  %v2140_v53 = vpop.permute.xlu0 %2139  ;;  %v9815_v19 = vcombine.low %v2891_v2, %v2892_v6 }
 0x23b   : > { %v1796_v28 = vpop.f32.mrb[6].mxu0 }
 0x23c   : > { %v2450_v29 = vshrl.u32 %v7648_v23, 16  ;;  %v2453_v33 = vshll.u32 %v7648_v23, 16  ;;  %v7649_v61 = vpack.c.bf16 %v2303_v55, %v2303_v55  ;;  %v2016_v36 = vadd.f32 %v9797_v56, %v1973_v57  ;;  %v1798_v37 = vpop.f32.mrb[7].mxu0 }
 0x23d   : > { %v1974_v63 = vmul.f32 %v9789_v41, %v1796_v28 }
 0x23e   : > { %v2452_v45 = vrot.slane %v2450_v29, 6  ;;  %v2455_v51 = vrot.slane %v2453_v33, 7  ;;  %v2459_v1 = vshrl.u32 %v7649_v61, 16  ;;  %v2462_v43 = vshll.u32 %v7649_v61, 16 }
 0x23f   : > { %v2017_v3 = vadd.f32 %v9797_v56, %v1974_v63  ;;  %v2052_v50 = vmax.f32 %v2016_v36, 0.0 }
 0x240   : > { %v2456_v9 = vor.u32 %v2455_v51, %v2452_v45  ;;  %v2461_v13 = vrot.slane %v2459_v1, 6  ;;  %v2464_v52 = vrot.slane %v2462_v43, 7  ;;  %v3042_v1 = vshll.u32 %v9815_v19, 16 }
 0x241   : > { %v2304_v23 = vmul.f32 %v2135_v47, %v2052_v50  ;;  %v2053_v55 = vmax.f32 %v2017_v3, 0.0  ;;  %v1801_v57 = vpop.f32.mrb[8].mxu0 }
 0x242   : > { %v2457_v59 = vrot.slane %v2456_v9, 4  ;;  %v2849_v28 = vsel %vm9810_vm8, %v2456_v9, %v2848_v0  ;;  %v2465_v29 = vor.u32 %v2464_v52, %v2461_v13  ;;  %v1975_v33 = vmul.f32 %v9789_v41, %v1801_v57  ;;  %v1803_v61 = vpop.f32.mrb[9].mxu0  ;;  %v2145_v0 = vpop.permute.xlu1 %2144 }
 0x243   : > { %2850 = vst [vmem:[#allocation2 + $0x8] sm:$0xe] %v2849_v28  ;;  %v7650_v36 = vpack.c.bf16 %v2304_v23, %v2304_v23  ;;  %v2305_v37 = vmul.f32 %v2140_v53, %v2053_v55  ;;  %v1804_v63 = vpop.f32.mrb[10].mxu0  ;;  %v3040_v57 = vshrl.u32 %v9815_v19, 16 }
 0x244   : > { %v2466_v2 = vsel %vm9819_vm9, %v2457_v59, %v2465_v29  ;;  %v2018_v6 = vadd.f32 %v9797_v56, %v1975_v33  ;;  %v1976_v45 = vmul.f32 %v9789_v41, %v1804_v63  ;;  %v1806_v51 = vpop.f32.mrb[11].mxu0  ;;  %v3044_v59 = vrot.slane %v3042_v1, 1 }
 0x245   : > { %2851 = vst.msk [vmem:[#allocation2 + $0xc] sm:$0xf] %vm307_vm3, %v2466_v2  ;;  %v2469_v43 = vshrl.u32 %v7650_v36, 16  ;;  %v2472_v47 = vshll.u32 %v7650_v36, 16  ;;  %v7651_v48 = vpack.c.bf16 %v2305_v37, %v2305_v37  ;;  %v2467_v28 = vrot.slane %v2465_v29, 4 }
 0x246   : > { %v2019_v3 = vadd.f32 %v9797_v56, %v1976_v45  ;;  %v2054_v50 = vmax.f32 %v2018_v6, 0.0 }
 0x247   : > { %v2471_v9 = vrot.slane %v2469_v43, 6  ;;  %v2474_v13 = vrot.slane %v2472_v47, 7  ;;  %v2479_v52 = vshrl.u32 %v7651_v48, 16  ;;  %v2482_v53 = vshll.u32 %v7651_v48, 16 }
 0x248   : > { %v2055_v23 = vmax.f32 %v2019_v3, 0.0  ;;  %v2306_v55 = vmul.f32 %v2145_v0, %v2054_v50 }
 0x249   : > { %v2475_v33 = vor.u32 %v2474_v13, %v2471_v9  ;;  %v2481_v61 = vrot.slane %v2479_v52, 6  ;;  %v2484_v63 = vrot.slane %v2482_v53, 7  ;;  %v1809_v2 = vpop.f32.mrb[12].mxu0  ;;  %v3045_v52 = vor.u32 %v3044_v59, %v3040_v57 }
 0x24a   : > { %v2307_v36 = vmul.f32 %v9696_v4, %v2055_v23  ;;  %v7652_v37 = vpack.c.bf16 %v2306_v55, %v2306_v55  ;;  %v1977_v45 = vmul.f32 %v9789_v41, %v1809_v2  ;;  %v1811_v6 = vpop.f32.mrb[13].mxu0 }
 0x24b   : > { %v2476_v51 = vsel %vm9819_vm9, %v2467_v28, %v2475_v33  ;;  %v2477_v43 = vrot.slane %v2475_v33, 4  ;;  %v2485_v47 = vor.u32 %v2484_v63, %v2481_v61  ;;  %v1812_v48 = vpop.f32.mrb[14].mxu0 }
 0x24c   : > { %2852 = vst.msk [vmem:[#allocation2 + $0x10] sm:$0xf] %vm307_vm3, %v2476_v51  ;;  %v7653_v1 = vpack.c.bf16 %v2307_v36, %v2307_v36  ;;  %v2489_v29 = vshrl.u32 %v7652_v37, 16  ;;  %v2492_v0 = vshll.u32 %v7652_v37, 16  ;;  %v2020_v3 = vadd.f32 %v9797_v56, %v1977_v45  ;;  %v1814_v50 = vpop.f32.mrb[15].mxu0  ;;  %v9840_v9 = vld [vmem:[#allocation2 + $0x8] sm:$0xff]  }
 0x24d   : > { %v2486_v4 = vsel %vm9819_vm9, %v2477_v43, %v2485_v47  ;;  %v1978_v13 = vmul.f32 %v9789_v41, %v1812_v48  ;;  %v3047_v63 = vshll.u32 %v9840_v9, 16  ;;  %v2487_v2 = vrot.slane %v2485_v47, 4 }
 0x24e   : > { %2853 = vst.msk [vmem:[#allocation2 + $0x14] sm:$0xf] %vm307_vm3, %v2486_v4  ;;  %v2499_v53 = vshrl.u32 %v7653_v1, 16  ;;  %v2502_v23 = vshll.u32 %v7653_v1, 16  ;;  %v2491_v55 = vrot.slane %v2489_v29, 6  ;;  %v2494_v28 = vrot.slane %v2492_v0, 7 }
 0x24f   : > { %v2056_v33 = vmax.f32 %v2020_v3, 0.0  ;;  %v2021_v61 = vadd.f32 %v9797_v56, %v1978_v13  ;;  %v3049_v59 = vrot.slane %v3047_v63, 1 }
 0x250   : > { %v2501_v36 = vrot.slane %v2499_v53, 6  ;;  %v2504_v37 = vrot.slane %v2502_v23, 7  ;;  %v2495_v45 = vor.u32 %v2494_v28, %v2491_v55 }
 0x251   : > { %v2308_v6 = vmul.f32 %v9710_v10, %v2056_v33  ;;  %v2057_v51 = vmax.f32 %v2021_v61, 0.0  ;;  %v1817_v57 = vpop.f32.mrb[16].mxu0  ;;  %v3050_v4 = vsel %vm3038_vm10, %v3045_v52, %v3049_v59 }
 0x252   : > { %v2505_v43 = vor.u32 %v2504_v37, %v2501_v36  ;;  %v2496_v48 = vsel %vm9819_vm9, %v2487_v2, %v2495_v45  ;;  %v2497_v1 = vrot.slane %v2495_v45, 4  ;;  %v1979_v29 = vmul.f32 %v9789_v41, %v1817_v57  ;;  %v1819_v0 = vpop.f32.mrb[17].mxu0  ;;  %7890 = vmatprep.mubr.msk.bf16.mxu0 %vm755_vm1, %v3050_v4 }
 0x253   : > { %2854 = vst.msk [vmem:[#allocation2 + $0x18] sm:$0xf] %vm307_vm3, %v2496_v48  ;;  %v7654_v3 = vpack.c.bf16 %v2308_v6, %v2308_v6  ;;  %v2309_v47 = vmul.f32 %v9704_v44, %v2057_v51  ;;  %v1820_v50 = vpop.f32.mrb[18].mxu0  ;;  %v3051_v51 = vshrl.u32 %v9840_v9, 16 }
 0x254   : > { %v2506_v10 = vsel %vm9819_vm9, %v2497_v1, %v2505_v43  ;;  %v2022_v13 = vadd.f32 %v9797_v56, %v1979_v29  ;;  %v1980_v53 = vmul.f32 %v9789_v41, %v1820_v50  ;;  %v1822_v23 = vpop.f32.mrb[19].mxu0  ;;  %v2507_v48 = vrot.slane %v2505_v43, 4 }
 0x255   : > { %2855 = vst.msk [vmem:[#allocation2 + $0x1c] sm:$0xf] %vm307_vm3, %v2506_v10  ;;  %v2509_v55 = vshrl.u32 %v7654_v3, 16  ;;  %v2512_v28 = vshll.u32 %v7654_v3, 16  ;;  %v7655_v33 = vpack.c.bf16 %v2309_v47, %v2309_v47  ;;  %v8839_v61 = vld [vmem:[#allocation2 + $0x10] sm:$0xff]  }
 0x256   : > { %v2058_v44 = vmax.f32 %v2022_v13, 0.0  ;;  %v2023_v63 = vadd.f32 %v9797_v56, %v1980_v53  ;;  %v3055_v57 = vshll.u32 %v8839_v61, 16 }
 0x257   : > { %v2511_v52 = vrot.slane %v2509_v55, 6  ;;  %v2514_v2 = vrot.slane %v2512_v28, 7  ;;  %v2519_v36 = vshrl.u32 %v7655_v33, 16  ;;  %v2522_v37 = vshll.u32 %v7655_v33, 16 }
 0x258   : > { %v2310_v45 = vmul.f32 %v9719_v46, %v2058_v44  ;;  %v2059_v6 = vmax.f32 %v2023_v63, 0.0  ;;  %v3057_v13 = vrot.slane %v3055_v57, 1  ;;  %v3053_v55 = vor.u32 %v3051_v51, %v3049_v59 }
 0x259   : > { %v2515_v1 = vor.u32 %v2514_v2, %v2511_v52  ;;  %v2521_v29 = vrot.slane %v2519_v36, 6  ;;  %v2524_v0 = vrot.slane %v2522_v37, 7  ;;  %v1825_v3 = vpop.f32.mrb[20].mxu0 }
 0x25a   : > { %v7656_v47 = vpack.c.bf16 %v2310_v45, %v2310_v45  ;;  %v2311_v50 = vmul.f32 %v9721_v54, %v2059_v6  ;;  %v1981_v4 = vmul.f32 %v9789_v41, %v1825_v3  ;;  %v1827_v10 = vpop.f32.mrb[21].mxu0  ;;  %v3058_v36 = vsel %vm3038_vm10, %v3053_v55, %v3057_v13 }
 0x25b   : > { %v2516_v53 = vsel %vm9819_vm9, %v2507_v48, %v2515_v1  ;;  %v2517_v46 = vrot.slane %v2515_v1, 4  ;;  %v2525_v23 = vor.u32 %v2524_v0, %v2521_v29  ;;  %v1828_v9 = vpop.f32.mrb[22].mxu0  ;;  %7891 = vmatmul.mubr.msk.bf16.vlgmr.msra.gmra.mrb[72].mxu0 %vm755_vm1, %v3058_v36  ;;  %v3059_v48 = vshrl.u32 %v8839_v61, 16 }
 0x25c   : > { %2856 = vst.msk [vmem:[#allocation2 + $0x20] sm:$0xf] %vm307_vm3, %v2516_v53  ;;  %v2529_v43 = vshrl.u32 %v7656_v47, 16  ;;  %v2532_v28 = vshll.u32 %v7656_v47, 16  ;;  %v7657_v33 = vpack.c.bf16 %v2311_v50, %v2311_v50  ;;  %v2024_v44 = vadd.f32 %v9797_v56, %v1981_v4  ;;  %v1830_v63 = vpop.f32.mrb[23].mxu0  ;;  %v9870_v54 = vld [vmem:[#allocation2 + $0x18] sm:$0xff]   ;;  %7927 = vmatpush3.bf16.msra.mxu0 %v9702_v5 }
 0x25d   : > { %v2526_v52 = vsel %vm9819_vm9, %v2517_v46, %v2525_v23  ;;  %v1982_v2 = vmul.f32 %v9789_v41, %v1828_v9  ;;  %v3063_v1 = vshll.u32 %v9870_v54, 16  ;;  %v2527_v29 = vrot.slane %v2525_v23, 4  ;;  %7928 = vmatprep.subr.bf16.mxu0 %v9715_v8 }
 0x25e   : > { %2857 = vst.msk [vmem:[#allocation2 + $0x24] sm:$0xf] %vm307_vm3, %v2526_v52  ;;  %v2531_v59 = vrot.slane %v2529_v43, 6  ;;  %v2534_v37 = vrot.slane %v2532_v28, 7  ;;  %v2539_v45 = vshrl.u32 %v7657_v33, 16  ;;  %v2542_v6 = vshll.u32 %v7657_v33, 16 }
 0x25f   : > { %v2060_v51 = vmax.f32 %v2024_v44, 0.0  ;;  %v2025_v57 = vadd.f32 %v9797_v56, %v1982_v2  ;;  %v3061_v53 = vor.u32 %v3059_v48, %v3057_v13  ;;  %v3065_v46 = vrot.slane %v3063_v1, 1 }
 0x260   : > { %v2535_v0 = vor.u32 %v2534_v37, %v2531_v59  ;;  %v2541_v3 = vrot.slane %v2539_v45, 6  ;;  %v2544_v47 = vrot.slane %v2542_v6, 7  ;;  %7929 = vmatpush3.bf16.msra.mxu0 %v9715_v8 }
 0x261   : > { %v2312_v50 = vmul.f32 %v9730_v12, %v2060_v51  ;;  %v2061_v4 = vmax.f32 %v2025_v57, 0.0  ;;  %v1833_v10 = vpop.f32.mrb[24].mxu0  ;;  %v3066_v12 = vsel %vm3038_vm10, %v3061_v53, %v3065_v46  ;;  %7930 = vmatprep.subr.bf16.mxu0 %v9726_v22 }
 0x262   : > { %v2536_v55 = vsel %vm9819_vm9, %v2527_v29, %v2535_v0  ;;  %v2537_v61 = vrot.slane %v2535_v0, 4  ;;  %v2545_v9 = vor.u32 %v2544_v47, %v2541_v3  ;;  %v1983_v43 = vmul.f32 %v9789_v41, %v1833_v10  ;;  %v1835_v5 = vpop.f32.mrb[25].mxu0  ;;  %7894 = vmatprep.mubr.msk.bf16.mxu0 %vm755_vm1, %v3066_v12 }
 0x263   : > { %2858 = vst.msk [vmem:[#allocation2 + $0x28] sm:$0xf] %vm307_vm3, %v2536_v55  ;;  %v7658_v23 = vpack.c.bf16 %v2312_v50, %v2312_v50  ;;  %v2313_v28 = vmul.f32 %v9737_v62, %v2061_v4  ;;  %v1836_v33 = vpop.f32.mrb[26].mxu0  ;;  %v3067_v29 = vshrl.u32 %v9870_v54, 16 }
 0x264   : > { %v2546_v13 = vsel %vm9819_vm9, %v2537_v61, %v2545_v9  ;;  %v2026_v44 = vadd.f32 %v9797_v56, %v1983_v43  ;;  %v1984_v63 = vmul.f32 %v9789_v41, %v1836_v33  ;;  %v1838_v52 = vpop.f32.mrb[27].mxu0  ;;  %7931 = vmatpush3.bf16.msra.mxu0 %v9726_v22  ;;  %v2547_v3 = vrot.slane %v2545_v9, 4  ;;  %v8855_v9 = vld [vmem:[%s11395_s4 + $0x48] sm:$0xff]  }
 0x265   : > { %2859 = vst.msk [vmem:[#allocation2 + $0x2c] sm:$0xf] %vm307_vm3, %v2546_v13  ;;  %v2549_v62 = vshrl.u32 %v7658_v23, 16  ;;  %v2552_v2 = vshll.u32 %v7658_v23, 16  ;;  %v7659_v36 = vpack.c.bf16 %v2313_v28, %v2313_v28  ;;  %v9897_v59 = vld [vmem:[#allocation2 + $0x20] sm:$0xff]   ;;  %7932 = vmatprep.subr.bf16.mxu0 %v9735_v60  ;;  %v3069_v28 = vor.u32 %v3067_v29, %v3065_v46 }
 0x266   : > { %v2062_v8 = vmax.f32 %v2026_v44, 0.0  ;;  %v2027_v37 = vadd.f32 %v9797_v56, %v1984_v63  ;;  %7942 = vmatprep.mubr.msk.bf16.mxu1 %vm755_vm1, %v9897_v59  ;;  %v3071_v0 = vshll.u32 %v9897_v59, 16 }
 0x267   : > { %v2551_v45 = vrot.slane %v2549_v62, 6  ;;  %v2554_v6 = vrot.slane %v2552_v2, 7  ;;  %v2559_v51 = vshrl.u32 %v7659_v36, 16  ;;  %v2562_v57 = vshll.u32 %v7659_v36, 16 }
 0x268   : > { %v2314_v48 = vmul.f32 %v9741_v14, %v2062_v8  ;;  %v2063_v1 = vmax.f32 %v2027_v37, 0.0  ;;  %v3073_v43 = vrot.slane %v3071_v0, 1  ;;  %7933 = vmatpush3.bf16.msra.mxu0 %v9735_v60  ;;  %v3075_v2 = vshrl.u32 %v9897_v59, 16 }
 0x269   : > { %v2555_v47 = vor.u32 %v2554_v6, %v2551_v45  ;;  %v2561_v50 = vrot.slane %v2559_v51, 6  ;;  %v2564_v4 = vrot.slane %v2562_v57, 7  ;;  %v1841_v10 = vpop.f32.mrb[28].mxu0 }
 0x26a   : > { %v7660_v53 = vpack.c.bf16 %v2314_v48, %v2314_v48  ;;  %v2315_v55 = vmul.f32 %v9743_v15, %v2063_v1  ;;  %v1985_v61 = vmul.f32 %v9789_v41, %v1841_v10  ;;  %v1843_v22 = vpop.f32.mrb[29].mxu0  ;;  %v3074_v62 = vsel %vm3038_vm10, %v3069_v28, %v3073_v43 }
 0x26b   : > { %v2556_v14 = vsel %vm9819_vm9, %v2547_v3, %v2555_v47  ;;  %v2557_v54 = vrot.slane %v2555_v47, 4  ;;  %v2565_v5 = vor.u32 %v2564_v4, %v2561_v50  ;;  %v1844_v23 = vpop.f32.mrb[30].mxu0  ;;  %7895 = vmatmul.mubr.msk.bf16.gmra.mrb[76].mxu0 %vm755_vm1, %v3074_v62  ;;  %v3077_v0 = vor.u32 %v3075_v2, %v3073_v43  ;;  %v8858_v3 = vld [vmem:[%s11395_s4 + $0x50] sm:$0xff]  }
 0x26c   : > { %2860 = vst.msk [vmem:[#allocation2 + $0x30] sm:$0xf] %vm307_vm3, %v2556_v14  ;;  %v2569_v15 = vshrl.u32 %v7660_v53, 16  ;;  %v2572_v33 = vshll.u32 %v7660_v53, 16  ;;  %v7661_v12 = vpack.c.bf16 %v2315_v55, %v2315_v55  ;;  %v2028_v13 = vadd.f32 %v9797_v56, %v1985_v61  ;;  %v1846_v44 = vpop.f32.mrb[31].mxu0  ;;  %v9917_v63 = vld [vmem:[#allocation2 + $0x28] sm:$0xff]  }
 0x26d   : > { %v2566_v52 = vsel %vm9819_vm9, %v2557_v54, %v2565_v5  ;;  %v1986_v46 = vmul.f32 %v9789_v41, %v1844_v23  ;;  %7943 = vmatmul.mubr.msk.bf16.vlgmr.msra.gmra.mrb[0].mxu1 %vm755_vm1, %v9917_v63  ;;  %v2567_v45 = vrot.slane %v2565_v5, 4  ;;  %v3079_v57 = vshll.u32 %v9917_v63, 16 }
 0x26e   : > { %2861 = vst.msk [vmem:[#allocation2 + $0x34] sm:$0xf] %vm307_vm3, %v2566_v52  ;;  %v2571_v60 = vrot.slane %v2569_v15, 6  ;;  %v2574_v36 = vrot.slane %v2572_v33, 7  ;;  %v2579_v8 = vshrl.u32 %v7661_v12, 16  ;;  %v2582_v37 = vshll.u32 %v7661_v12, 16  ;;  %7971 = vmatpush3.bf16.msra.mxu1 %v9784_v39 }
 0x26f   : > { %v2064_v6 = vmax.f32 %v2028_v13, 0.0  ;;  %v2029_v51 = vadd.f32 %v9797_v56, %v1986_v46  ;;  %7972 = vmatprep.subr.bf16.mxu1 %v8855_v9  ;;  %v3081_v10 = vrot.slane %v3079_v57, 1  ;;  %v3701_v53 = vrot.slane %v9917_v63, 1 }
 0x270   : > { %v2575_v48 = vor.u32 %v2574_v36, %v2571_v60  ;;  %v2581_v1 = vrot.slane %v2579_v8, 6  ;;  %v2584_v29 = vrot.slane %v2582_v37, 7  ;;  %v3699_v23 = vrot.slane %v9897_v59, 1 }
 0x271   : > { %v2316_v47 = vmul.f32 %v9745_v7, %v2064_v6  ;;  %v2065_v50 = vmax.f32 %v2029_v51, 0.0  ;;  %v1849_v4 = vpop.f32.mrb[32].mxu0  ;;  %v3082_v7 = vsel %vm3038_vm10, %v3077_v0, %v3081_v10  ;;  %v3083_v13 = vshrl.u32 %v9917_v63, 16 }
 0x272   : > { %v2576_v55 = vsel %vm9819_vm9, %v2567_v45, %v2575_v48  ;;  %v2577_v39 = vrot.slane %v2575_v48, 4  ;;  %v2585_v61 = vor.u32 %v2584_v29, %v2581_v1  ;;  %v1987_v22 = vmul.f32 %v9789_v41, %v1849_v4  ;;  %v1851_v43 = vpop.f32.mrb[33].mxu0  ;;  %7973 = vmatpush3.bf16.msra.mxu1 %v8855_v9  ;;  %7898 = vmatprep.mubr.msk.bf16.mxu0 %vm755_vm1, %v3082_v7  ;;  %v9968_v1 = vld [vmem:[%s11395_s4 + $0x60] sm:$0xff]  }
 0x273   : > { %2862 = vst.msk [vmem:[#allocation2 + $0x38] sm:$0xf] %vm307_vm3, %v2576_v55  ;;  %v7662_v14 = vpack.c.bf16 %v2316_v47, %v2316_v47  ;;  %v2317_v54 = vmul.f32 %v9747_v11, %v2065_v50  ;;  %v1852_v5 = vpop.f32.mrb[34].mxu0  ;;  %7974 = vmatprep.subr.bf16.mxu1 %v8858_v3  ;;  %v8861_v11 = vld [vmem:[%s11395_s4 + $0x58] sm:$0xff]   ;;  %v9958_v62 = vsel %vm590_vm0, %v3699_v23, %v3701_v53 }
 0x274   : > { %v2586_v28 = vsel %vm9819_vm9, %v2577_v39, %v2585_v61  ;;  %v2030_v15 = vadd.f32 %v9797_v56, %v1987_v22  ;;  %v1988_v33 = vmul.f32 %v9789_v41, %v1852_v5  ;;  %v1854_v12 = vpop.f32.mrb[35].mxu0  ;;  %v3085_v60 = vor.u32 %v3083_v13, %v3081_v10 }
 0x275   : > { %2863 = vst.msk [vmem:[#allocation2 + $0x3c] sm:$0xf] %vm307_vm3, %v2586_v28  ;;  %v2589_v9 = vshrl.u32 %v7662_v14, 16  ;;  %v2592_v44 = vshll.u32 %v7662_v14, 16  ;;  %v7663_v52 = vpack.c.bf16 %v2317_v54, %v2317_v54  ;;  %v9953_v46 = vld [vmem:[#allocation2 + $0x30] sm:$0xff]   ;;  %v2587_v6 = vrot.slane %v2585_v61, 4 }
 0x276   : > { %v2066_v2 = vmax.f32 %v2030_v15, 0.0  ;;  %v2031_v63 = vadd.f32 %v9797_v56, %v1988_v33  ;;  %7946 = vmatprep.mubr.msk.bf16.mxu1 %vm755_vm1, %v9953_v46  ;;  %7975 = vmatpush3.bf16.msra.mxu1 %v8858_v3  ;;  %v3087_v48 = vshll.u32 %v9953_v46, 16  ;;  %v3703_v4 = vrot.slane %v9953_v46, 1 }
 0x277   : > { %v2591_v36 = vrot.slane %v2589_v9, 6  ;;  %v2594_v8 = vrot.slane %v2592_v44, 7  ;;  %v2599_v37 = vshrl.u32 %v7663_v52, 16  ;;  %v2602_v45 = vshll.u32 %v7663_v52, 16  ;;  %7976 = vmatprep.subr.bf16.mxu1 %v8861_v11 }
 0x278   : > { %v2318_v51 = vmul.f32 %v9749_v17, %v2066_v2  ;;  %v2067_v57 = vmax.f32 %v2031_v63, 0.0  ;;  %v3089_v39 = vrot.slane %v3087_v48, 1  ;;  %v9978_v54 = vsel %vm590_vm0, %v3701_v53, %v3703_v4 }
 0x279   : > { %v2595_v29 = vor.u32 %v2594_v8, %v2591_v36  ;;  %v2601_v0 = vrot.slane %v2599_v37, 6  ;;  %v2604_v47 = vrot.slane %v2602_v45, 7  ;;  %v1857_v50 = vpop.f32.mrb[36].mxu0 }
 0x27a   : > { %v7664_v10 = vpack.c.bf16 %v2318_v51, %v2318_v51  ;;  %v2319_v3 = vmul.f32 %v9751_v20, %v2067_v57  ;;  %v1989_v17 = vmul.f32 %v9789_v41, %v1857_v50  ;;  %v1859_v55 = vpop.f32.mrb[37].mxu0  ;;  %7977 = vmatpush3.bf16.msra.mxu1 %v8861_v11  ;;  %v3090_v53 = vsel %vm3038_vm10, %v3085_v60, %v3089_v39 }
 0x27b   : > { %v2596_v61 = vsel %vm9819_vm9, %v2587_v6, %v2595_v29  ;;  %v2597_v22 = vrot.slane %v2595_v29, 4  ;;  %v2605_v43 = vor.u32 %v2604_v47, %v2601_v0  ;;  %v1860_v14 = vpop.f32.mrb[38].mxu0  ;;  %8014 = vmatprep.subr.bf16.mxu1 %v9968_v1  ;;  %v3091_v11 = vshrl.u32 %v9953_v46, 16  ;;  %7899 = vmatmul.mubr.msk.bf16.gmra.mrb[80].mxu0 %vm755_vm1, %v3090_v53 }
 0x27c   : > { %2864 = vst.msk [vmem:[#allocation2 + $0x40] sm:$0xf] %vm307_vm3, %v2596_v61  ;;  %v2609_v5 = vshrl.u32 %v7664_v10, 16  ;;  %v2612_v20 = vshll.u32 %v7664_v10, 16  ;;  %v7665_v7 = vpack.c.bf16 %v2319_v3, %v2319_v3  ;;  %v2032_v28 = vadd.f32 %v9797_v56, %v1989_v17  ;;  %v1862_v15 = vpop.f32.mrb[39].mxu0  ;;  %v9982_v33 = vld [vmem:[#allocation2 + $0x38] sm:$0xff]  }
 0x27d   : > { %v2606_v12 = vsel %vm9819_vm9, %v2597_v22, %v2605_v43  ;;  %v1990_v13 = vmul.f32 %v9789_v41, %v1860_v14  ;;  %7947 = vmatmul.mubr.msk.bf16.gmra.mrb[4].mxu1 %vm755_vm1, %v9982_v33  ;;  %v2607_v63 = vrot.slane %v2605_v43, 4  ;;  %v3095_v37 = vshll.u32 %v9982_v33, 16 }
 0x27e   : > { %2865 = vst.msk [vmem:[#allocation2 + $0x44] sm:$0xf] %vm307_vm3, %v2606_v12  ;;  %v2611_v9 = vrot.slane %v2609_v5, 6  ;;  %v2614_v44 = vrot.slane %v2612_v20, 7  ;;  %v2619_v52 = vshrl.u32 %v7665_v7, 16  ;;  %v2622_v2 = vshll.u32 %v7665_v7, 16 }
 0x27f   : > { %v2068_v36 = vmax.f32 %v2032_v28, 0.0  ;;  %v2033_v8 = vadd.f32 %v9797_v56, %v1990_v13  ;;  %v3093_v51 = vor.u32 %v3091_v11, %v3089_v39  ;;  %v3097_v0 = vrot.slane %v3095_v37, 1 }
 0x280   : > { %v2615_v60 = vor.u32 %v2614_v44, %v2611_v9  ;;  %v2621_v45 = vrot.slane %v2619_v52, 6  ;;  %v2624_v6 = vrot.slane %v2622_v2, 7  ;;  %v3705_v47 = vrot.slane %v9982_v33, 1 }
 0x281   : > { %v2320_v57 = vmul.f32 %v9753_v16, %v2068_v36  ;;  %v2069_v48 = vmax.f32 %v2033_v8, 0.0  ;;  %v1865_v29 = vpop.f32.mrb[40].mxu0  ;;  %v3098_v16 = vsel %vm3038_vm10, %v3093_v51, %v3097_v0  ;;  %v3099_v7 = vshrl.u32 %v9982_v33, 16 }
 0x282   : > { %v2616_v50 = vsel %vm9819_vm9, %v2607_v63, %v2615_v60  ;;  %v2617_v10 = vrot.slane %v2615_v60, 4  ;;  %v2625_v3 = vor.u32 %v2624_v6, %v2621_v45  ;;  %v1991_v17 = vmul.f32 %v9789_v41, %v1865_v29  ;;  %v1867_v55 = vpop.f32.mrb[41].mxu0  ;;  %7902 = vmatprep.mubr.msk.bf16.mxu0 %vm755_vm1, %v3098_v16 }
 0x283   : > { %2866 = vst.msk [vmem:[#allocation2 + $0x48] sm:$0xf] %vm307_vm3, %v2616_v50  ;;  %v7666_v61 = vpack.c.bf16 %v2320_v57, %v2320_v57  ;;  %v2321_v39 = vmul.f32 %v9755_v18, %v2069_v48  ;;  %v1868_v22 = vpop.f32.mrb[42].mxu0  ;;  %v10016_v13 = vsel %vm590_vm0, %v3703_v4, %v3705_v47  ;;  %v3101_v9 = vor.u32 %v3099_v7, %v3097_v0 }
 0x284   : > { %v2626_v43 = vsel %vm9819_vm9, %v2617_v10, %v2625_v3  ;;  %v2034_v14 = vadd.f32 %v9797_v56, %v1991_v17  ;;  %v1992_v5 = vmul.f32 %v9789_v41, %v1868_v22  ;;  %v1870_v20 = vpop.f32.mrb[43].mxu0  ;;  %v2627_v63 = vrot.slane %v2625_v3, 4 }
 0x285   : > { %2867 = vst.msk [vmem:[#allocation2 + $0x4c] sm:$0xf] %vm307_vm3, %v2626_v43  ;;  %v2629_v28 = vshrl.u32 %v7666_v61, 16  ;;  %v2632_v15 = vshll.u32 %v7666_v61, 16  ;;  %v7667_v18 = vpack.c.bf16 %v2321_v39, %v2321_v39  ;;  %v10011_v12 = vld [vmem:[#allocation2 + $0x40] sm:$0xff]  }
 0x286   : > { %v2070_v53 = vmax.f32 %v2034_v14, 0.0  ;;  %v2035_v11 = vadd.f32 %v9797_v56, %v1992_v5  ;;  %7950 = vmatprep.mubr.msk.bf16.mxu1 %vm755_vm1, %v10011_v12  ;;  %v3103_v46 = vshll.u32 %v10011_v12, 16  ;;  %v3707_v6 = vrot.slane %v10011_v12, 1 }
 0x287   : > { %v2631_v44 = vrot.slane %v2629_v28, 6  ;;  %v2634_v52 = vrot.slane %v2632_v15, 7  ;;  %v2639_v2 = vshrl.u32 %v7667_v18, 16  ;;  %v2642_v33 = vshll.u32 %v7667_v18, 16 }
 0x288   : > { %v2322_v36 = vmul.f32 %v9757_v25, %v2070_v53  ;;  %v2071_v8 = vmax.f32 %v2035_v11, 0.0  ;;  %v3105_v0 = vrot.slane %v3103_v46, 1  ;;  %v10031_v17 = vsel %vm590_vm0, %v3705_v47, %v3707_v6 }
 0x289   : > { %v2635_v37 = vor.u32 %v2634_v52, %v2631_v44  ;;  %v2641_v4 = vrot.slane %v2639_v2, 6  ;;  %v2644_v60 = vrot.slane %v2642_v33, 7  ;;  %v1873_v45 = vpop.f32.mrb[44].mxu0  ;;  %v3107_v47 = vshrl.u32 %v10011_v12, 16 }
 0x28a   : > { %v7668_v51 = vpack.c.bf16 %v2322_v36, %v2322_v36  ;;  %v2323_v57 = vmul.f32 %v9759_v27, %v2071_v8  ;;  %v1993_v48 = vmul.f32 %v9789_v41, %v1873_v45  ;;  %v1875_v29 = vpop.f32.mrb[45].mxu0  ;;  %v3106_v5 = vsel %vm3038_vm10, %v3101_v9, %v3105_v0 }
 0x28b   : > { %v2636_v50 = vsel %vm9819_vm9, %v2627_v63, %v2635_v37  ;;  %v2637_v25 = vrot.slane %v2635_v37, 4  ;;  %v2645_v10 = vor.u32 %v2644_v60, %v2641_v4  ;;  %v1876_v3 = vpop.f32.mrb[46].mxu0  ;;  %7903 = vmatmul.mubr.msk.bf16.gmra.mrb[84].mxu0 %vm755_vm1, %v3106_v5  ;;  %v3109_v33 = vor.u32 %v3107_v47, %v3105_v0 }
 0x28c   : > { %2868 = vst.msk [vmem:[#allocation2 + $0x50] sm:$0xf] %vm307_vm3, %v2636_v50  ;;  %v2649_v55 = vshrl.u32 %v7668_v51, 16  ;;  %v2652_v61 = vshll.u32 %v7668_v51, 16  ;;  %v7669_v27 = vpack.c.bf16 %v2323_v57, %v2323_v57  ;;  %v2036_v39 = vadd.f32 %v9797_v56, %v1993_v48  ;;  %v1878_v22 = vpop.f32.mrb[47].mxu0  ;;  %v10035_v16 = vld [vmem:[#allocation2 + $0x48] sm:$0xff]  }
 0x28d   : > { %v2646_v43 = vsel %vm9819_vm9, %v2637_v25, %v2645_v10  ;;  %v1994_v14 = vmul.f32 %v9789_v41, %v1876_v3  ;;  %7951 = vmatmul.mubr.msk.bf16.gmra.mrb[8].mxu1 %vm755_vm1, %v10035_v16  ;;  %v2647_v18 = vrot.slane %v2645_v10, 4  ;;  %v3111_v44 = vshll.u32 %v10035_v16, 16  ;;  %v10062_v10 = vld [vmem:[%s11393_s2] ss:$0 sm:$0xff] }
 0x28e   : > { %2869 = vst.msk [vmem:[#allocation2 + $0x54] sm:$0xf] %vm307_vm3, %v2646_v43  ;;  %v2651_v20 = vrot.slane %v2649_v55, 6  ;;  %v2654_v7 = vrot.slane %v2652_v61, 7  ;;  %v2659_v28 = vshrl.u32 %v7669_v27, 16  ;;  %v2662_v15 = vshll.u32 %v7669_v27, 16 }
 0x28f   : > { %v2072_v53 = vmax.f32 %v2036_v39, 0.0  ;;  %v2037_v11 = vadd.f32 %v9797_v56, %v1994_v14  ;;  %v3113_v46 = vrot.slane %v3111_v44, 1  ;;  %v3709_v37 = vrot.slane %v10035_v16, 1  ;;  %v10078_v43 = vld [vmem:[%s11394_s3] ss:$0 sm:$0xff] }
 0x290   : > { %v2655_v9 = vor.u32 %v2654_v7, %v2651_v20  ;;  %v2661_v52 = vrot.slane %v2659_v28, 6  ;;  %v2664_v2 = vrot.slane %v2662_v15, 7 }
 0x291   : > { %v2324_v63 = vmul.f32 %v9761_v24, %v2072_v53  ;;  %v2073_v36 = vmax.f32 %v2037_v11, 0.0  ;;  %v1881_v8 = vpop.f32.mrb[48].mxu0  ;;  %v3114_v24 = vsel %vm3038_vm10, %v3109_v33, %v3113_v46 }
 0x292   : > { %v2656_v4 = vsel %vm9819_vm9, %v2647_v18, %v2655_v9  ;;  %v2657_v60 = vrot.slane %v2655_v9, 4  ;;  %v2665_v45 = vor.u32 %v2664_v2, %v2661_v52  ;;  %v1995_v51 = vmul.f32 %v9789_v41, %v1881_v8  ;;  %v1883_v57 = vpop.f32.mrb[49].mxu0  ;;  %7906 = vmatprep.mubr.msk.bf16.mxu0 %vm755_vm1, %v3114_v24 }
 0x293   : > { %2870 = vst.msk [vmem:[#allocation2 + $0x58] sm:$0xf] %vm307_vm3, %v2656_v4  ;;  %v7670_v48 = vpack.c.bf16 %v2324_v63, %v2324_v63  ;;  %v2325_v29 = vmul.f32 %v9763_v26, %v2073_v36  ;;  %v1884_v0 = vpop.f32.mrb[50].mxu0  ;;  %v3115_v26 = vshrl.u32 %v10035_v16, 16 }
 0x294   : > { %v2666_v50 = vsel %vm9819_vm9, %v2657_v60, %v2665_v45  ;;  %v2038_v25 = vadd.f32 %v9797_v56, %v1995_v51  ;;  %v1996_v41 = vmul.f32 %v10062_v10, %v1884_v0  ;;  %v1886_v3 = vpop.f32.mrb[51].mxu0  ;;  %v10073_v56 = vsel %vm590_vm0, %v3707_v6, %v3709_v37 }
 0x295   : > { %2871 = vst.msk [vmem:[#allocation2 + $0x5c] sm:$0xf] %vm307_vm3, %v2666_v50  ;;  %v2669_v55 = vshrl.u32 %v7670_v48, 16  ;;  %v2672_v61 = vshll.u32 %v7670_v48, 16  ;;  %v7671_v27 = vpack.c.bf16 %v2325_v29, %v2325_v29  ;;  %v10068_v39 = vld [vmem:[#allocation2 + $0x50] sm:$0xff]   ;;  %v3117_v14 = vor.u32 %v3115_v26, %v3113_v46 }
 0x296   : > { %v2074_v22 = vmax.f32 %v2038_v25, 0.0  ;;  %v2039_v16 = vadd.f32 %v10078_v43, %v1996_v41  ;;  %7954 = vmatprep.mubr.msk.bf16.mxu1 %vm755_vm1, %v10068_v39  ;;  %v2667_v12 = vrot.slane %v2665_v45, 4  ;;  %v3119_v15 = vshll.u32 %v10068_v39, 16 }
 0x297   : > { %v2671_v5 = vrot.slane %v2669_v55, 6  ;;  %v2674_v47 = vrot.slane %v2672_v61, 7  ;;  %v2679_v20 = vshrl.u32 %v7671_v27, 16  ;;  %v2682_v7 = vshll.u32 %v7671_v27, 16 }
 0x298   : > { %v2326_v6 = vmul.f32 %v9765_v30, %v2074_v22  ;;  %v2075_v28 = vmax.f32 %v2039_v16, 0.0  ;;  %v3711_v9 = vrot.slane %v10068_v39, 1  ;;  %v3121_v36 = vrot.slane %v3119_v15, 1 }
 0x299   : > { %v2675_v18 = vor.u32 %v2674_v47, %v2671_v5  ;;  %v2681_v53 = vrot.slane %v2679_v20, 6  ;;  %v2684_v11 = vrot.slane %v2682_v7, 7  ;;  %v1889_v44 = vpop.f32.mrb[52].mxu0 }
 0x29a   : > { %v7672_v52 = vpack.c.bf16 %v2326_v6, %v2326_v6  ;;  %v2327_v2 = vmul.f32 %v9767_v31, %v2075_v28  ;;  %v1997_v33 = vmul.f32 %v10062_v10, %v1889_v44  ;;  %v1891_v63 = vpop.f32.mrb[53].mxu0  ;;  %v10093_v60 = vsel %vm590_vm0, %v3709_v37, %v3711_v9 }
 0x29b   : > { %v2676_v8 = vsel %vm9819_vm9, %v2667_v12, %v2675_v18  ;;  %v2677_v30 = vrot.slane %v2675_v18, 4  ;;  %v2685_v46 = vor.u32 %v2684_v11, %v2681_v53  ;;  %v1892_v4 = vpop.f32.mrb[54].mxu0  ;;  %v3122_v50 = vsel %vm3038_vm10, %v3117_v14, %v3121_v36 }
 0x29c   : > { %2872 = vst.msk [vmem:[#allocation2 + $0x60] sm:$0xf] %vm307_vm3, %v2676_v8  ;;  %v2689_v45 = vshrl.u32 %v7672_v52, 16  ;;  %v2692_v51 = vshll.u32 %v7672_v52, 16  ;;  %v7673_v31 = vpack.c.bf16 %v2327_v2, %v2327_v2  ;;  %v2040_v57 = vadd.f32 %v10078_v43, %v1997_v33  ;;  %v1894_v48 = vpop.f32.mrb[55].mxu0  ;;  %v10097_v29 = vld [vmem:[#allocation2 + $0x58] sm:$0xff]   ;;  %7907 = vmatmul.mubr.msk.bf16.gmra.mrb[88].mxu0 %vm755_vm1, %v3122_v50 }
 0x29d   : > { %v2686_v0 = vsel %vm9819_vm9, %v2677_v30, %v2685_v46  ;;  %v1998_v24 = vmul.f32 %v10062_v10, %v1892_v4  ;;  %v3123_v37 = vshrl.u32 %v10068_v39, 16  ;;  %7955 = vmatmul.mubr.msk.bf16.gmra.mrb[12].mxu1 %vm755_vm1, %v10097_v29  ;;  %v2687_v55 = vrot.slane %v2685_v46, 4 }
 0x29e   : > { %2873 = vst.msk [vmem:[#allocation2 + $0x64] sm:$0xf] %vm307_vm3, %v2686_v0  ;;  %v2691_v25 = vrot.slane %v2689_v45, 6  ;;  %v2694_v41 = vrot.slane %v2692_v51, 7  ;;  %v2699_v3 = vshrl.u32 %v7673_v31, 16  ;;  %v2702_v26 = vshll.u32 %v7673_v31, 16 }
 0x29f   : > { %v2076_v61 = vmax.f32 %v2040_v57, 0.0  ;;  %v2041_v27 = vadd.f32 %v10078_v43, %v1998_v24  ;;  %v3127_v22 = vshll.u32 %v10097_v29, 16  ;;  %v3125_v47 = vor.u32 %v3123_v37, %v3121_v36 }
 0x2a0   : > { %v2695_v16 = vor.u32 %v2694_v41, %v2691_v25  ;;  %v2701_v14 = vrot.slane %v2699_v3, 6  ;;  %v2704_v5 = vrot.slane %v2702_v26, 7  ;;  %v3713_v28 = vrot.slane %v10097_v29, 1 }
 0x2a1   : > { %v2328_v20 = vmul.f32 %v9769_v32, %v2076_v61  ;;  %v2077_v7 = vmax.f32 %v2041_v27, 0.0  ;;  %v1897_v12 = vpop.f32.mrb[56].mxu0  ;;  %v3129_v6 = vrot.slane %v3127_v22, 1  ;;  %v3131_v46 = vshrl.u32 %v10097_v29, 16 }
 0x2a2   : > { %v2696_v15 = vsel %vm9819_vm9, %v2687_v55, %v2695_v16  ;;  %v2697_v18 = vrot.slane %v2695_v16, 4  ;;  %v2705_v53 = vor.u32 %v2704_v5, %v2701_v14  ;;  %v1999_v11 = vmul.f32 %v10062_v10, %v1897_v12  ;;  %v1899_v44 = vpop.f32.mrb[57].mxu0 }
 0x2a3   : > { %2874 = vst.msk [vmem:[#allocation2 + $0x68] sm:$0xf] %vm307_vm3, %v2696_v15  ;;  %v7674_v52 = vpack.c.bf16 %v2328_v20, %v2328_v20  ;;  %v2329_v2 = vmul.f32 %v9771_v34, %v2077_v7  ;;  %v1900_v33 = vpop.f32.mrb[58].mxu0  ;;  %v3130_v32 = vsel %vm3038_vm10, %v3125_v47, %v3129_v6  ;;  %v10130_v31 = vsel %vm590_vm0, %v3711_v9, %v3713_v28 }
 0x2a4   : > { %v2706_v63 = vsel %vm9819_vm9, %v2697_v18, %v2705_v53  ;;  %v2042_v36 = vadd.f32 %v10078_v43, %v1999_v11  ;;  %v2000_v8 = vmul.f32 %v10062_v10, %v1900_v33  ;;  %v1902_v30 = vpop.f32.mrb[59].mxu0  ;;  %7910 = vmatprep.mubr.msk.bf16.mxu0 %vm755_vm1, %v3130_v32  ;;  %v3133_v0 = vor.u32 %v3131_v46, %v3129_v6 }
 0x2a5   : > { %2875 = vst.msk [vmem:[#allocation2 + $0x6c] sm:$0xf] %vm307_vm3, %v2706_v63  ;;  %v2709_v4 = vshrl.u32 %v7674_v52, 16  ;;  %v2712_v45 = vshll.u32 %v7674_v52, 16  ;;  %v7675_v34 = vpack.c.bf16 %v2329_v2, %v2329_v2  ;;  %v10125_v51 = vld [vmem:[#allocation2 + $0x60] sm:$0xff]   ;;  %v2707_v25 = vrot.slane %v2705_v53, 4 }
 0x2a6   : > { %v2078_v57 = vmax.f32 %v2042_v36, 0.0  ;;  %v2043_v48 = vadd.f32 %v10078_v43, %v2000_v8  ;;  %7958 = vmatprep.mubr.msk.bf16.mxu1 %vm755_vm1, %v10125_v51  ;;  %v3135_v39 = vshll.u32 %v10125_v51, 16  ;;  %v3715_v27 = vrot.slane %v10125_v51, 1 }
 0x2a7   : > { %v2711_v24 = vrot.slane %v2709_v4, 6  ;;  %v2714_v50 = vrot.slane %v2712_v45, 7  ;;  %v2719_v37 = vshrl.u32 %v7675_v34, 16  ;;  %v2722_v29 = vshll.u32 %v7675_v34, 16 }
 0x2a8   : > { %v2330_v41 = vmul.f32 %v9773_v35, %v2078_v57  ;;  %v2079_v3 = vmax.f32 %v2043_v48, 0.0  ;;  %v3137_v47 = vrot.slane %v3135_v39, 1  ;;  %v10145_v6 = vsel %vm590_vm0, %v3713_v28, %v3715_v27 }
 0x2a9   : > { %v2715_v26 = vor.u32 %v2714_v50, %v2711_v24  ;;  %v2721_v9 = vrot.slane %v2719_v37, 6  ;;  %v2724_v55 = vrot.slane %v2722_v29, 7  ;;  %v1905_v61 = vpop.f32.mrb[60].mxu0  ;;  %v3139_v28 = vshrl.u32 %v10125_v51, 16 }
 0x2aa   : > { %v7676_v22 = vpack.c.bf16 %v2330_v41, %v2330_v41  ;;  %v2331_v16 = vmul.f32 %v9775_v38, %v2079_v3  ;;  %v2001_v14 = vmul.f32 %v10062_v10, %v1905_v61  ;;  %v1907_v5 = vpop.f32.mrb[61].mxu0  ;;  %v3138_v33 = vsel %vm3038_vm10, %v3133_v0, %v3137_v47 }
 0x2ab   : > { %v2716_v20 = vsel %vm9819_vm9, %v2707_v25, %v2715_v26  ;;  %v2717_v35 = vrot.slane %v2715_v26, 4  ;;  %v2725_v7 = vor.u32 %v2724_v55, %v2721_v9  ;;  %v1908_v12 = vpop.f32.mrb[62].mxu0  ;;  %7911 = vmatmul.mubr.msk.bf16.gmra.mrb[92].mxu0 %vm755_vm1, %v3138_v33  ;;  %v3141_v0 = vor.u32 %v3139_v28, %v3137_v47 }
 0x2ac   : > { %2876 = vst.msk [vmem:[#allocation2 + $0x70] sm:$0xf] %vm307_vm3, %v2716_v20  ;;  %v2729_v15 = vshrl.u32 %v7676_v22, 16  ;;  %v2732_v18 = vshll.u32 %v7676_v22, 16  ;;  %v7677_v38 = vpack.c.bf16 %v2331_v16, %v2331_v16  ;;  %v2044_v53 = vadd.f32 %v10078_v43, %v2001_v14  ;;  %v1910_v11 = vpop.f32.mrb[63].mxu0  ;;  %v10149_v44 = vld [vmem:[#allocation2 + $0x68] sm:$0xff]  }
 0x2ad   : > { %v2726_v52 = vsel %vm9819_vm9, %v2717_v35, %v2725_v7  ;;  %v2002_v2 = vmul.f32 %v10062_v10, %v1908_v12  ;;  %7959 = vmatmul.mubr.msk.bf16.gmra.mrb[16].mxu1 %vm755_vm1, %v10149_v44  ;;  %v2727_v30 = vrot.slane %v2725_v7, 4  ;;  %v3143_v45 = vshll.u32 %v10149_v44, 16  ;;  %v10311_v59 = vld [vmem:[#allocation2 + $0x68] sm:$0xff]  }
 0x2ae   : > { %2877 = vst.msk [vmem:[#allocation2 + $0x74] sm:$0xf] %vm307_vm3, %v2726_v52  ;;  %v2731_v32 = vrot.slane %v2729_v15, 6  ;;  %v2734_v63 = vrot.slane %v2732_v18, 7  ;;  %v2739_v36 = vshrl.u32 %v7677_v38, 16  ;;  %v2742_v8 = vshll.u32 %v7677_v38, 16 }
 0x2af   : > { %v2080_v46 = vmax.f32 %v2044_v53, 0.0  ;;  %v2045_v4 = vadd.f32 %v10078_v43, %v2002_v2  ;;  %v3145_v29 = vrot.slane %v3143_v45, 1  ;;  %v3717_v25 = vrot.slane %v10149_v44, 1 }
 0x2b0   : > { %v2735_v34 = vor.u32 %v2734_v63, %v2731_v32  ;;  %v2741_v57 = vrot.slane %v2739_v36, 6  ;;  %v2744_v48 = vrot.slane %v2742_v8, 7  ;;  %v3147_v20 = vshrl.u32 %v10149_v44, 16 }
 0x2b1   : > { %v2332_v24 = vmul.f32 %v9777_v40, %v2080_v46  ;;  %v2081_v50 = vmax.f32 %v2045_v4, 0.0  ;;  %v1913_v37 = vpop.f32.mrb[64].mxu0  ;;  %v3146_v40 = vsel %vm3038_vm10, %v3141_v0, %v3145_v29  ;;  %v10182_v15 = vsel %vm590_vm0, %v3715_v27, %v3717_v25 }
 0x2b2   : > { %v2736_v41 = vsel %vm9819_vm9, %v2727_v30, %v2735_v34  ;;  %v2737_v3 = vrot.slane %v2735_v34, 4  ;;  %v2745_v39 = vor.u32 %v2744_v48, %v2741_v57  ;;  %v2003_v26 = vmul.f32 %v10062_v10, %v1913_v37  ;;  %v1915_v9 = vpop.f32.mrb[65].mxu0  ;;  %7914 = vmatprep.mubr.msk.bf16.mxu0 %vm755_vm1, %v3146_v40 }
 0x2b3   : > { %2878 = vst.msk [vmem:[#allocation2 + $0x78] sm:$0xf] %vm307_vm3, %v2736_v41  ;;  %v7678_v55 = vpack.c.bf16 %v2332_v24, %v2332_v24  ;;  %v2333_v61 = vmul.f32 %v9779_v42, %v2081_v50  ;;  %v1916_v22 = vpop.f32.mrb[66].mxu0  ;;  %v3149_v53 = vor.u32 %v3147_v20, %v3145_v29  ;;  %v3679_v20 = vld [vmem:[#allocation2] sm:$0xe] }
 0x2b4   : > { %v2746_v16 = vsel %vm9819_vm9, %v2737_v3, %v2745_v39  ;;  %v2046_v14 = vadd.f32 %v10078_v43, %v2003_v26  ;;  %v2004_v5 = vmul.f32 %v10062_v10, %v1916_v22  ;;  %v1918_v47 = vpop.f32.mrb[67].mxu0  ;;  %v2747_v33 = vrot.slane %v2745_v39, 4 }
 0x2b5   : > { %2879 = vst.msk [vmem:[#allocation2 + $0x7c] sm:$0xf] %vm307_vm3, %v2746_v16  ;;  %v2749_v35 = vshrl.u32 %v7678_v55, 16  ;;  %v2752_v7 = vshll.u32 %v7678_v55, 16  ;;  %v7679_v42 = vpack.c.bf16 %v2333_v61, %v2333_v61  ;;  %v10177_v12 = vld [vmem:[#allocation2 + $0x70] sm:$0xff]  }
 0x2b6   : > { %v2082_v18 = vmax.f32 %v2046_v14, 0.0  ;;  %v2047_v38 = vadd.f32 %v10078_v43, %v2004_v5  ;;  %7962 = vmatprep.mubr.msk.bf16.mxu1 %vm755_vm1, %v10177_v12  ;;  %v3151_v51 = vshll.u32 %v10177_v12, 16  ;;  %v3719_v30 = vrot.slane %v10177_v12, 1 }
 0x2b7   : > { %v2751_v11 = vrot.slane %v2749_v35, 6  ;;  %v2754_v52 = vrot.slane %v2752_v7, 7  ;;  %v2759_v2 = vshrl.u32 %v7679_v42, 16  ;;  %v2762_v44 = vshll.u32 %v7679_v42, 16  ;;  %v2295_v35 = vpop.permute.xlu0 %2294 }
 0x2b8   : > { %v2334_v28 = vmul.f32 %v9791_v49, %v2082_v18  ;;  %v2083_v32 = vmax.f32 %v2047_v38, 0.0  ;;  %v3153_v57 = vrot.slane %v3151_v51, 1  ;;  %v10195_v50 = vsel %vm590_vm0, %v3717_v25, %v3719_v30 }
 0x2b9   : > { %v2755_v63 = vor.u32 %v2754_v52, %v2751_v11  ;;  %v2761_v27 = vrot.slane %v2759_v2, 6  ;;  %v2764_v36 = vrot.slane %v2762_v44, 7  ;;  %v1921_v8 = vpop.f32.mrb[68].mxu0  ;;  %v3155_v25 = vshrl.u32 %v10177_v12, 16  ;;  %v2300_v2 = vpop.permute.xlu1 %2299 }
 0x2ba   : > { %v7680_v46 = vpack.c.bf16 %v2334_v28, %v2334_v28  ;;  %v2335_v4 = vmul.f32 %v9799_v58, %v2083_v32  ;;  %v2005_v45 = vmul.f32 %v10062_v10, %v1921_v8  ;;  %v1923_v34 = vpop.f32.mrb[69].mxu0  ;;  %v3154_v55 = vsel %vm3038_vm10, %v3149_v53, %v3153_v57 }
 0x2bb   : > { %v2756_v48 = vsel %vm9819_vm9, %v2747_v33, %v2755_v63  ;;  %v2757_v49 = vrot.slane %v2755_v63, 4  ;;  %v2765_v0 = vor.u32 %v2764_v36, %v2761_v27  ;;  %v1924_v24 = vpop.f32.mrb[70].mxu0  ;;  %7915 = vmatmul.mubr.msk.bf16.gmra.mrb[96].mxu0 %vm755_vm1, %v3154_v55  ;;  %v3157_v18 = vor.u32 %v3155_v25, %v3153_v57  ;;  %v10231_v25 = vld [vmem:[#allocation2 + $0x8] sm:$0xff]  }
 0x2bc   : > { %2880 = vst.msk [vmem:[#allocation2 + $0x80] sm:$0xf] %vm307_vm3, %v2756_v48  ;;  %v2769_v37 = vshrl.u32 %v7680_v46, 16  ;;  %v2772_v29 = vshll.u32 %v7680_v46, 16  ;;  %v7681_v41 = vpack.c.bf16 %v2335_v4, %v2335_v4  ;;  %v2048_v58 = vadd.f32 %v10078_v43, %v2005_v45  ;;  %v1926_v3 = vpop.f32.mrb[71].mxu0  ;;  %v10199_v39 = vld [vmem:[#allocation2 + $0x78] sm:$0xff]  }
 0x2bd   : > { %v2766_v26 = vsel %vm9819_vm9, %v2757_v49, %v2765_v0  ;;  %v2006_v9 = vmul.f32 %v10062_v10, %v1924_v24  ;;  %7963 = vmatmul.mubr.msk.bf16.gmra.mrb[20].mxu1 %vm755_vm1, %v10199_v39  ;;  %v2767_v14 = vrot.slane %v2765_v0, 4  ;;  %v3159_v10 = vshll.u32 %v10199_v39, 16 }
 0x2be   : > { %2881 = vst.msk [vmem:[#allocation2 + $0x84] sm:$0xf] %vm307_vm3, %v2766_v26  ;;  %v2771_v61 = vrot.slane %v2769_v37, 6  ;;  %v2774_v22 = vrot.slane %v2772_v29, 7  ;;  %v2779_v40 = vshrl.u32 %v7681_v41, 16  ;;  %v2782_v16 = vshll.u32 %v7681_v41, 16 }
 0x2bf   : > { %v2084_v5 = vmax.f32 %v2048_v58, 0.0  ;;  %v2049_v47 = vadd.f32 %v10078_v43, %v2006_v9  ;;  %v3161_v11 = vrot.slane %v3159_v10, 1  ;;  %v3721_v52 = vrot.slane %v10199_v39, 1  ;;  %v8933_v43 = vld [vmem:[#allocation2 + $0x4] sm:$0xf] }
 0x2c0   : > { %v2775_v7 = vor.u32 %v2774_v22, %v2771_v61  ;;  %v2781_v42 = vrot.slane %v2779_v40, 6  ;;  %v2784_v12 = vrot.slane %v2782_v16, 7  ;;  %v7399_v32 = vcombine.low %v3679_v20, %v8933_v43 }
 0x2c1   : > { %v2336_v38 = vmul.f32 %v2295_v35, %v2084_v5  ;;  %v2085_v53 = vmax.f32 %v2049_v47, 0.0  ;;  %v3162_v27 = vsel %vm3038_vm10, %v3157_v18, %v3161_v11  ;;  %v10221_v8 = vsel %vm590_vm0, %v3719_v30, %v3721_v52 }
 0x2c2   : > { %v2776_v44 = vsel %vm9819_vm9, %v2767_v14, %v2775_v7  ;;  %v2777_v33 = vrot.slane %v2775_v7, 4  ;;  %v2785_v28 = vor.u32 %v2784_v12, %v2781_v42  ;;  %7918 = vmatprep.mubr.msk.bf16.mxu0 %vm755_vm1, %v3162_v27  ;;  %v3692_v57 = vrot.slane %v7399_v32, 1  ;;  %v2888_v14 = vld [vmem:[#allocation2 + $0x98] sm:$0x3] }
 0x2c3   : > { %2882 = vst.msk [vmem:[#allocation2 + $0x88] sm:$0xf] %vm307_vm3, %v2776_v44  ;;  %v7682_v51 = vpack.c.bf16 %v2336_v38, %v2336_v38  ;;  %v2337_v63 = vmul.f32 %v2300_v2, %v2085_v53  ;;  %v3163_v37 = vshrl.u32 %v10199_v39, 16  ;;  %v3693_v61 = vrot.slane %v10231_v25, 1  ;;  %v10257_v38 = vld [vmem:[#allocation2 + $0x10] sm:$0xff]  }
 0x2c4   : > { %v2786_v36 = vsel %vm9819_vm9, %v2777_v33, %v2785_v28  ;;  %v2787_v41 = vrot.slane %v2785_v28, 4  ;;  %v3695_v53 = vrot.slane %v10257_v38, 1  ;;  %v8865_v33 = vld [vmem:[%s11395_s4 + $0x68] sm:$0xff]  }
 0x2c5   : > { %2883 = vst.msk [vmem:[#allocation2 + $0x8c] sm:$0xf] %vm307_vm3, %v2786_v36  ;;  %v2789_v46 = vshrl.u32 %v7682_v51, 16  ;;  %v2792_v4 = vshll.u32 %v7682_v51, 16  ;;  %v7683_v45 = vpack.c.bf16 %v2337_v63, %v2337_v63  ;;  %v10224_v34 = vld [vmem:[#allocation2 + $0x80] sm:$0xff]   ;;  %v3165_v9 = vor.u32 %v3163_v37, %v3161_v11  ;;  %v10277_v36 = vld [vmem:[#allocation2 + $0x38] sm:$0xff]  }
 0x2c6   : > { %7966 = vmatprep.mubr.msk.bf16.mxu1 %vm755_vm1, %v10224_v34  ;;  %v3167_v30 = vshll.u32 %v10224_v34, 16  ;;  %v11401_v29 = vrot.slane %v10224_v34, 1  ;;  %v3694_v35 = vsel %vm590_vm0, %v3692_v57, %v3693_v61  ;;  %v3171_v7 = vshrl.u32 %v10224_v34, 16  ;;  %v10286_v57 = vld [vmem:[#allocation2 + $0x48] sm:$0xff]  }
 0x2c7   : > { %v2791_v48 = vrot.slane %v2789_v46, 6  ;;  %v2794_v49 = vrot.slane %v2792_v4, 7  ;;  %v2799_v0 = vshrl.u32 %v7683_v45, 16  ;;  %v2802_v24 = vshll.u32 %v7683_v45, 16  ;;  %v8866_v46 = vld [vmem:[%s11395_s4 + $0x70] sm:$0xff]   ;;  %v10282_v4 = vld [vmem:[#allocation2 + $0x40] sm:$0xff]  }
 0x2c8   : > { %v3169_v55 = vrot.slane %v3167_v30, 1  ;;  %v10237_v22 = vsel %vm590_vm0, %v3721_v52, %v11401_v29  ;;  %v10261_v52 = vld [vmem:[#allocation2 + $0x18] sm:$0xff]   ;;  %v3696_v28 = vsel %vm590_vm0, %v3693_v61, %v3695_v53 }
 0x2c9   : > { %v2795_v58 = vor.u32 %v2794_v49, %v2791_v48  ;;  %v2801_v3 = vrot.slane %v2799_v0, 6  ;;  %v2804_v26 = vrot.slane %v2802_v24, 7  ;;  %v3697_v2 = vrot.slane %v10261_v52, 1  ;;  %v8867_v0 = vld [vmem:[%s11395_s4 + $0x78] sm:$0xff]  }
 0x2ca   : > { %v3170_v5 = vsel %vm3038_vm10, %v3165_v9, %v3169_v55  ;;  %v3173_v21 = vor.u32 %v3171_v7, %v3169_v55  ;;  %v4555_v48 = vshrl.u32 %v10277_v36, 16  ;;  %v4558_v49 = vshll.u32 %v10277_v36, 16  ;;  %v10301_v30 = vld [vmem:[#allocation2 + $0x58] sm:$0xff]  }
 0x2cb   : > { %v2796_v39 = vsel %vm9819_vm9, %v2787_v41, %v2795_v58  ;;  %v2797_v40 = vrot.slane %v2795_v58, 4  ;;  %v2805_v16 = vor.u32 %v2804_v26, %v2801_v3  ;;  %7919 = vmatmul.mubr.msk.bf16.gmra.mrb[100].mxu0 %vm755_vm1, %v3170_v5  ;;  %v3698_v51 = vsel %vm590_vm0, %v3695_v53, %v3697_v2  ;;  %v10305_v3 = vld [vmem:[#allocation2 + $0x60] sm:$0xff]   ;;  %v10320_v5 = vld [vmem:[#allocation2 + $0x70] sm:$0xff]   ;;  %v10327_v7 = vld [vmem:[#allocation2 + $0x78] sm:$0xff]  }
 0x2cc   : > { %2884 = vst.msk [vmem:[#allocation2 + $0x90] sm:$0xf] %vm307_vm3, %v2796_v39  ;;  %v10245_v47 = vld [vmem:[#allocation2 + $0x88] sm:$0xff]   ;;  %v4564_v24 = vshrl.u32 %v10282_v4, 16  ;;  %v3700_v37 = vsel %vm590_vm0, %v3697_v2, %v3699_v23  ;;  %v4560_v41 = vrot.slane %v4558_v49, 2  ;;  %v4567_v58 = vshll.u32 %v10282_v4, 16 }
 0x2cd   : > { %v2806_v10 = vsel %vm9819_vm9, %v2797_v40, %v2805_v16  ;;  %v2807_v20 = vrot.slane %v2805_v16, 4  ;;  %7967 = vmatmul.mubr.msk.bf16.gmra.mrb[24].mxu1 %vm755_vm1, %v10245_v47  ;;  %v3175_v42 = vshll.u32 %v10245_v47, 16  ;;  %v3179_v43 = vshrl.u32 %v10245_v47, 16  ;;  %v10317_v39 = vld [vmem:[%s11395_s4 + $0x80] sm:$0xff]  }
 0x2ce   : > { %2885 = vst.msk [vmem:[#allocation2 + $0x94] sm:$0xf] %vm307_vm3, %v2806_v10  ;;  %7978 = vmatprep.mubr.msk.bf16.mxu1 %vm755_vm1, %v3694_v35  ;;  %v4566_v26 = vrot.slane %v4564_v24, 1  ;;  %v4573_v9 = vshrl.u32 %v10286_v57, 16  ;;  %v4576_v55 = vshll.u32 %v10286_v57, 16  ;;  %v4569_v23 = vrot.slane %v4567_v58, 2 }
 0x2cf   : > { %v2889_v12 = vsel %vm2887_vm12, %v2807_v20, %v2888_v14  ;;  %v3177_v18 = vrot.slane %v3175_v42, 1  ;;  %v4591_v35 = vshrl.u32 %v10301_v30, 16  ;;  %v4603_v2 = vshll.u32 %v10305_v3, 16 }
 0x2d0   : > { %2890 = vst [vmem:[#allocation2 + $0x98] sm:$0x3] %v2889_v12  ;;  %v4575_v40 = vrot.slane %v4573_v9, 1  ;;  %v4578_v16 = vrot.slane %v4576_v55, 2  ;;  %v4570_v10 = vor.u32 %v4569_v23, %v4566_v26  ;;  %v4627_v24 = vshrl.u32 %v10327_v7, 16 }
 0x2d1   : > { %v3178_v11 = vsel %vm3038_vm10, %v3173_v21, %v3177_v18  ;;  %v3181_v63 = vor.u32 %v3179_v43, %v3177_v18  ;;  %v4594_v21 = vshll.u32 %v10301_v30, 16  ;;  %v4600_v18 = vshrl.u32 %v10305_v3, 16 }
 0x2d2   : > { %7922 = vmatprep.mubr.msk.bf16.mxu0 %vm755_vm1, %v3178_v11  ;;  %v4579_v42 = vor.u32 %v4578_v16, %v4575_v40  ;;  %v4593_v11 = vrot.slane %v4591_v35, 1  ;;  %v4629_v55 = vrot.slane %v4627_v24, 1 }
 0x2d3   : > { %v10265_v44 = vld [vmem:[#allocation2 + $0x90] ss:$0 sps:$4 sm:$0x11]  }
 0x2d4   : > { %v3183_v32 = vshll.u32 %v10265_v44, 16 }
 0x2d5   : > { %7979 = vmatmul.mubr.msk.bf16.vlgmr.msra.gmra.mrb[28].mxu1 %vm755_vm1, %v3696_v28  ;;  %v10343_v28 = vsel %vm4500_vm13, %v4570_v10, %v4579_v42 }
 0x2d6   : > { %7982 = vmatprep.mubr.msk.bf16.mxu1 %vm755_vm1, %v3698_v51  ;;  %8015 = vmatpush3.bf16.msra.mxu1 %v9968_v1  ;;  %v3185_v27 = vrot.slane %v3183_v32, 1  ;;  %v10290_v1 = vld [vmem:[#allocation2 + $0x50] sm:$0xff]   ;;  %11411 = vst [vmem:[#allocation5_spill] sm:$0xff] %v10343_v28  ;;  %v4596_v32 = vrot.slane %v4594_v21, 2  ;;  %v4605_v51 = vrot.slane %v4603_v2, 2 }
 0x2d7   : > { %8016 = vmatprep.subr.bf16.mxu1 %v8865_v33  ;;  %v4582_v61 = vshrl.u32 %v10290_v1, 16  ;;  %v4585_v14 = vshll.u32 %v10290_v1, 16 }
 0x2d8   : > { %v3186_v45 = vsel %vm3038_vm10, %v3181_v63, %v3185_v27  ;;  %v4612_v27 = vshll.u32 %v10311_v59, 16  ;;  %v4597_v49 = vor.u32 %v4596_v32, %v4593_v11 }
 0x2d9   : > { %7923 = vmatmul.mubr.msk.bf16.gmra.mrb[104].mxu0 %vm755_vm1, %v3186_v45  ;;  %v4584_v20 = vrot.slane %v4582_v61, 1  ;;  %v4587_v12 = vrot.slane %v4585_v14, 2  ;;  %v10349_v45 = vld [vmem:[#allocation2 + $0x88] sm:$0xff]   ;;  %v10369_v14 = vld [vmem:[#allocation2 + $0x98] ss:$0 sps:$4 sm:$0x33]  }
 0x2da   : > { %7934 = vmatprep.mubr.msk.bf16.mxu0 %vm755_vm1, %v9815_v19  ;;  %8017 = vmatpush3.bf16.msra.mxu1 %v8865_v33  ;;  %v4557_v19 = vrot.slane %v4555_v48, 1  ;;  %v10340_v33 = vld [vmem:[#allocation2 + $0x80] sm:$0xff]   ;;  %v4645_v35 = vshrl.u32 %v10349_v45, 16 }
 0x2db   : > { %8018 = vmatprep.subr.bf16.mxu1 %v8866_v46  ;;  %v4588_v43 = vor.u32 %v4587_v12, %v4584_v20  ;;  %v4636_v23 = vshrl.u32 %v10340_v33, 16 }
 0x2dd   : > { %7983 = vmatmul.mubr.msk.bf16.gmra.mrb[32].mxu1 %vm755_vm1, %v3700_v37  ;;  %v10352_v48 = vsel %vm4500_vm13, %v4579_v42, %v4588_v43  ;;  %v10358_v37 = vld [vmem:[#allocation2 + $0x90] sm:$0xff]   ;;  %v10362_v26 = vsel %vm4500_vm13, %v4588_v43, %v4597_v49  ;;  %v4638_v20 = vrot.slane %v4636_v23, 1  ;;  %v4648_v42 = vshll.u32 %v10349_v45, 16 }
 0x2de   : > { %7986 = vmatprep.mubr.msk.bf16.mxu1 %vm755_vm1, %v9958_v62  ;;  %8019 = vmatpush3.bf16.msra.mxu1 %v8866_v46  ;;  %v10322_v62 = vor.u32 %v4560_v41, %v4557_v19  ;;  %v4618_v46 = vshrl.u32 %v10320_v5, 16  ;;  %11412 = vst [vmem:[#allocation6_spill] sm:$0xff] %v10352_v48  ;;  %v4614_v41 = vrot.slane %v4612_v27, 2  ;;  %11413 = vst [vmem:[#allocation7_spill] sm:$0xff] %v10362_v26  ;;  %v4654_v11 = vshrl.u32 %v10358_v37, 16 }
 0x2df   : > { %8020 = vmatprep.subr.bf16.mxu1 %v8867_v0  ;;  %v4650_v43 = vrot.slane %v4648_v42, 2  ;;  %v4990_v23 = vrot.slane %v10286_v57, 2 }
 0x2e0   : > { %11409 = vst [vmem:[#allocation3_spill] sm:$0xff] %v10322_v62  ;;  %v10335_v53 = vsel %vm4500_vm13, %v10322_v62, %v4570_v10  ;;  %v4620_v58 = vrot.slane %v4618_v46, 1 }
 0x2e1   : > { %7935 = vmatmul.mubr.msk.bf16.vlgmr.msra.gmra.mrb[72].mxu0 %vm755_vm1, %v10231_v25  ;;  %11410 = vst [vmem:[#allocation4_spill] sm:$0xff] %v10335_v53  ;;  %v4609_v25 = vshrl.u32 %v10311_v59, 16 }
 0x2e2   : > { %7938 = vmatprep.mubr.msk.bf16.mxu0 %vm755_vm1, %v10257_v38  ;;  %8021 = vmatpush3.bf16.msra.mxu1 %v8867_v0  ;;  %v4602_v38 = vrot.slane %v4600_v18, 1  ;;  %v4621_v0 = vshll.u32 %v10320_v5, 16 }
 0x2e3   : > { %8058 = vmatprep.subr.bf16.mxu1 %v10317_v39  ;;  %v4611_v63 = vrot.slane %v4609_v25, 1  ;;  %v4647_v25 = vrot.slane %v4645_v35, 1  ;;  %v4998_v35 = vrot.slane %v10311_v59, 2 }
 0x2e4   : > { %v4606_v19 = vor.u32 %v4605_v51, %v4602_v38  ;;  %v4623_v9 = vrot.slane %v4621_v0, 2  ;;  %v4656_v51 = vrot.slane %v4654_v11, 1  ;;  %v5002_v11 = vrot.slane %v10327_v7, 2 }
 0x2e5   : > { %7987 = vmatmul.mubr.msk.bf16.gmra.mrb[0].mxu1 %vm755_vm1, %v9978_v54  ;;  %v4630_v54 = vshll.u32 %v10327_v7, 16  ;;  %v4615_v40 = vor.u32 %v4614_v41, %v4611_v63  ;;  %v4663_v63 = vshrl.u32 %v10369_v14, 16  ;;  %v4651_v27 = vor.u32 %v4650_v43, %v4647_v25 }
 0x2e6   : > { %7990 = vmatprep.mubr.msk.bf16.mxu1 %vm755_vm1, %v10016_v13  ;;  %v10366_v61 = vsel %vm4500_vm13, %v4597_v49, %v4606_v19  ;;  %v4639_v13 = vshll.u32 %v10340_v33, 16  ;;  %v4624_v10 = vor.u32 %v4623_v9, %v4620_v58  ;;  %v4666_v49 = vshll.u32 %v10369_v14, 16 }
 0x2e7   : > { %11414 = vst [vmem:[#allocation8_spill] sm:$0xff] %v10366_v61  ;;  %v4632_v16 = vrot.slane %v4630_v54, 2  ;;  %v10376_v12 = vsel %vm4500_vm13, %v4606_v19, %v4615_v40  ;;  %v4665_v24 = vrot.slane %v4663_v63, 1  ;;  %v11400_v9 = vrot.slane %v10277_v36, 2 }
 0x2e8   : > { %11415 = vst [vmem:[#allocation9_spill] sm:$0xff] %v10376_v12  ;;  %v4641_v18 = vrot.slane %v4639_v13, 2  ;;  %v10380_v2 = vsel %vm4500_vm13, %v4615_v40, %v4624_v10  ;;  %v4668_v58 = vrot.slane %v4666_v49, 2  ;;  %v4992_v40 = vrot.slane %v10290_v1, 2  ;;  %v10451_v49 = vld [vmem:[#allocation2 + $0x18] sm:$0xff]  }
 0x2e9   : > { %7939 = vmatmul.mubr.msk.bf16.gmra.mrb[76].mxu0 %vm755_vm1, %v10261_v52  ;;  %v4633_v21 = vor.u32 %v4632_v16, %v4629_v55  ;;  %11416 = vst [vmem:[#allocation10_spill] sm:$0xff] %v10380_v2  ;;  %v4657_v52 = vshll.u32 %v10358_v37, 16  ;;  %v4988_v55 = vrot.slane %v10282_v4, 2  ;;  %v4994_v16 = vrot.slane %v10301_v30, 2 }
 0x2ea   : > { %v4642_v38 = vor.u32 %v4641_v18, %v4638_v20  ;;  %v4996_v20 = vrot.slane %v10305_v3, 2  ;;  %v10422_v42 = vsel %vm1532_vm2, %v4990_v23, %v4992_v40  ;;  %v5000_v18 = vrot.slane %v10320_v5, 2 }
 0x2eb   : > { %v10384_v32 = vsel %vm4500_vm13, %v4624_v10, %v4633_v21  ;;  %v4659_v46 = vrot.slane %v4657_v52, 2  ;;  %v10412_v13 = vsel %vm1532_vm2, %v11400_v9, %v4988_v55  ;;  %v10415_v10 = vsel %vm1532_vm2, %v4988_v55, %v4990_v23  ;;  %11424 = vst [vmem:[#allocation18_spill] sm:$0xff] %v10422_v42  ;;  %v10461_v55 = vld [vmem:[#allocation2 + $0x28] sm:$0xff]   ;;  %v10463_v23 = vld [vmem:[#allocation2 + $0x30] sm:$0xff]  }
 0x2ec   : > { %11417 = vst [vmem:[#allocation11_spill] sm:$0xff] %v10384_v32  ;;  %v10393_v0 = vsel %vm4500_vm13, %v4633_v21, %v4642_v38  ;;  %v10396_v19 = vsel %vm4500_vm13, %v4642_v38, %v4651_v27  ;;  %11422 = vst [vmem:[#allocation16_spill] sm:$0xff] %v10412_v13  ;;  %v10425_v21 = vsel %vm1532_vm2, %v4992_v40, %v4994_v16  ;;  %v5006_v52 = vrot.slane %v10349_v45, 2  ;;  %v10439_v38 = vld [vmem:[#allocation2 + $0xc] sm:$0xf] }
 0x2ed   : > { %7991 = vmatmul.mubr.msk.bf16.gmra.mrb[4].mxu1 %vm755_vm1, %v10031_v17  ;;  %11418 = vst [vmem:[#allocation12_spill] sm:$0xff] %v10393_v0  ;;  %11419 = vst [vmem:[#allocation13_spill] sm:$0xff] %v10396_v19  ;;  %v4660_v41 = vor.u32 %v4659_v46, %v4656_v51  ;;  %v4669_v17 = vor.u32 %v4668_v58, %v4665_v24  ;;  %v10432_v25 = vsel %vm1532_vm2, %v4994_v16, %v4996_v20  ;;  %v10449_v46 = vld [vmem:[#allocation2 + $0x10] sm:$0xff]   ;;  %v10453_v24 = vld [vmem:[#allocation2 + $0x20] sm:$0xff]  }
 0x2ee   : > { %7994 = vmatprep.mubr.msk.bf16.mxu1 %vm755_vm1, %v10073_v56  ;;  %11423 = vst [vmem:[#allocation17_spill] sm:$0xff] %v10415_v10  ;;  %11425 = vst [vmem:[#allocation19_spill] sm:$0xff] %v10425_v21  ;;  %v10435_v43 = vsel %vm1532_vm2, %v4996_v20, %v4998_v35  ;;  %v10442_v51 = vsel %vm1532_vm2, %v4998_v35, %v5000_v18  ;;  %v10445_v63 = vsel %vm1532_vm2, %v5000_v18, %v5002_v11  ;;  %v10474_v20 = vld [vmem:[#allocation2 + $0x14] sm:$0xf] }
 0x2ef   : > { %v10399_v54 = vsel %vm4500_vm13, %v4651_v27, %v4660_v41  ;;  %v10405_v56 = vsel %vm4500_vm13, %v4660_v41, %v4669_v17  ;;  %11426 = vst [vmem:[#allocation20_spill] sm:$0xff] %v10432_v25  ;;  %11427 = vst [vmem:[#allocation21_spill] sm:$0xff] %v10435_v43  ;;  %v5010_v27 = vrot.slane %v10369_v14, 2  ;;  %v4020_v17 = vld [vmem:[#allocation2 + $0x8] sm:$0xe]  ;;  %v4160_v35 = vrot.slane %v10449_v46, 1 }
 0x2f0   : > { %11420 = vst [vmem:[#allocation14_spill] sm:$0xff] %v10399_v54  ;;  %11421 = vst [vmem:[#allocation15_spill] sm:$0xff] %v10405_v56  ;;  %v10472_v16 = vcombine.low %v4020_v17, %v10439_v38  ;;  %v4162_v18 = vrot.slane %v10451_v49, 1  ;;  %v3727_v17 = vrot.slane %v10265_v44, 1  ;;  %v10506_v44 = vld [vmem:[#allocation2 + $0x10] sm:$0x8] }
 0x2f1   : > { %11428 = vst [vmem:[#allocation22_spill] sm:$0xff] %v10439_v38  ;;  %11429 = vst [vmem:[#allocation23_spill] sm:$0xff] %v10442_v51  ;;  %v10526_v51 = vld [vmem:[#allocation2 + $0x30] sm:$0xff]   ;;  %v10531_v43 = vld [vmem:[#allocation2 + $0x38] sm:$0xff]  }
 0x2f2   : > { %11430 = vst [vmem:[#allocation24_spill] sm:$0xff] %v10445_v63  ;;  %v4159_v9 = vrot.slane %v10472_v16, 1  ;;  %v10536_v25 = vld [vmem:[#allocation2 + $0x40] sm:$0xff]   ;;  %v5820_v19 = vshrl.u32 %v10526_v51, 16  ;;  %v5832_v2 = vshll.u32 %v10531_v43, 16 }
 0x2f5   : > { %7995 = vmatmul.mubr.msk.bf16.gmra.mrb[8].mxu1 %vm755_vm1, %v10093_v60  ;;  %v5004_v60 = vrot.slane %v10340_v33, 2 }
 0x2f6   : > { %7998 = vmatprep.mubr.msk.bf16.mxu1 %vm755_vm1, %v10130_v31  ;;  %v5008_v31 = vrot.slane %v10358_v37, 2 }
 0x2f7   : > { %v10456_v41 = vsel %vm1532_vm2, %v5002_v11, %v5004_v60  ;;  %v10459_v58 = vsel %vm1532_vm2, %v5004_v60, %v5006_v52  ;;  %v4164_v11 = vrot.slane %v10453_v24, 1  ;;  %v3725_v60 = vrot.slane %v10245_v47, 1 }
 0x2f8   : > { %11431 = vst [vmem:[#allocation25_spill] sm:$0xff] %v10456_v41  ;;  %11432 = vst [vmem:[#allocation26_spill] sm:$0xff] %v10459_v58  ;;  %v10466_v40 = vsel %vm1532_vm2, %v5006_v52, %v5008_v31  ;;  %v10469_v14 = vsel %vm1532_vm2, %v5008_v31, %v5010_v27  ;;  %v4166_v52 = vrot.slane %v10461_v55, 1  ;;  %v5303_v27 = vld [vmem:[#allocation2 + $0x10] sm:$0xc]  ;;  %v10496_v47 = vsel %vm590_vm0, %v4159_v9, %v4160_v35 }
 0x2f9   : > { %11433 = vst [vmem:[#allocation27_spill] sm:$0xff] %v10466_v40  ;;  %11434 = vst [vmem:[#allocation28_spill] sm:$0xff] %v10469_v14  ;;  %v10489_v29 = vcombine.low %v5303_v27, %v10474_v20  ;;  %v10491_v14 = vld [vmem:[#allocation2 + $0x18] sm:$0xff]   ;;  %v10499_v31 = vsel %vm590_vm0, %v4160_v35, %v4162_v18  ;;  %v10502_v40 = vsel %vm590_vm0, %v4162_v18, %v4164_v11  ;;  %v11436_v27 = vrot.slane %v10224_v34, 1 }
 0x2fa   : > { %v10514_v41 = vsel %vm590_vm0, %v4164_v11, %v4166_v52  ;;  %v11437_v9 = vrot.slane %v10463_v23, 1  ;;  %v10524_v63 = vsel %vm590_vm0, %v3725_v60, %v3727_v17  ;;  %v5793_v11 = vshrl.u32 %v10491_v14, 16 }
 0x2fb   : > { %11435 = vst [vmem:[#allocation29_spill] sm:$0xff] %v10489_v29  ;;  %v10511_v58 = vsel %vm590_vm0, %v11436_v27, %v3725_v60  ;;  %v5785_v34 = vshrl.u32 %v10489_v29, 16  ;;  %v5788_v27 = vshll.u32 %v10489_v29, 16 }
 0x2fc   : > { %v10519_v35 = vsel %vm590_vm0, %v4166_v52, %v11437_v9  ;;  %v5796_v52 = vshll.u32 %v10491_v14, 16  ;;  %v5795_v21 = vrot.slane %v5793_v11, 2  ;;  %v10548_v11 = vld [vmem:[#allocation2 + $0x50] sm:$0xff]  }
 0x2fd   : > { %7999 = vmatmul.mubr.msk.bf16.gmra.mrb[12].mxu1 %vm755_vm1, %v10145_v6  ;;  %v10493_v6 = vld [vmem:[#allocation2 + $0x20] sm:$0xff]   ;;  %v5787_v60 = vrot.slane %v5785_v34, 2  ;;  %v5790_v17 = vrot.slane %v5788_v27, 3  ;;  %v5823_v34 = vshll.u32 %v10526_v51, 16  ;;  %v10546_v27 = vld [vmem:[#allocation2 + $0x48] sm:$0xff]  }
 0x2fe   : > { %8002 = vmatprep.mubr.msk.bf16.mxu1 %vm755_vm1, %v10182_v15  ;;  %v10504_v15 = vld [vmem:[#allocation2 + $0x28] sm:$0xff]   ;;  %v5802_v9 = vshrl.u32 %v10493_v6, 16  ;;  %v5805_v18 = vshll.u32 %v10493_v6, 16  ;;  %v5798_v29 = vrot.slane %v5796_v52, 3  ;;  %v5847_v61 = vshrl.u32 %v10546_v27, 16 }
 0x2ff   : > { %v5811_v42 = vshrl.u32 %v10504_v15, 16  ;;  %v5814_v56 = vshll.u32 %v10504_v15, 16  ;;  %v5791_v38 = vor.u32 %v5790_v17, %v5787_v60  ;;  %v5825_v32 = vrot.slane %v5823_v34, 3 }
 0x300   : > { %v5804_v10 = vrot.slane %v5802_v9, 2  ;;  %v5807_v13 = vrot.slane %v5805_v18, 3  ;;  %v5799_v0 = vor.u32 %v5798_v29, %v5795_v21  ;;  %v5829_v18 = vshrl.u32 %v10531_v43, 16  ;;  %v10562_v21 = vld [vmem:[#allocation2 + $0x60] sm:$0xff]  }
 0x301   : > { %v5813_v54 = vrot.slane %v5811_v42, 2  ;;  %v5816_v52 = vrot.slane %v5814_v56, 3  ;;  %v5822_v9 = vrot.slane %v5820_v19, 2  ;;  %v10553_v42 = vld [vmem:[#allocation2 + $0x58] sm:$0xff]   ;;  %v5834_v56 = vrot.slane %v5832_v2, 3 }
 0x302   : > { %v10556_v60 = vsel %vm5783_vm14, %v5791_v38, %v5799_v0  ;;  %v5831_v29 = vrot.slane %v5829_v18, 2  ;;  %v5841_v19 = vshll.u32 %v10536_v25, 16  ;;  %v5850_v38 = vshll.u32 %v10546_v27, 16 }
 0x303   : > { %11438 = vst [vmem:[#allocation30_spill] sm:$0xff] %v10556_v60  ;;  %v5817_v12 = vor.u32 %v5816_v52, %v5813_v54  ;;  %v5856_v60 = vshrl.u32 %v10548_v11, 16  ;;  %v5859_v52 = vshll.u32 %v10548_v11, 16 }
 0x304   : > { %v5835_v2 = vor.u32 %v5834_v56, %v5831_v29  ;;  %v5852_v18 = vrot.slane %v5850_v38, 3  ;;  %v5877_v38 = vshll.u32 %v10562_v21, 16 }
 0x305   : > { %8003 = vmatmul.mubr.msk.bf16.gmra.mrb[16].mxu1 %vm755_vm1, %v10195_v50  ;;  %v5808_v50 = vor.u32 %v5807_v13, %v5804_v10  ;;  %v5826_v13 = vor.u32 %v5825_v32, %v5822_v9  ;;  %v5843_v32 = vrot.slane %v5841_v19, 3  ;;  %v5858_v9 = vrot.slane %v5856_v60, 2 }
 0x306   : > { %8006 = vmatprep.mubr.msk.bf16.mxu1 %vm755_vm1, %v10221_v8  ;;  %v5838_v8 = vshrl.u32 %v10536_v25, 16  ;;  %v5861_v56 = vrot.slane %v5859_v52, 3  ;;  %v5868_v19 = vshll.u32 %v10553_v42, 16  ;;  %v5874_v60 = vshrl.u32 %v10562_v21, 16 }
 0x307   : > { %v10559_v17 = vsel %vm5783_vm14, %v5799_v0, %v5808_v50  ;;  %v10565_v34 = vsel %vm5783_vm14, %v5808_v50, %v5817_v12  ;;  %v10570_v0 = vld [vmem:[#allocation2 + $0x68] sm:$0xff]   ;;  %v10573_v54 = vsel %vm5783_vm14, %v5817_v12, %v5826_v13  ;;  %v5849_v50 = vrot.slane %v5847_v61, 2 }
 0x308   : > { %11439 = vst [vmem:[#allocation31_spill] sm:$0xff] %v10559_v17  ;;  %v5840_v10 = vrot.slane %v5838_v8, 2  ;;  %11440 = vst [vmem:[#allocation32_spill] sm:$0xff] %v10565_v34  ;;  %v5865_v8 = vshrl.u32 %v10553_v42, 16  ;;  %v10581_v34 = vld [vmem:[#allocation2 + $0x70] sm:$0xff]   ;;  %v10584_v12 = vsel %vm5783_vm14, %v5826_v13, %v5835_v2  ;;  %v10591_v17 = vld [vmem:[#allocation2 + $0x80] sm:$0xff]   ;;  %v5862_v26 = vor.u32 %v5861_v56, %v5858_v9 }
 0x309   : > { %11441 = vst [vmem:[#allocation33_spill] sm:$0xff] %v10573_v54  ;;  %11442 = vst [vmem:[#allocation34_spill] sm:$0xff] %v10584_v12  ;;  %v10587_v54 = vld [vmem:[#allocation2 + $0x78] sm:$0xff]   ;;  %v5870_v13 = vrot.slane %v5868_v19, 3  ;;  %v5876_v52 = vrot.slane %v5874_v60, 2  ;;  %v5879_v12 = vrot.slane %v5877_v38, 3 }
 0x30a   : > { %v5844_v29 = vor.u32 %v5843_v32, %v5840_v10  ;;  %v5867_v61 = vrot.slane %v5865_v8, 2  ;;  %v5883_v10 = vshrl.u32 %v10570_v0, 16  ;;  %v10607_v9 = vld [vmem:[#allocation2 + $0x90] sm:$0xff]   ;;  %v5901_v60 = vshrl.u32 %v10587_v54, 16 }
 0x30b   : > { %v5880_v56 = vor.u32 %v5879_v12, %v5876_v52 }
 0x30c   : > { %v5871_v48 = vor.u32 %v5870_v13, %v5867_v61  ;;  %v5885_v28 = vrot.slane %v5883_v10, 2  ;;  %v10618_v61 = vld [vmem:[#allocation2 + $0x98] sm:$0xff]   ;;  %v5903_v52 = vrot.slane %v5901_v60, 2 }
 0x30d   : > { %8007 = vmatmul.mubr.msk.bf16.gmra.mrb[20].mxu1 %vm755_vm1, %v10237_v22  ;;  %v5853_v22 = vor.u32 %v5852_v18, %v5849_v50  ;;  %v5886_v50 = vshll.u32 %v10570_v0, 16  ;;  %v10601_v18 = vld [vmem:[#allocation2 + $0x88] sm:$0xff]   ;;  %v5940_v62 = vshll.u32 %v10618_v61, 16 }
 0x30e   : > { %8010 = vmatprep.mubr.msk.bf16.mxu1 %vm755_vm1, %v10511_v58  ;;  %v10594_v58 = vsel %vm5783_vm14, %v5835_v2, %v5844_v29  ;;  %v5892_v2 = vshrl.u32 %v10581_v34, 16  ;;  %v10612_v38 = vsel %vm5783_vm14, %v5862_v26, %v5871_v48  ;;  %v10621_v12 = vsel %vm5783_vm14, %v5871_v48, %v5880_v56 }
 0x30f   : > { %11443 = vst [vmem:[#allocation35_spill] sm:$0xff] %v10594_v58  ;;  %v10598_v32 = vsel %vm5783_vm14, %v5844_v29, %v5853_v22  ;;  %v10604_v8 = vsel %vm5783_vm14, %v5853_v22, %v5862_v26  ;;  %v5888_v19 = vrot.slane %v5886_v50, 3  ;;  %v5895_v29 = vshll.u32 %v10581_v34, 16  ;;  %11446 = vst [vmem:[#allocation38_spill] sm:$0xff] %v10612_v38 }
 0x310   : > { %11444 = vst [vmem:[#allocation36_spill] sm:$0xff] %v10598_v32  ;;  %11445 = vst [vmem:[#allocation37_spill] sm:$0xff] %v10604_v8  ;;  %v5894_v32 = vrot.slane %v5892_v2, 2  ;;  %v5904_v58 = vshll.u32 %v10587_v54, 16  ;;  %v5910_v22 = vshrl.u32 %v10591_v17, 16  ;;  %v5913_v2 = vshll.u32 %v10591_v17, 16 }
 0x311   : > { %11447 = vst [vmem:[#allocation39_spill] sm:$0xff] %v10621_v12  ;;  %v5889_v13 = vor.u32 %v5888_v19, %v5885_v28  ;;  %v5897_v10 = vrot.slane %v5895_v29, 3  ;;  %v5919_v38 = vshrl.u32 %v10601_v18, 16  ;;  %v5922_v53 = vshll.u32 %v10601_v18, 16 }
 0x312   : > { %v5906_v26 = vrot.slane %v5904_v58, 3  ;;  %v5912_v50 = vrot.slane %v5910_v22, 2  ;;  %v5928_v48 = vshrl.u32 %v10607_v9, 16  ;;  %v10632_v28 = vld [vmem:[#allocation2 + $0xa0] ss:$0 sps:$4 sm:$0x77]  }
 0x313   : > { %v10628_v8 = vsel %vm5783_vm14, %v5880_v56, %v5889_v13  ;;  %v5915_v29 = vrot.slane %v5913_v2, 3  ;;  %v5921_v60 = vrot.slane %v5919_v38, 2  ;;  %v5924_v22 = vrot.slane %v5922_v53, 3  ;;  %v8877_v38 = vld [vmem:[%s11395_s4 + $0x88] sm:$0xff]  }
 0x314   : > { %11448 = vst [vmem:[#allocation40_spill] sm:$0xff] %v10628_v8  ;;  %v5907_v19 = vor.u32 %v5906_v26, %v5903_v52  ;;  %v5930_v12 = vrot.slane %v5928_v48, 2  ;;  %v5937_v56 = vshrl.u32 %v10618_v61, 16  ;;  %v5949_v53 = vshll.u32 %v10632_v28, 16 }
 0x315   : > { %8011 = vmatmul.mubr.msk.bf16.gmra.mrb[24].mxu1 %vm755_vm1, %v10524_v63  ;;  %v5898_v63 = vor.u32 %v5897_v10, %v5894_v32  ;;  %v5916_v10 = vor.u32 %v5915_v29, %v5912_v50  ;;  %v5925_v52 = vor.u32 %v5924_v22, %v5921_v60  ;;  %v11449_v60 = vcombine.low %v10506_v44, %v10474_v20 }
 0x316   : > { %8022 = vmatprep.mubr.msk.bf16.mxu1 %vm755_vm1, %v10496_v47  ;;  %v5931_v47 = vshll.u32 %v10607_v9, 16  ;;  %v5939_v26 = vrot.slane %v5937_v56, 2  ;;  %v6264_v44 = vrot.slane %v10504_v15, 3 }
 0x317   : > { %v10636_v58 = vsel %vm5783_vm14, %v5889_v13, %v5898_v63  ;;  %v10640_v32 = vsel %vm5783_vm14, %v5898_v63, %v5907_v19  ;;  %v5946_v13 = vshrl.u32 %v10632_v28, 16  ;;  %v10649_v2 = vsel %vm5783_vm14, %v5907_v19, %v5916_v10  ;;  %v8882_v19 = vld [vmem:[%s11395_s4 + $0x90] sm:$0xff]  }
 0x318   : > { %v5933_v8 = vrot.slane %v5931_v47, 3  ;;  %v5942_v63 = vrot.slane %v5940_v62, 3  ;;  %v10654_v50 = vsel %vm5783_vm14, %v5916_v10, %v5925_v52  ;;  %v5951_v47 = vrot.slane %v5949_v53, 3 }
 0x319   : > { %v5948_v29 = vrot.slane %v5946_v13, 2  ;;  %v6259_v22 = vrot.slane %v11449_v60, 3  ;;  %v6274_v60 = vrot.slane %v10548_v11, 3 }
 0x31a   : > { %v5934_v48 = vor.u32 %v5933_v8, %v5930_v12  ;;  %v5943_v8 = vor.u32 %v5942_v63, %v5939_v26  ;;  %v6262_v12 = vrot.slane %v10493_v6, 3  ;;  %v6270_v26 = vrot.slane %v10536_v25, 3 }
 0x31b   : > { %v5952_v20 = vor.u32 %v5951_v47, %v5948_v29  ;;  %v6272_v47 = vrot.slane %v10546_v27, 3 }
 0x31c   : > { %v10663_v62 = vsel %vm5783_vm14, %v5925_v52, %v5934_v48  ;;  %v10674_v56 = vsel %vm5783_vm14, %v5934_v48, %v5943_v8  ;;  %v10687_v53 = vsel %vm6258_vm15, %v6262_v12, %v6264_v44 }
 0x31d   : > { %8023 = vmatmul.mubr.msk.bf16.vlgmr.msra.gmra.mrb[28].mxu1 %vm755_vm1, %v10499_v31  ;;  %v6260_v31 = vrot.slane %v10491_v14, 3  ;;  %v10684_v13 = vsel %vm5783_vm14, %v5943_v8, %v5952_v20  ;;  %v8887_v8 = vld [vmem:[%s11395_s4 + $0x98] sm:$0xff]   ;;  %v6284_v20 = vrot.slane %v10587_v54, 3 }
 0x31e   : > { %8026 = vmatprep.mubr.msk.bf16.mxu1 %vm755_vm1, %v10502_v40  ;;  %8059 = vmatpush3.bf16.msra.mxu1 %v10317_v39  ;;  %v6266_v40 = vrot.slane %v10526_v51, 3  ;;  %v6268_v39 = vrot.slane %v10531_v43, 3 }
 0x31f   : > { %8060 = vmatprep.subr.bf16.mxu1 %v8877_v38  ;;  %v10677_v10 = vsel %vm6258_vm15, %v6259_v22, %v6260_v31  ;;  %v10680_v52 = vsel %vm6258_vm15, %v6260_v31, %v6262_v12  ;;  %v6276_v22 = vrot.slane %v10553_v42, 3  ;;  %v6278_v31 = vrot.slane %v10562_v21, 3 }
 0x320   : > { %v10690_v63 = vsel %vm6258_vm15, %v6264_v44, %v6266_v40  ;;  %v10693_v48 = vsel %vm6258_vm15, %v6266_v40, %v6268_v39  ;;  %v10696_v29 = vsel %vm6258_vm15, %v6268_v39, %v6270_v26  ;;  %v6280_v12 = vrot.slane %v10570_v0, 3 }
 0x321   : > { %11450 = vst [vmem:[#allocation41_spill] sm:$0xff] %v10690_v63  ;;  %11451 = vst [vmem:[#allocation42_spill] sm:$0xff] %v10693_v48  ;;  %v10709_v44 = vsel %vm6258_vm15, %v6270_v26, %v6272_v47  ;;  %v10712_v40 = vsel %vm6258_vm15, %v6272_v47, %v6274_v60  ;;  %v10715_v39 = vsel %vm6258_vm15, %v6274_v60, %v6276_v22 }
 0x322   : > { %8061 = vmatpush3.bf16.msra.mxu1 %v8877_v38  ;;  %11452 = vst [vmem:[#allocation43_spill] sm:$0xff] %v10696_v29  ;;  %v6282_v38 = vrot.slane %v10581_v34, 3  ;;  %v6286_v29 = vrot.slane %v10591_v17, 3  ;;  %v10721_v48 = vsel %vm6258_vm15, %v6276_v22, %v6278_v31  ;;  %v10724_v63 = vsel %vm6258_vm15, %v6278_v31, %v6280_v12 }
 0x323   : > { %8062 = vmatprep.subr.bf16.mxu1 %v8882_v19  ;;  %11453 = vst [vmem:[#allocation44_spill] sm:$0xff] %v10724_v63  ;;  %v6290_v22 = vrot.slane %v10607_v9, 3  ;;  %v6292_v31 = vrot.slane %v10618_v61, 3 }
 0x324   : > { %v10727_v26 = vsel %vm6258_vm15, %v6280_v12, %v6282_v38  ;;  %v10730_v47 = vsel %vm6258_vm15, %v6282_v38, %v6284_v20  ;;  %v10735_v60 = vsel %vm6258_vm15, %v6284_v20, %v6286_v29  ;;  %v10743_v12 = vld [vmem:[%s11395_s4 + $0xa0] sm:$0xff]   ;;  %v6294_v38 = vrot.slane %v10632_v28, 3 }
 0x325   : > { %8027 = vmatmul.mubr.msk.bf16.gmra.mrb[32].mxu1 %vm755_vm1, %v10514_v41  ;;  %11454 = vst [vmem:[#allocation45_spill] sm:$0xff] %v10727_v26  ;;  %11455 = vst [vmem:[#allocation46_spill] sm:$0xff] %v10730_v47  ;;  %v6288_v41 = vrot.slane %v10601_v18, 3  ;;  %v4172_v47 = vrot.slane %v10282_v4, 1  ;;  %v11457_v28 = vrot.slane %v10463_v23, 1  ;;  %v4176_v4 = vrot.slane %v10290_v1, 1 }
 0x326   : > { %8030 = vmatprep.mubr.msk.bf16.mxu1 %vm755_vm1, %v10519_v35  ;;  %8063 = vmatpush3.bf16.msra.mxu1 %v8882_v19  ;;  %11456 = vst [vmem:[#allocation47_spill] sm:$0xff] %v10735_v60  ;;  %v4170_v35 = vrot.slane %v10277_v36, 1  ;;  %v10754_v60 = vsel %vm6258_vm15, %v6290_v22, %v6292_v31  ;;  %v10758_v26 = vsel %vm6258_vm15, %v6292_v31, %v6294_v38  ;;  %v4178_v31 = vrot.slane %v10301_v30, 1 }
 0x327   : > { %8064 = vmatprep.subr.bf16.mxu1 %v8887_v8  ;;  %v10748_v19 = vsel %vm6258_vm15, %v6286_v29, %v6288_v41  ;;  %v10751_v20 = vsel %vm6258_vm15, %v6288_v41, %v6290_v22  ;;  %v4174_v41 = vrot.slane %v10286_v57, 1  ;;  %v4182_v1 = vrot.slane %v10311_v59, 1 }
 0x328   : > { %v4171_v63 = vsel %vm590_vm0, %v11457_v28, %v4170_v35  ;;  %v4173_v29 = vsel %vm590_vm0, %v4170_v35, %v4172_v47  ;;  %v4179_v38 = vsel %vm590_vm0, %v4176_v4, %v4178_v31  ;;  %v4188_v28 = vrot.slane %v10340_v33, 1 }
 0x329   : > { %v4175_v22 = vsel %vm590_vm0, %v4172_v47, %v4174_v41  ;;  %v4184_v47 = vrot.slane %v10320_v5, 1  ;;  %v4513_v33 = vshll.u32 %v10449_v46, 16 }
 0x32a   : > { %8065 = vmatpush3.bf16.msra.mxu1 %v8887_v8  ;;  %v4177_v8 = vsel %vm590_vm0, %v4174_v41, %v4176_v4  ;;  %v4190_v41 = vrot.slane %v10349_v45, 1 }
 0x32b   : > { %8102 = vmatprep.subr.bf16.mxu1 %v10743_v12  ;;  %v4185_v30 = vsel %vm590_vm0, %v4182_v1, %v4184_v47 }
 0x32d   : > { %8031 = vmatmul.mubr.msk.bf16.gmra.mrb[0].mxu1 %vm755_vm1, %v4171_v63  ;;  %v4180_v63 = vrot.slane %v10305_v3, 1  ;;  %v4186_v3 = vrot.slane %v10327_v7, 1  ;;  %v4510_v7 = vshrl.u32 %v10449_v46, 16 }
 0x32e   : > { %8034 = vmatprep.mubr.msk.bf16.mxu1 %vm755_vm1, %v4173_v29 }
 0x32f   : > { %v4181_v57 = vsel %vm590_vm0, %v4178_v31, %v4180_v63  ;;  %v4183_v35 = vsel %vm590_vm0, %v4180_v63, %v4182_v1  ;;  %v4187_v29 = vsel %vm590_vm0, %v4184_v47, %v4186_v3  ;;  %v4189_v59 = vsel %vm590_vm0, %v4186_v3, %v4188_v28  ;;  %v8890_v1 = vld [vmem:[#allocation2 + $0x98] ss:$0 sps:$4 sm:$0x11]  }
 0x330   : > { %v4502_v63 = vshrl.u32 %v10472_v16, 16  ;;  %v4515_v47 = vrot.slane %v4513_v33, 2  ;;  %v4194_v3 = vrot.slane %v8890_v1, 1 }
 0x335   : > { %8035 = vmatmul.mubr.msk.bf16.gmra.mrb[4].mxu1 %vm755_vm1, %v4175_v22  ;;  %v4192_v22 = vrot.slane %v10358_v37, 1  ;;  %v4512_v37 = vrot.slane %v4510_v7, 1 }
 0x336   : > { %8038 = vmatprep.mubr.msk.bf16.mxu1 %vm755_vm1, %v4177_v8 }
 0x337   : > { %v4193_v45 = vsel %vm590_vm0, %v4190_v41, %v4192_v22 }
 0x33d   : > { %8039 = vmatmul.mubr.msk.bf16.gmra.mrb[8].mxu1 %vm755_vm1, %v4179_v38  ;;  %v4505_v38 = vshll.u32 %v10472_v16, 16  ;;  %v4528_v16 = vshrl.u32 %v10453_v24, 16 }
 0x33e   : > { %8042 = vmatprep.mubr.msk.bf16.mxu1 %vm755_vm1, %v4181_v57  ;;  %v4191_v57 = vsel %vm590_vm0, %v4188_v28, %v4190_v41  ;;  %v4531_v28 = vshll.u32 %v10453_v24, 16 }
 0x345   : > { %8043 = vmatmul.mubr.msk.bf16.gmra.mrb[12].mxu1 %vm755_vm1, %v4183_v35  ;;  %v4504_v35 = vrot.slane %v4502_v63, 1  ;;  %v4530_v63 = vrot.slane %v4528_v16, 1 }
 0x346   : > { %8046 = vmatprep.mubr.msk.bf16.mxu1 %vm755_vm1, %v4185_v30  ;;  %v4507_v30 = vrot.slane %v4505_v38, 2  ;;  %v4533_v38 = vrot.slane %v4531_v28, 2 }
 0x34d   : > { %8047 = vmatmul.mubr.msk.bf16.gmra.mrb[16].mxu1 %vm755_vm1, %v4187_v29  ;;  %v4519_v29 = vshrl.u32 %v10451_v49, 16 }
 0x34e   : > { %8050 = vmatprep.mubr.msk.bf16.mxu1 %vm755_vm1, %v4189_v59  ;;  %v10791_v5 = vpop.f32.mrb[80].mxu0  ;;  %v4522_v59 = vshll.u32 %v10451_v49, 16 }
 0x34f   : > { %v10794_v4 = vpop.f32.mrb[81].mxu0  ;;  %v4521_v41 = vrot.slane %v4519_v29, 1 }
 0x350   : > { %v10799_v8 = vpop.f32.mrb[82].mxu0  ;;  %v4524_v7 = vrot.slane %v4522_v59, 2  ;;  %v8892_v59 = vld [vmem:[%s11395_s4 + $0xa8] sm:$0xff]  }
 0x351   : > { %11458 = vst [vmem:[#allocation48_spill] sm:$0xff] %v10799_v8  ;;  %v10801_v31 = vpop.f32.mrb[83].mxu0  ;;  %v4508_v8 = vor.u32 %v4507_v30, %v4504_v35  ;;  %v4546_v30 = vshrl.u32 %v10463_v23, 16 }
 0x352   : > { %11459 = vst [vmem:[#allocation49_spill] sm:$0xff] %v10801_v31  ;;  %v4516_v31 = vor.u32 %v4515_v47, %v4512_v37  ;;  %v4537_v37 = vshrl.u32 %v10461_v55, 16  ;;  %v4540_v47 = vshll.u32 %v10461_v55, 16 }
 0x354   : > { %v4517_v33 = vsel %vm4500_vm13, %v4508_v8, %v4516_v31  ;;  %v4539_v28 = vrot.slane %v4537_v37, 1 }
 0x355   : > { %8051 = vmatmul.mubr.msk.bf16.gmra.mrb[20].mxu1 %vm755_vm1, %v4191_v57  ;;  %v4195_v57 = vsel %vm590_vm0, %v4192_v22, %v4194_v3  ;;  %v4534_v22 = vor.u32 %v4533_v38, %v4530_v63  ;;  %v4549_v3 = vshll.u32 %v10463_v23, 16  ;;  %v8893_v63 = vld [vmem:[%s11395_s4 + $0xb0] sm:$0xff]  }
 0x356   : > { %8054 = vmatprep.mubr.msk.bf16.mxu1 %vm755_vm1, %v4193_v45  ;;  %v4525_v45 = vor.u32 %v4524_v7, %v4521_v41  ;;  %v4548_v7 = vrot.slane %v4546_v30, 1 }
 0x358   : > { %v4526_v16 = vsel %vm4500_vm13, %v4516_v31, %v4525_v45  ;;  %v4535_v41 = vsel %vm4500_vm13, %v4525_v45, %v4534_v22  ;;  %v8894_v31 = vld [vmem:[%s11395_s4 + $0xb8] sm:$0xff]  }
 0x35d   : > { %8055 = vmatmul.mubr.msk.bf16.gmra.mrb[24].mxu1 %vm755_vm1, %v4195_v57  ;;  %v4542_v57 = vrot.slane %v4540_v47, 2 }
 0x35e   : > { %8066 = vmatprep.mubr.msk.bf16.mxu1 %vm755_vm1, %v4517_v33  ;;  %v10817_v1 = vpop.f32.mrb[84].mxu0  ;;  %v4551_v33 = vrot.slane %v4549_v3, 2 }
 0x35f   : > { %v10821_v35 = vpop.f32.mrb[85].mxu0  ;;  %v4543_v38 = vor.u32 %v4542_v57, %v4539_v28  ;;  %v11462_v28 = vld [vmem:[#allocation4_spill] sm:$0xff]  ;;  %v11463_v57 = vld [vmem:[#allocation5_spill] sm:$0xff] }
 0x360   : > { %v10825_v29 = vpop.f32.mrb[86].mxu0 }
 0x361   : > { %v10827_v8 = vpop.f32.mrb[87].mxu0  ;;  %v4544_v45 = vsel %vm4500_vm13, %v4534_v22, %v4543_v38 }
 0x362   : > { %11460 = vst [vmem:[#allocation50_spill] sm:$0xff] %v10827_v8  ;;  %v4552_v8 = vor.u32 %v4551_v33, %v4548_v7 }
 0x364   : > { %v4553_v37 = vsel %vm4500_vm13, %v4543_v38, %v4552_v8 }
 0x365   : > { %8067 = vmatmul.mubr.msk.bf16.vlgmr.msra.gmra.mrb[28].mxu1 %vm755_vm1, %v4526_v16 }
 0x366   : > { %8070 = vmatprep.mubr.msk.bf16.mxu1 %vm755_vm1, %v4535_v41  ;;  %8103 = vmatpush3.bf16.msra.mxu1 %v10743_v12  ;;  %v8897_v12 = vld [vmem:[%s11395_s4 + $0xc0] sm:$0xff]  }
 0x367   : > { %8104 = vmatprep.subr.bf16.mxu1 %v8892_v59  ;;  %v11464_v41 = vld [vmem:[#allocation6_spill] sm:$0xff] }
 0x36a   : > { %8105 = vmatpush3.bf16.msra.mxu1 %v8892_v59  ;;  %v11461_v59 = vld [vmem:[#allocation3_spill] sm:$0xff] }
 0x36b   : > { %8106 = vmatprep.subr.bf16.mxu1 %v8893_v63  ;;  %v4562_v16 = vsel %vm4500_vm13, %v4552_v8, %v11461_v59  ;;  %v11468_v8 = vld [vmem:[#allocation7_spill] sm:$0xff] }
 0x36d   : > { %8071 = vmatmul.mubr.msk.bf16.gmra.mrb[32].mxu1 %vm755_vm1, %v4544_v45  ;;  %v11470_v45 = vld [vmem:[#allocation9_spill] sm:$0xff] }
 0x36e   : > { %8074 = vmatprep.mubr.msk.bf16.mxu1 %vm755_vm1, %v4553_v37  ;;  %8107 = vmatpush3.bf16.msra.mxu1 %v8893_v63  ;;  %v11471_v37 = vld [vmem:[#allocation10_spill] sm:$0xff] }
 0x36f   : > { %8108 = vmatprep.subr.bf16.mxu1 %v8894_v31  ;;  %v10850_v47 = vpop.f32.mrb[88].mxu0 }
 0x370   : > { %v10852_v30 = vpop.f32.mrb[89].mxu0 }
 0x371   : > { %v10854_v3 = vpop.f32.mrb[90].mxu0 }
 0x372   : > { %8109 = vmatpush3.bf16.msra.mxu1 %v8894_v31  ;;  %v10856_v22 = vpop.f32.mrb[91].mxu0  ;;  %v11469_v31 = vld [vmem:[#allocation8_spill] sm:$0xff] }
 0x373   : > { %8146 = vmatprep.subr.bf16.mxu1 %v8897_v12 }
 0x375   : > { %8075 = vmatmul.mubr.msk.bf16.gmra.mrb[0].mxu1 %vm755_vm1, %v4562_v16 }
 0x376   : > { %8078 = vmatprep.mubr.msk.bf16.mxu1 %vm755_vm1, %v11462_v28 }
 0x37d   : > { %8079 = vmatmul.mubr.msk.bf16.gmra.mrb[4].mxu1 %vm755_vm1, %v11463_v57 }
 0x37e   : > { %8082 = vmatprep.mubr.msk.bf16.mxu1 %vm755_vm1, %v11464_v41  ;;  %v10867_v7 = vpop.f32.mrb[92].mxu0  ;;  %v11476_v41 = vld [vmem:[#allocation11_spill] sm:$0xff] }
 0x37f   : > { %v10869_v33 = vpop.f32.mrb[93].mxu0 }
 0x380   : > { %11465 = vst [vmem:[#allocation3_spill] sm:$0xff] %v10869_v33  ;;  %v10871_v63 = vpop.f32.mrb[94].mxu0  ;;  %v11484_v33 = vld [vmem:[#allocation15_spill] sm:$0xff] }
 0x381   : > { %11466 = vst [vmem:[#allocation4_spill] sm:$0xff] %v10871_v63  ;;  %v10873_v38 = vpop.f32.mrb[95].mxu0 }
 0x382   : > { %11467 = vst [vmem:[#allocation5_spill] sm:$0xff] %v10873_v38 }
 0x385   : > { %8083 = vmatmul.mubr.msk.bf16.gmra.mrb[8].mxu1 %vm755_vm1, %v11468_v8  ;;  %v11477_v8 = vld [vmem:[#allocation12_spill] sm:$0xff] }
 0x386   : > { %8086 = vmatprep.mubr.msk.bf16.mxu1 %vm755_vm1, %v11469_v31  ;;  %v11478_v31 = vld [vmem:[#allocation13_spill] sm:$0xff] }
 0x38d   : > { %8087 = vmatmul.mubr.msk.bf16.gmra.mrb[12].mxu1 %vm755_vm1, %v11470_v45  ;;  %v11479_v45 = vld [vmem:[#allocation14_spill] sm:$0xff] }
 0x38e   : > { %8090 = vmatprep.mubr.msk.bf16.mxu1 %vm755_vm1, %v11471_v37  ;;  %v10883_v59 = vpop.f32.mrb[96].mxu0  ;;  %v4962_v37 = vld [vmem:[#allocation2 + $0x8] sm:$0xc] }
 0x38f   : > { %11472 = vst [vmem:[#allocation6_spill] sm:$0xff] %v10883_v59  ;;  %v10885_v16 = vpop.f32.mrb[97].mxu0 }
 0x390   : > { %11473 = vst [vmem:[#allocation7_spill] sm:$0xff] %v10885_v16  ;;  %v10887_v28 = vpop.f32.mrb[98].mxu0  ;;  %v11480_v16 = vld [vmem:[#allocation22_spill] sm:$0xff] }
 0x391   : > { %11474 = vst [vmem:[#allocation8_spill] sm:$0xff] %v10887_v28  ;;  %v10889_v57 = vpop.f32.mrb[99].mxu0  ;;  %v7510_v38 = vcombine.low %v4962_v37, %v11480_v16  ;;  %v4980_v16 = vrot.slane %v10453_v24, 2  ;;  %v8898_v37 = vld [vmem:[%s11395_s4 + $0xc8] sm:$0xff]   ;;  %v8899_v24 = vld [vmem:[%s11395_s4 + $0xd0] sm:$0xff]  }
 0x392   : > { %11475 = vst [vmem:[#allocation9_spill] sm:$0xff] %v10889_v57 }
 0x395   : > { %8091 = vmatmul.mubr.msk.bf16.gmra.mrb[16].mxu1 %vm755_vm1, %v11476_v41  ;;  %v4976_v41 = vrot.slane %v10449_v46, 2 }
 0x396   : > { %8094 = vmatprep.mubr.msk.bf16.mxu1 %vm755_vm1, %v11477_v8  ;;  %v4975_v8 = vrot.slane %v7510_v38, 2 }
 0x39d   : > { %8095 = vmatmul.mubr.msk.bf16.gmra.mrb[20].mxu1 %vm755_vm1, %v11478_v31  ;;  %v4977_v31 = vsel %vm1532_vm2, %v4975_v8, %v4976_v41 }
 0x39e   : > { %8098 = vmatprep.mubr.msk.bf16.mxu1 %vm755_vm1, %v11479_v45  ;;  %v10899_v59 = vpop.f32.mrb[100].mxu0  ;;  %v4978_v45 = vrot.slane %v10451_v49, 2 }
 0x39f   : > { %v10902_v28 = vpop.f32.mrb[101].mxu0 }
 0x3a0   : > { %11481 = vst [vmem:[#allocation10_spill] sm:$0xff] %v10902_v28  ;;  %v10904_v57 = vpop.f32.mrb[102].mxu0  ;;  %v4979_v46 = vsel %vm1532_vm2, %v4976_v41, %v4978_v45  ;;  %v4982_v41 = vrot.slane %v10461_v55, 2 }
 0x3a1   : > { %11482 = vst [vmem:[#allocation11_spill] sm:$0xff] %v10904_v57  ;;  %v10907_v63 = vpop.f32.mrb[103].mxu0 }
 0x3a2   : > { %11483 = vst [vmem:[#allocation12_spill] sm:$0xff] %v10907_v63  ;;  %v11498_v63 = vld [vmem:[#allocation25_spill] sm:$0xff] }
 0x3a5   : > { %8099 = vmatmul.mubr.msk.bf16.gmra.mrb[24].mxu1 %vm755_vm1, %v11484_v33  ;;  %v4981_v33 = vsel %vm1532_vm2, %v4978_v45, %v4980_v16  ;;  %v8900_v45 = vld [vmem:[%s11395_s4 + $0xd8] sm:$0xff]  }
 0x3a6   : > { %8110 = vmatprep.mubr.msk.bf16.mxu1 %vm755_vm1, %v4977_v31  ;;  %v4984_v31 = vrot.slane %v10463_v23, 2  ;;  %v8904_v23 = vld [vmem:[%s11395_s4 + $0xe0] sm:$0xff]  }
 0x3ac   : > { %v10918_v57 = vpop.f32.mrb[104].mxu0 }
 0x3ad   : > { %11485 = vst [vmem:[#allocation13_spill] sm:$0xff] %v10918_v57  ;;  %v10921_v38 = vpop.f32.mrb[105].mxu0  ;;  %8111 = vmatmul.mubr.msk.bf16.vlgmr.msra.gmra.mrb[28].mxu1 %vm755_vm1, %v4979_v46  ;;  %v11491_v57 = vld [vmem:[#allocation17_spill] sm:$0xff] }
 0x3ae   : > { %11486 = vst [vmem:[#allocation14_spill] sm:$0xff] %v10921_v38  ;;  %v10925_v8 = vpop.f32.mrb[106].mxu0  ;;  %8114 = vmatprep.mubr.msk.bf16.mxu1 %vm755_vm1, %v4981_v33  ;;  %8147 = vmatpush3.bf16.msra.mxu1 %v8897_v12  ;;  %v4983_v12 = vsel %vm1532_vm2, %v4980_v16, %v4982_v41 }
 0x3af   : > { %11487 = vst [vmem:[#allocation22_spill] sm:$0xff] %v10925_v8  ;;  %v10928_v49 = vpop.f32.mrb[107].mxu0  ;;  %8148 = vmatprep.subr.bf16.mxu1 %v8898_v37 }
 0x3b0   : > { %11488 = vst [vmem:[#allocation15_spill] sm:$0xff] %v10928_v49  ;;  %v4985_v49 = vsel %vm1532_vm2, %v4982_v41, %v4984_v31 }
 0x3b2   : > { %8149 = vmatpush3.bf16.msra.mxu1 %v8898_v37  ;;  %v11489_v37 = vrot.slane %v10277_v36, 2  ;;  %v11493_v36 = vld [vmem:[#allocation19_spill] sm:$0xff] }
 0x3b3   : > { %8150 = vmatprep.subr.bf16.mxu1 %v8899_v24 }
 0x3b4   : > { %v10938_v46 = vpop.f32.mrb[72].mxu0  ;;  %v4987_v41 = vsel %vm1532_vm2, %v4984_v31, %v11489_v37  ;;  %v11494_v31 = vld [vmem:[#allocation20_spill] sm:$0xff]  ;;  %v11495_v37 = vld [vmem:[#allocation21_spill] sm:$0xff] }
 0x3b5   : > { %v10941_v33 = vpop.f32.mrb[73].mxu0  ;;  %8115 = vmatmul.mubr.msk.bf16.gmra.mrb[32].mxu1 %vm755_vm1, %v4983_v12 }
 0x3b6   : > { %v10945_v8 = vpop.f32.mrb[74].mxu0  ;;  %8118 = vmatprep.mubr.msk.bf16.mxu1 %vm755_vm1, %v4985_v49  ;;  %8151 = vmatpush3.bf16.msra.mxu1 %v8899_v24  ;;  %v11490_v24 = vld [vmem:[#allocation16_spill] sm:$0xff] }
 0x3b7   : > { %v10948_v55 = vpop.f32.mrb[75].mxu0  ;;  %8152 = vmatprep.subr.bf16.mxu1 %v8900_v45 }
 0x3ba   : > { %8153 = vmatpush3.bf16.msra.mxu1 %v8900_v45  ;;  %v11492_v45 = vld [vmem:[#allocation18_spill] sm:$0xff] }
 0x3bb   : > { %8190 = vmatprep.subr.bf16.mxu1 %v8904_v23 }
 0x3bc   : > { %v10953_v16 = vpop.f32.mrb[76].mxu0 }
 0x3bd   : > { %v10958_v12 = vpop.f32.mrb[77].mxu0  ;;  %8119 = vmatmul.mubr.msk.bf16.gmra.mrb[0].mxu1 %vm755_vm1, %v4987_v41  ;;  %v11496_v41 = vld [vmem:[#allocation23_spill] sm:$0xff] }
 0x3be   : > { %v10961_v49 = vpop.f32.mrb[78].mxu0  ;;  %8122 = vmatprep.mubr.msk.bf16.mxu1 %vm755_vm1, %v11490_v24  ;;  %v11497_v24 = vld [vmem:[#allocation24_spill] sm:$0xff] }
 0x3bf   : > { %v10965_v38 = vpop.f32.mrb[79].mxu0 }
 0x3c5   : > { %8123 = vmatmul.mubr.msk.bf16.gmra.mrb[4].mxu1 %vm755_vm1, %v11491_v57  ;;  %v11499_v57 = vld [vmem:[#allocation26_spill] sm:$0xff] }
 0x3c6   : > { %8126 = vmatprep.mubr.msk.bf16.mxu1 %vm755_vm1, %v11492_v45  ;;  %v11500_v45 = vld [vmem:[#allocation27_spill] sm:$0xff] }
 0x3cd   : > { %8127 = vmatmul.mubr.msk.bf16.gmra.mrb[8].mxu1 %vm755_vm1, %v11493_v36  ;;  %v5443_v36 = vrot.slane %v10491_v14, 2 }
 0x3ce   : > { %8130 = vmatprep.mubr.msk.bf16.mxu1 %vm755_vm1, %v11494_v31  ;;  %v11501_v31 = vld [vmem:[#allocation29_spill] sm:$0xff] }
 0x3cf   : > { %v5442_v28 = vrot.slane %v11501_v31, 2 }
 0x3d5   : > { %8131 = vmatmul.mubr.msk.bf16.gmra.mrb[12].mxu1 %vm755_vm1, %v11495_v37  ;;  %v11502_v37 = vld [vmem:[#allocation28_spill] sm:$0xff] }
 0x3d6   : > { %8134 = vmatprep.mubr.msk.bf16.mxu1 %vm755_vm1, %v11496_v41  ;;  %v5444_v41 = vsel %vm1532_vm2, %v5442_v28, %v5443_v36  ;;  %v5451_v28 = vrot.slane %v10531_v43, 2  ;;  %v8924_v43 = vld [vmem:[%s11395_s4 + $0x100] sm:$0xff]  }
 0x3dd   : > { %8135 = vmatmul.mubr.msk.bf16.gmra.mrb[16].mxu1 %vm755_vm1, %v11497_v24  ;;  %v5445_v24 = vrot.slane %v10493_v6, 2  ;;  %v8915_v6 = vld [vmem:[%s11395_s4 + $0xf0] sm:$0xff]  }
 0x3de   : > { %8138 = vmatprep.mubr.msk.bf16.mxu1 %vm755_vm1, %v11498_v63  ;;  %v5447_v63 = vrot.slane %v10504_v15, 2  ;;  %v5449_v15 = vrot.slane %v10526_v51, 2  ;;  %v5453_v51 = vrot.slane %v10536_v25, 2 }
 0x3e0   : > { %v5448_v14 = vsel %vm1532_vm2, %v5445_v24, %v5447_v63  ;;  %v5450_v31 = vsel %vm1532_vm2, %v5447_v63, %v5449_v15  ;;  %v5457_v63 = vrot.slane %v10548_v11, 2 }
 0x3e5   : > { %8139 = vmatmul.mubr.msk.bf16.gmra.mrb[20].mxu1 %vm755_vm1, %v11499_v57  ;;  %v8910_v57 = vld [vmem:[%s11395_s4 + $0xe8] sm:$0xff]  }
 0x3e6   : > { %8142 = vmatprep.mubr.msk.bf16.mxu1 %vm755_vm1, %v11500_v45  ;;  %v5446_v45 = vsel %vm1532_vm2, %v5443_v36, %v5445_v24  ;;  %v8920_v36 = vld [vmem:[%s11395_s4 + $0xf8] sm:$0xff]  }
 0x3ed   : > { %8143 = vmatmul.mubr.msk.bf16.gmra.mrb[24].mxu1 %vm755_vm1, %v11502_v37  ;;  %v5455_v37 = vrot.slane %v10546_v27, 2  ;;  %v5461_v27 = vrot.slane %v10562_v21, 2 }
 0x3ee   : > { %8154 = vmatprep.mubr.msk.bf16.mxu1 %vm755_vm1, %v5444_v41  ;;  %v5454_v41 = vsel %vm1532_vm2, %v5451_v28, %v5453_v51 }
 0x3ef   : > { %v5456_v24 = vsel %vm1532_vm2, %v5453_v51, %v5455_v37 }
 0x3f5   : > { %8155 = vmatmul.mubr.msk.bf16.vlgmr.msra.gmra.mrb[28].mxu1 %vm755_vm1, %v5446_v45  ;;  %v5458_v45 = vsel %vm1532_vm2, %v5455_v37, %v5457_v63  ;;  %v8923_v37 = vld [vmem:[#allocation2 + $0xa0] ss:$0 sps:$4 sm:$0x33]  }
 0x3f6   : > { %8158 = vmatprep.mubr.msk.bf16.mxu1 %vm755_vm1, %v5448_v14  ;;  %8191 = vmatpush3.bf16.msra.mxu1 %v8904_v23  ;;  %v5452_v23 = vsel %vm1532_vm2, %v5449_v15, %v5451_v28  ;;  %v5463_v14 = vrot.slane %v10570_v0, 2  ;;  %v5467_v15 = vrot.slane %v10587_v54, 2  ;;  %v5469_v0 = vrot.slane %v10591_v17, 2 }
 0x3f7   : > { %8192 = vmatprep.subr.bf16.mxu1 %v8910_v57  ;;  %v5473_v54 = vrot.slane %v10607_v9, 2  ;;  %v8925_v9 = vld [vmem:[%s11395_s4 + $0x108] sm:$0xff]  }
 0x3f8   : > { %v5464_v11 = vsel %vm1532_vm2, %v5461_v27, %v5463_v14 }
 0x3fa   : > { %8193 = vmatpush3.bf16.msra.mxu1 %v8910_v57  ;;  %v5459_v57 = vrot.slane %v10553_v42, 2  ;;  %v5465_v42 = vrot.slane %v10581_v34, 2 }
 0x3fb   : > { %8194 = vmatprep.subr.bf16.mxu1 %v8915_v6 }
 0x3fc   : > { %v5460_v25 = vsel %vm1532_vm2, %v5457_v63, %v5459_v57  ;;  %v5466_v28 = vsel %vm1532_vm2, %v5463_v14, %v5465_v42  ;;  %v5468_v21 = vsel %vm1532_vm2, %v5465_v42, %v5467_v15  ;;  %v11505_v63 = vld [vmem:[#allocation32_spill] sm:$0xff]  ;;  %v11512_v42 = vld [vmem:[#allocation39_spill] sm:$0xff] }
 0x3fd   : > { %8159 = vmatmul.mubr.msk.bf16.gmra.mrb[32].mxu1 %vm755_vm1, %v5450_v31  ;;  %v5470_v31 = vsel %vm1532_vm2, %v5467_v15, %v5469_v0  ;;  %v11509_v14 = vld [vmem:[#allocation36_spill] sm:$0xff] }
 0x3fe   : > { %8162 = vmatprep.mubr.msk.bf16.mxu1 %vm755_vm1, %v5452_v23  ;;  %8195 = vmatpush3.bf16.msra.mxu1 %v8915_v6  ;;  %v5462_v6 = vsel %vm1532_vm2, %v5459_v57, %v5461_v27  ;;  %v5475_v23 = vrot.slane %v10618_v61, 2  ;;  %v11504_v61 = vld [vmem:[#allocation31_spill] sm:$0xff]  ;;  %v11507_v27 = vld [vmem:[#allocation34_spill] sm:$0xff]  ;;  %v11513_v15 = vld [vmem:[#allocation40_spill] sm:$0xff] }
 0x3ff   : > { %8196 = vmatprep.subr.bf16.mxu1 %v8920_v36  ;;  %v8926_v57 = vld [vmem:[%s11395_s4 + $0x110] sm:$0xff]  }
 0x400   : > { %v5476_v17 = vsel %vm1532_vm2, %v5473_v54, %v5475_v23 }
 0x402   : > { %8197 = vmatpush3.bf16.msra.mxu1 %v8920_v36  ;;  %v5471_v36 = vrot.slane %v10601_v18, 2  ;;  %v5477_v18 = vrot.slane %v8923_v37, 2 }
 0x403   : > { %8234 = vmatprep.subr.bf16.mxu1 %v8924_v43 }
 0x404   : > { %v5472_v34 = vsel %vm1532_vm2, %v5469_v0, %v5471_v36  ;;  %v5474_v51 = vsel %vm1532_vm2, %v5471_v36, %v5473_v54 }
 0x405   : > { %8163 = vmatmul.mubr.msk.bf16.gmra.mrb[0].mxu1 %vm755_vm1, %v5454_v41  ;;  %v5478_v41 = vsel %vm1532_vm2, %v5475_v23, %v5477_v18 }
 0x406   : > { %8166 = vmatprep.mubr.msk.bf16.mxu1 %vm755_vm1, %v5456_v24  ;;  %v11503_v24 = vld [vmem:[#allocation30_spill] sm:$0xff] }
 0x40d   : > { %8167 = vmatmul.mubr.msk.bf16.gmra.mrb[4].mxu1 %vm755_vm1, %v5458_v45  ;;  %v8927_v45 = vld [vmem:[%s11395_s4 + $0x118] sm:$0xff]  }
 0x40e   : > { %8170 = vmatprep.mubr.msk.bf16.mxu1 %vm755_vm1, %v5460_v25  ;;  %v11506_v25 = vld [vmem:[#allocation33_spill] sm:$0xff] }
 0x415   : > { %8171 = vmatmul.mubr.msk.bf16.gmra.mrb[8].mxu1 %vm755_vm1, %v5462_v6  ;;  %v11510_v6 = vld [vmem:[#allocation37_spill] sm:$0xff] }
 0x416   : > { %8174 = vmatprep.mubr.msk.bf16.mxu1 %vm755_vm1, %v5464_v11  ;;  %v11511_v11 = vld [vmem:[#allocation38_spill] sm:$0xff] }
 0x41d   : > { %8175 = vmatmul.mubr.msk.bf16.gmra.mrb[12].mxu1 %vm755_vm1, %v5466_v28  ;;  %v6593_v28 = vld [vmem:[%s9019_s16 + $0x40] ss:$8 sps:$4 sm:$0xff]  }
 0x41e   : > { %8178 = vmatprep.mubr.msk.bf16.mxu1 %vm755_vm1, %v5468_v21 }
 0x425   : > { %8179 = vmatmul.mubr.msk.bf16.gmra.mrb[16].mxu1 %vm755_vm1, %v5470_v31 }
 0x426   : > { %8182 = vmatprep.mubr.msk.bf16.mxu1 %vm755_vm1, %v5472_v34 }
 0x42d   : > { %8183 = vmatmul.mubr.msk.bf16.gmra.mrb[20].mxu1 %vm755_vm1, %v5474_v51  ;;  %v11149_v51 = vld [vmem:[%s11397_s6] ss:$0 sm:$0xff] }
 0x42e   : > { %8186 = vmatprep.mubr.msk.bf16.mxu1 %vm755_vm1, %v5476_v17 }
 0x435   : > { %8187 = vmatmul.mubr.msk.bf16.gmra.mrb[24].mxu1 %vm755_vm1, %v5478_v41  ;;  %v6592_v41 = vld [vmem:[%s9019_s16 + $0x38] ss:$24 sps:$4 sm:$0xff]  }
 0x436   : > { %8198 = vmatprep.mubr.msk.bf16.mxu1 %vm755_vm1, %v11503_v24 }
 0x43d   : > { %8199 = vmatmul.mubr.msk.bf16.vlgmr.msra.gmra.mrb[28].mxu1 %vm755_vm1, %v11504_v61 }
 0x43e   : > { %8202 = vmatprep.mubr.msk.bf16.mxu1 %vm755_vm1, %v11505_v63  ;;  %8235 = vmatpush3.bf16.msra.mxu1 %v8924_v43  ;;  %v11508_v43 = vld [vmem:[#allocation35_spill] sm:$0xff] }
 0x43f   : > { %8236 = vmatprep.subr.bf16.mxu1 %v8925_v9 }
 0x442   : > { %8237 = vmatpush3.bf16.msra.mxu1 %v8925_v9 }
 0x443   : > { %8238 = vmatprep.subr.bf16.mxu1 %v8926_v57 }
 0x445   : > { %8203 = vmatmul.mubr.msk.bf16.gmra.mrb[32].mxu1 %vm755_vm1, %v11506_v25 }
 0x446   : > { %8206 = vmatprep.mubr.msk.bf16.mxu1 %vm755_vm1, %v11507_v27  ;;  %8239 = vmatpush3.bf16.msra.mxu1 %v8926_v57  ;;  %v6597_v27 = vld [vmem:[%s9019_s16 + $0x60] ss:$8 sps:$4 sm:$0xff]  }
 0x447   : > { %8240 = vmatprep.subr.bf16.mxu1 %v8927_v45 }
 0x44a   : > { %8241 = vmatpush3.bf16.msra.mxu1 %v8927_v45 }
 0x44d   : > { %8207 = vmatmul.mubr.msk.bf16.gmra.mrb[0].mxu1 %vm755_vm1, %v11508_v43 }
 0x44e   : > { %8210 = vmatprep.mubr.msk.bf16.mxu1 %vm755_vm1, %v11509_v14 }
 0x455   : > { %8211 = vmatmul.mubr.msk.bf16.gmra.mrb[4].mxu1 %vm755_vm1, %v11510_v6  ;;  %v6629_v6 = vunpack.c.l.bf16 %v6592_v41 }
 0x456   : > { %8214 = vmatprep.mubr.msk.bf16.mxu1 %vm755_vm1, %v11511_v11 }
 0x45d   : > { %8215 = vmatmul.mubr.msk.bf16.gmra.mrb[8].mxu1 %vm755_vm1, %v11512_v42 }
 0x45e   : > { %8218 = vmatprep.mubr.msk.bf16.mxu1 %vm755_vm1, %v11513_v15  ;;  %v6632_v15 = vunpack.c.h.bf16 %v6592_v41 }
 0x465   : > { %8219 = vmatmul.mubr.msk.bf16.gmra.mrb[12].mxu1 %vm755_vm1, %v10636_v58  ;;  %v11514_v58 = vld [vmem:[#allocation41_spill] sm:$0xff] }
 0x466   : > { %8222 = vmatprep.mubr.msk.bf16.mxu1 %vm755_vm1, %v10640_v32  ;;  %v11515_v32 = vld [vmem:[#allocation42_spill] sm:$0xff] }
 0x46d   : > { %8223 = vmatmul.mubr.msk.bf16.gmra.mrb[16].mxu1 %vm755_vm1, %v10649_v2  ;;  %v11516_v2 = vld [vmem:[#allocation43_spill] sm:$0xff] }
 0x46e   : > { %8226 = vmatprep.mubr.msk.bf16.mxu1 %vm755_vm1, %v10654_v50  ;;  %v11517_v50 = vld [vmem:[#allocation44_spill] sm:$0xff] }
 0x475   : > { %8227 = vmatmul.mubr.msk.bf16.gmra.mrb[20].mxu1 %vm755_vm1, %v10663_v62  ;;  %v11518_v62 = vld [vmem:[#allocation45_spill] sm:$0xff] }
 0x476   : > { %8230 = vmatprep.mubr.msk.bf16.mxu1 %vm755_vm1, %v10674_v56  ;;  %v11519_v56 = vld [vmem:[#allocation46_spill] sm:$0xff] }
 0x47d   : > { %8231 = vmatmul.mubr.msk.bf16.gmra.mrb[24].mxu1 %vm755_vm1, %v10684_v13  ;;  %v6587_v13 = vld [vmem:[%s9019_s16 + $0x10] sm:$0xe] }
 0x47e   : > { %8242 = vmatprep.mubr.msk.bf16.mxu1 %vm755_vm1, %v10677_v10  ;;  %v11520_v10 = vld [vmem:[#allocation47_spill] sm:$0xff] }
 0x485   : > { %8243 = vmatmul.mubr.msk.bf16.vlgmr.msra.gmra.mrb[28].mxu1 %vm755_vm1, %v10680_v52  ;;  %v6589_v52 = vld [vmem:[%s9019_s16 + $0x20] ss:$8 sps:$4 sm:$0xff]  }
 0x486   : > { %8246 = vmatprep.mubr.msk.bf16.mxu1 %vm755_vm1, %v10687_v53  ;;  %v6588_v53 = vld [vmem:[%s9019_s16 + $0x18] ss:$24 sps:$4 sm:$0xff]  }
 0x487   : > { %v6628_v21 = vunpack.c.h.bf16 %v6588_v53 }
 0x489   : > { %v6792_v18 = vrot.slane %v6628_v21, 3 }
 0x48d   : > { %8247 = vmatmul.mubr.msk.bf16.gmra.mrb[32].mxu1 %vm755_vm1, %v11514_v58 }
 0x48e   : > { %8250 = vmatprep.mubr.msk.bf16.mxu1 %vm755_vm1, %v11515_v32 }
 0x495   : > { %8251 = vmatmul.mubr.msk.bf16.gmra.mrb[0].mxu1 %vm755_vm1, %v11516_v2  ;;  %v6634_v2 = vunpack.c.l.bf16 %v6597_v27 }
 0x496   : > { %8254 = vmatprep.mubr.msk.bf16.mxu1 %vm755_vm1, %v10709_v44  ;;  %v6627_v44 = vunpack.c.h.bf16 %v6589_v52 }
 0x498   : > { %v6790_v0 = vrot.slane %v6627_v44, 3 }
 0x49d   : > { %8255 = vmatmul.mubr.msk.bf16.gmra.mrb[4].mxu1 %vm755_vm1, %v10712_v40  ;;  %v6624_v40 = vunpack.c.l.bf16 %v6587_v13 }
 0x49e   : > { %8258 = vmatprep.mubr.msk.bf16.mxu1 %vm755_vm1, %v10715_v39  ;;  %v6625_v39 = vunpack.c.l.bf16 %v6588_v53 }
 0x49f   : > { %v6785_v54 = vrot.slane %v6624_v40, 3  ;;  %v6794_v40 = vrot.slane %v6629_v6, 3 }
 0x4a0   : > { %v6786_v23 = vrot.slane %v6625_v39, 3 }
 0x4a2   : > { %v6787_v43 = vsel %vm6258_vm15, %v6785_v54, %v6786_v23 }
 0x4a5   : > { %8259 = vmatmul.mubr.msk.bf16.gmra.mrb[8].mxu1 %vm755_vm1, %v10721_v48  ;;  %v6626_v48 = vunpack.c.l.bf16 %v6589_v52  ;;  %v6635_v52 = vunpack.c.h.bf16 %v6597_v27 }
 0x4a6   : > { %8262 = vmatprep.mubr.msk.bf16.mxu1 %vm755_vm1, %v11517_v50 }
 0x4ad   : > { %8263 = vmatmul.mubr.msk.bf16.gmra.mrb[12].mxu1 %vm755_vm1, %v11518_v62 }
 0x4ae   : > { %8266 = vmatprep.mubr.msk.bf16.mxu1 %vm755_vm1, %v11519_v56 }
 0x4b5   : > { %8267 = vmatmul.mubr.msk.bf16.gmra.mrb[16].mxu1 %vm755_vm1, %v11520_v10 }
 0x4b6   : > { %8270 = vmatprep.mubr.msk.bf16.mxu1 %vm755_vm1, %v10748_v19  ;;  %v6788_v19 = vrot.slane %v6626_v48, 3 }
 0x4b8   : > { %v6791_v9 = vsel %vm6258_vm15, %v6788_v19, %v6790_v0  ;;  %v6789_v32 = vsel %vm6258_vm15, %v6786_v23, %v6788_v19 }
 0x4bd   : > { %8271 = vmatmul.mubr.msk.bf16.gmra.mrb[20].mxu1 %vm755_vm1, %v10751_v20  ;;  %v6631_v20 = vunpack.c.h.bf16 %v6593_v28 }
 0x4be   : > { %8274 = vmatprep.mubr.msk.bf16.mxu1 %vm755_vm1, %v10754_v60  ;;  %v11143_v60 = vld [vmem:[%s11396_s5] ss:$0 sm:$0xff] }
 0x4bf   : > { %v6798_v25 = vrot.slane %v6631_v20, 3 }
 0x4c5   : > { %8275 = vmatmul.mubr.msk.bf16.gmra.mrb[24].mxu1 %vm755_vm1, %v10758_v26  ;;  %v6630_v26 = vunpack.c.l.bf16 %v6593_v28 }
 0x4c7   : > { %v6796_v45 = vrot.slane %v6630_v26, 3 }
 0x4c9   : > { %v6799_v10 = vsel %vm6258_vm15, %v6796_v45, %v6798_v25 }
 0x558   : > { %v8244_v36 = vpop.f32.mrb[28].mxu1 }
 0x559   : > { %v8286_v31 = vadd.f32 %v8244_v36, %v10938_v46  ;;  %v6408_v34 = vpop.f32.mrb[29].mxu1  ;;  %v6596_v36 = vld [vmem:[%s9019_s16 + $0x58] ss:$24 sps:$4 sm:$0xff]  }
 0x55a   : > { %v8287_v37 = vadd.f32 %v6408_v34, %v10941_v33  ;;  %v8245_v17 = vpop.f32.mrb[30].mxu1  ;;  %v6804_v34 = vrot.slane %v6634_v2, 3 }
 0x55b   : > { %v6670_v24 = vmul.f32 %v8286_v31, %v11143_v60  ;;  %v8288_v46 = vadd.f32 %v8245_v17, %v10945_v8  ;;  %v6411_v61 = vpop.f32.mrb[31].mxu1  ;;  %v6793_v8 = vsel %vm6258_vm15, %v6790_v0, %v6792_v18  ;;  %v6800_v0 = vrot.slane %v6632_v15, 3  ;;  %v6601_v17 = vld [vmem:[%s9019_s16 + $0x80] ss:$8 sps:$4 sm:$0xff]  }
 0x55c   : > { %v6668_v63 = vmul.f32 %v8287_v37, %v11143_v60  ;;  %v8289_v57 = vadd.f32 %v6411_v61, %v10948_v55  ;;  %v6806_v37 = vrot.slane %v6635_v52, 3 }
 0x55d   : > { %v6713_v33 = vadd.f32 %v11149_v51, %v6670_v24  ;;  %v6671_v14 = vmul.f32 %v8288_v46, %v11143_v60  ;;  %v6795_v24 = vsel %vm6258_vm15, %v6792_v18, %v6794_v40  ;;  %v6801_v61 = vsel %vm6258_vm15, %v6798_v25, %v6800_v0 }
 0x55e   : > { %v6711_v11 = vadd.f32 %v11149_v51, %v6668_v63  ;;  %v6669_v42 = vmul.f32 %v8289_v57, %v11143_v60 }
 0x55f   : > { %v6896_v58 = vadd.f32 %v6791_v9, %v6713_v33  ;;  %v6714_v55 = vadd.f32 %v11149_v51, %v6671_v14  ;;  %v6797_v33 = vsel %vm6258_vm15, %v6794_v40, %v6796_v45 }
 0x560   : > { %v6894_v50 = vadd.f32 %v6787_v43, %v6711_v11  ;;  %v6712_v62 = vadd.f32 %v11149_v51, %v6669_v42  ;;  %v8248_v56 = vpop.f32.mrb[32].mxu1  ;;  %v6638_v43 = vunpack.c.l.bf16 %v6601_v17  ;;  %v6807_v11 = vsel %vm6258_vm15, %v6804_v34, %v6806_v37 }
 0x561   : > { %v6932_v13 = vmax.f32 %v6896_v58, 0.0  ;;  %v6897_v53 = vadd.f32 %v6793_v8, %v6714_v55  ;;  %v8290_v48 = vadd.f32 %v8248_v56, %v10953_v16  ;;  %v6424_v44 = vpop.f32.mrb[33].mxu1  ;;  %v6639_v8 = vunpack.c.h.bf16 %v6601_v17  ;;  %v6600_v56 = vld [vmem:[%s9019_s16 + $0x78] ss:$24 sps:$4 sm:$0xff]  }
 0x562   : > { %v6930_v39 = vmax.f32 %v6894_v50, 0.0  ;;  %v6895_v28 = vadd.f32 %v6789_v32, %v6712_v62  ;;  %v8291_v21 = vadd.f32 %v6424_v44, %v10958_v12  ;;  %v8249_v19 = vpop.f32.mrb[34].mxu1 }
 0x563   : > { %6968 = vst.msk [vmem:[%s11171_s12 + $0x10] sm:$0xff] %vm755_vm1, %v6932_v13  ;;  %v6933_v26 = vmax.f32 %v6897_v53, 0.0  ;;  %v6674_v20 = vmul.f32 %v8290_v48, %v11143_v60  ;;  %v8292_v31 = vadd.f32 %v8249_v19, %v10961_v49  ;;  %v6427_v16 = vpop.f32.mrb[35].mxu1  ;;  %v6633_v49 = vunpack.c.l.bf16 %v6596_v36  ;;  %v11521_v13 = vld [vmem:[#allocation48_spill] sm:$0xff] }
 0x564   : > { %6966 = vst.msk [vmem:[%s11171_s12] sm:$0xff] %vm755_vm1, %v6930_v39  ;;  %v6931_v54 = vmax.f32 %v6895_v28, 0.0  ;;  %v6672_v23 = vmul.f32 %v8291_v21, %v11143_v60  ;;  %v8293_v12 = vadd.f32 %v6427_v16, %v10965_v38  ;;  %v6636_v38 = vunpack.c.h.bf16 %v6596_v36  ;;  %v6605_v21 = vld [vmem:[%s9019_s16 + $0xa0] ss:$8 sps:$4 sm:$0xff]  }
 0x565   : > { %6969 = vst.msk [vmem:[%s11171_s12 + $0x18] sm:$0xff] %vm755_vm1, %v6933_v26  ;;  %v6717_v41 = vadd.f32 %v11149_v51, %v6674_v20  ;;  %v6675_v9 = vmul.f32 %v8292_v31, %v11143_v60  ;;  %v6802_v55 = vrot.slane %v6633_v49, 3  ;;  %v6812_v48 = vrot.slane %v6638_v43, 3 }
 0x566   : > { %6967 = vst.msk [vmem:[%s11171_s12 + $0x8] sm:$0xff] %vm755_vm1, %v6931_v54  ;;  %v6715_v46 = vadd.f32 %v11149_v51, %v6672_v23  ;;  %v6673_v63 = vmul.f32 %v8293_v12, %v11143_v60  ;;  %v6808_v62 = vrot.slane %v6636_v38, 3  ;;  %v6814_v28 = vrot.slane %v6639_v8, 3 }
 0x567   : > { %v6900_v57 = vadd.f32 %v6799_v10, %v6717_v41  ;;  %v6718_v27 = vadd.f32 %v11149_v51, %v6675_v9  ;;  %v6803_v36 = vsel %vm6258_vm15, %v6800_v0, %v6802_v55  ;;  %v6637_v20 = vunpack.c.l.bf16 %v6600_v56 }
 0x568   : > { %v6898_v18 = vadd.f32 %v6795_v24, %v6715_v46  ;;  %v6716_v14 = vadd.f32 %v11149_v51, %v6673_v63  ;;  %v8252_v6 = vpop.f32.mrb[0].mxu1  ;;  %v6809_v16 = vsel %vm6258_vm15, %v6806_v37, %v6808_v62  ;;  %v6640_v23 = vunpack.c.h.bf16 %v6600_v56 }
 0x569   : > { %v6936_v42 = vmax.f32 %v6900_v57, 0.0  ;;  %v6901_v25 = vadd.f32 %v6801_v61, %v6718_v27  ;;  %v8294_v15 = vadd.f32 %v8252_v6, %v10791_v5  ;;  %v6440_v58 = vpop.f32.mrb[1].mxu1  ;;  %v6805_v41 = vsel %vm6258_vm15, %v6802_v55, %v6804_v34  ;;  %v6604_v6 = vld [vmem:[%s9019_s16 + $0x98] ss:$24 sps:$4 sm:$0xff]  }
 0x56a   : > { %v6934_v32 = vmax.f32 %v6898_v18, 0.0  ;;  %v6899_v2 = vadd.f32 %v6797_v33, %v6716_v14  ;;  %v8295_v45 = vadd.f32 %v6440_v58, %v10794_v4  ;;  %v8253_v50 = vpop.f32.mrb[2].mxu1  ;;  %v11522_v4 = vld [vmem:[#allocation49_spill] sm:$0xff]  ;;  %v6642_v24 = vunpack.c.l.bf16 %v6605_v21 }
 0x56b   : > { %6972 = vst.msk [vmem:[%s11171_s12 + $0x30] sm:$0xff] %vm755_vm1, %v6936_v42  ;;  %v6937_v10 = vmax.f32 %v6901_v25, 0.0  ;;  %v6678_v52 = vmul.f32 %v8294_v15, %v11143_v60  ;;  %v8296_v53 = vadd.f32 %v8253_v50, %v11521_v13  ;;  %v6443_v5 = vpop.f32.mrb[3].mxu1  ;;  %v6815_v46 = vsel %vm6258_vm15, %v6812_v48, %v6814_v28 }
 0x56c   : > { %6970 = vst.msk [vmem:[%s11171_s12 + $0x20] sm:$0xff] %vm755_vm1, %v6934_v32  ;;  %v6935_v44 = vmax.f32 %v6899_v2, 0.0  ;;  %v6676_v40 = vmul.f32 %v8295_v45, %v11143_v60  ;;  %v8297_v39 = vadd.f32 %v6443_v5, %v11522_v4  ;;  %v6643_v61 = vunpack.c.h.bf16 %v6605_v21  ;;  %v6609_v2 = vld [vmem:[%s9019_s16 + $0xc0] ss:$8 sps:$4 sm:$0xff]  }
 0x56d   : > { %6973 = vst.msk [vmem:[%s11171_s12 + $0x38] sm:$0xff] %vm755_vm1, %v6937_v10  ;;  %v6721_v19 = vadd.f32 %v11149_v51, %v6678_v52  ;;  %v6679_v26 = vmul.f32 %v8296_v53, %v11143_v60  ;;  %v6810_v27 = vrot.slane %v6637_v20, 3  ;;  %v6816_v14 = vrot.slane %v6640_v23, 3 }
 0x56e   : > { %6971 = vst.msk [vmem:[%s11171_s12 + $0x28] sm:$0xff] %vm755_vm1, %v6935_v44  ;;  %v6719_v31 = vadd.f32 %v11149_v51, %v6676_v40  ;;  %v6677_v54 = vmul.f32 %v8297_v39, %v11143_v60  ;;  %v6820_v25 = vrot.slane %v6642_v24, 3  ;;  %v6822_v32 = vrot.slane %v6643_v61, 3 }
 0x56f   : > { %v6904_v12 = vadd.f32 %v6807_v11, %v6721_v19  ;;  %v6722_v17 = vadd.f32 %v11149_v51, %v6679_v26  ;;  %v6811_v50 = vsel %vm6258_vm15, %v6808_v62, %v6810_v27  ;;  %v6817_v52 = vsel %vm6258_vm15, %v6814_v28, %v6816_v14 }
 0x570   : > { %v6902_v0 = vadd.f32 %v6803_v36, %v6719_v31  ;;  %v6720_v9 = vadd.f32 %v11149_v51, %v6677_v54  ;;  %v8256_v49 = vpop.f32.mrb[4].mxu1  ;;  %v6644_v53 = vunpack.c.h.bf16 %v6604_v6  ;;  %v6813_v40 = vsel %vm6258_vm15, %v6810_v27, %v6812_v48 }
 0x571   : > { %v6940_v63 = vmax.f32 %v6904_v12, 0.0  ;;  %v6905_v37 = vadd.f32 %v6809_v16, %v6722_v17  ;;  %v8298_v38 = vadd.f32 %v8256_v49, %v10817_v1  ;;  %v6456_v57 = vpop.f32.mrb[5].mxu1  ;;  %v6646_v4 = vunpack.c.l.bf16 %v6609_v2 }
 0x572   : > { %v6938_v33 = vmax.f32 %v6902_v0, 0.0  ;;  %v6903_v43 = vadd.f32 %v6805_v41, %v6720_v9  ;;  %v8299_v34 = vadd.f32 %v6456_v57, %v10821_v35  ;;  %v8257_v18 = vpop.f32.mrb[6].mxu1  ;;  %v11523_v35 = vld [vmem:[#allocation50_spill] sm:$0xff]  ;;  %v6823_v19 = vsel %vm6258_vm15, %v6820_v25, %v6822_v32  ;;  %v6608_v41 = vld [vmem:[%s9019_s16 + $0xb8] ss:$24 sps:$4 sm:$0xff]  }
 0x573   : > { %6976 = vst.msk [vmem:[%s11171_s12 + $0x50] sm:$0xff] %vm755_vm1, %v6940_v63  ;;  %v6941_v11 = vmax.f32 %v6905_v37, 0.0  ;;  %v6682_v8 = vmul.f32 %v8298_v38, %v11143_v60  ;;  %v8300_v42 = vadd.f32 %v8257_v18, %v10825_v29  ;;  %v6459_v1 = vpop.f32.mrb[7].mxu1  ;;  %v6641_v29 = vunpack.c.l.bf16 %v6604_v6  ;;  %v6613_v37 = vld [vmem:[%s9019_s16 + $0xe0] ss:$8 sps:$4 sm:$0xff]  }
 0x574   : > { %6974 = vst.msk [vmem:[%s11171_s12 + $0x40] sm:$0xff] %vm755_vm1, %v6938_v33  ;;  %v6939_v15 = vmax.f32 %v6903_v43, 0.0  ;;  %v6680_v58 = vmul.f32 %v8299_v34, %v11143_v60  ;;  %v8301_v55 = vadd.f32 %v6459_v1, %v11523_v35  ;;  %v6647_v36 = vunpack.c.h.bf16 %v6609_v2 }
 0x575   : > { %6977 = vst.msk [vmem:[%s11171_s12 + $0x58] sm:$0xff] %vm755_vm1, %v6941_v11  ;;  %v6725_v45 = vadd.f32 %v11149_v51, %v6682_v8  ;;  %v6683_v56 = vmul.f32 %v8300_v42, %v11143_v60  ;;  %v6818_v16 = vrot.slane %v6641_v29, 3  ;;  %v6824_v17 = vrot.slane %v6644_v53, 3 }
 0x576   : > { %6975 = vst.msk [vmem:[%s11171_s12 + $0x48] sm:$0xff] %vm755_vm1, %v6939_v15  ;;  %v6723_v10 = vadd.f32 %v11149_v51, %v6680_v58  ;;  %v6681_v13 = vmul.f32 %v8301_v55, %v11143_v60  ;;  %v6828_v49 = vrot.slane %v6646_v4, 3  ;;  %v6830_v63 = vrot.slane %v6647_v36, 3 }
 0x577   : > { %v6908_v5 = vadd.f32 %v6815_v46, %v6725_v45  ;;  %v6726_v44 = vadd.f32 %v11149_v51, %v6683_v56  ;;  %v6819_v57 = vsel %vm6258_vm15, %v6816_v14, %v6818_v16  ;;  %v6825_v43 = vsel %vm6258_vm15, %v6822_v32, %v6824_v17 }
 0x578   : > { %v6906_v62 = vadd.f32 %v6811_v50, %v6723_v10  ;;  %v6724_v39 = vadd.f32 %v11149_v51, %v6681_v13  ;;  %v8260_v21 = vpop.f32.mrb[8].mxu1  ;;  %v6821_v11 = vsel %vm6258_vm15, %v6818_v16, %v6820_v25  ;;  %v6650_v8 = vunpack.c.l.bf16 %v6613_v37  ;;  %v11524_v25 = vld [vmem:[#allocation3_spill] sm:$0xff] }
 0x579   : > { %v6944_v26 = vmax.f32 %v6908_v5, 0.0  ;;  %v6909_v28 = vadd.f32 %v6817_v52, %v6726_v44  ;;  %v8302_v20 = vadd.f32 %v8260_v21, %v10850_v47  ;;  %v6472_v31 = vpop.f32.mrb[9].mxu1  ;;  %v6831_v15 = vsel %vm6258_vm15, %v6828_v49, %v6830_v63  ;;  %v6612_v13 = vld [vmem:[%s9019_s16 + $0xd8] ss:$24 sps:$4 sm:$0xff]   ;;  %v11526_v21 = vld [vmem:[#allocation5_spill] sm:$0xff] }
 0x57a   : > { %v6942_v54 = vmax.f32 %v6906_v62, 0.0  ;;  %v6907_v23 = vadd.f32 %v6813_v40, %v6724_v39  ;;  %v8303_v48 = vadd.f32 %v6472_v31, %v10852_v30  ;;  %v8261_v12 = vpop.f32.mrb[10].mxu1  ;;  %v6651_v58 = vunpack.c.h.bf16 %v6613_v37  ;;  %v11525_v44 = vld [vmem:[#allocation4_spill] sm:$0xff] }
 0x57b   : > { %6980 = vst.msk [vmem:[%s11171_s12 + $0x70] sm:$0xff] %vm755_vm1, %v6944_v26  ;;  %v6945_v24 = vmax.f32 %v6909_v28, 0.0  ;;  %v6686_v0 = vmul.f32 %v8302_v20, %v11143_v60  ;;  %v8304_v9 = vadd.f32 %v8261_v12, %v10854_v3  ;;  %v6475_v47 = vpop.f32.mrb[11].mxu1  ;;  %v6645_v3 = vunpack.c.l.bf16 %v6608_v41  ;;  %v6617_v26 = vld [vmem:[%s9019_s16 + $0x100] ss:$8 sps:$4 sm:$0xff]  }
 0x57c   : > { %6978 = vst.msk [vmem:[%s11171_s12 + $0x60] sm:$0xff] %vm755_vm1, %v6942_v54  ;;  %v6943_v46 = vmax.f32 %v6907_v23, 0.0  ;;  %v6684_v61 = vmul.f32 %v8303_v48, %v11143_v60  ;;  %v8305_v30 = vadd.f32 %v6475_v47, %v10856_v22  ;;  %v6648_v22 = vunpack.c.h.bf16 %v6608_v41 }
 0x57d   : > { %6981 = vst.msk [vmem:[%s11171_s12 + $0x78] sm:$0xff] %vm755_vm1, %v6945_v24  ;;  %v6729_v38 = vadd.f32 %v11149_v51, %v6686_v0  ;;  %v6687_v27 = vmul.f32 %v8304_v9, %v11143_v60  ;;  %v6826_v45 = vrot.slane %v6645_v3, 3  ;;  %v6836_v4 = vrot.slane %v6650_v8, 3 }
 0x57e   : > { %6979 = vst.msk [vmem:[%s11171_s12 + $0x68] sm:$0xff] %vm755_vm1, %v6943_v46  ;;  %v6727_v33 = vadd.f32 %v11149_v51, %v6684_v61  ;;  %v6685_v34 = vmul.f32 %v8305_v30, %v11143_v60  ;;  %v6832_v52 = vrot.slane %v6648_v22, 3  ;;  %v6838_v36 = vrot.slane %v6651_v58, 3 }
 0x57f   : > { %v6912_v18 = vadd.f32 %v6823_v19, %v6729_v38  ;;  %v6730_v6 = vadd.f32 %v11149_v51, %v6687_v27  ;;  %v6827_v20 = vsel %vm6258_vm15, %v6824_v17, %v6826_v45  ;;  %v6649_v16 = vunpack.c.l.bf16 %v6612_v13  ;;  %v11527_v38 = vld [vmem:[#allocation6_spill] sm:$0xff] }
 0x580   : > { %v6910_v14 = vadd.f32 %v6819_v57, %v6727_v33  ;;  %v6728_v42 = vadd.f32 %v11149_v51, %v6685_v34  ;;  %v8264_v1 = vpop.f32.mrb[12].mxu1  ;;  %v6833_v23 = vsel %vm6258_vm15, %v6830_v63, %v6832_v52  ;;  %v6652_v12 = vunpack.c.h.bf16 %v6612_v13 }
 0x581   : > { %v6948_v35 = vmax.f32 %v6912_v18, 0.0  ;;  %v6913_v55 = vadd.f32 %v6825_v43, %v6730_v6  ;;  %v8306_v32 = vadd.f32 %v8264_v1, %v10867_v7  ;;  %v6488_v2 = vpop.f32.mrb[13].mxu1  ;;  %v6829_v0 = vsel %vm6258_vm15, %v6826_v45, %v6828_v49  ;;  %v11528_v49 = vld [vmem:[#allocation7_spill] sm:$0xff] }
 0x582   : > { %v6946_v50 = vmax.f32 %v6910_v14, 0.0  ;;  %v6911_v56 = vadd.f32 %v6821_v11, %v6728_v42  ;;  %v8307_v29 = vadd.f32 %v6488_v2, %v11524_v25  ;;  %v8265_v10 = vpop.f32.mrb[14].mxu1  ;;  %v6654_v9 = vunpack.c.l.bf16 %v6617_v26  ;;  %v6616_v6 = vld [vmem:[%s9019_s16 + $0xf8] ss:$24 sps:$4 sm:$0xff]  }
 0x583   : > { %6984 = vst.msk [vmem:[%s11171_s12 + $0x90] sm:$0xff] %vm755_vm1, %v6948_v35  ;;  %v6949_v53 = vmax.f32 %v6913_v55, 0.0  ;;  %v6690_v5 = vmul.f32 %v8306_v32, %v11143_v60  ;;  %v8308_v40 = vadd.f32 %v8265_v10, %v11525_v44  ;;  %v6491_v7 = vpop.f32.mrb[15].mxu1  ;;  %v6839_v61 = vsel %vm6258_vm15, %v6836_v4, %v6838_v36  ;;  %v11529_v14 = vld [vmem:[#allocation8_spill] sm:$0xff]  ;;  %v11530_v55 = vld [vmem:[#allocation9_spill] sm:$0xff] }
 0x584   : > { %6982 = vst.msk [vmem:[%s11171_s12 + $0x80] sm:$0xff] %vm755_vm1, %v6946_v50  ;;  %v6947_v62 = vmax.f32 %v6911_v56, 0.0  ;;  %v6688_v39 = vmul.f32 %v8307_v29, %v11143_v60  ;;  %v8309_v19 = vadd.f32 %v6491_v7, %v11526_v21  ;;  %v6655_v30 = vunpack.c.h.bf16 %v6617_v26  ;;  %v6621_v21 = vld [vmem:[%s9019_s16 + $0x120] ss:$8 sps:$4 sm:$0xff]  }
 0x585   : > { %6985 = vst.msk [vmem:[%s11171_s12 + $0x98] sm:$0xff] %vm755_vm1, %v6949_v53  ;;  %v6733_v28 = vadd.f32 %v11149_v51, %v6690_v5  ;;  %v6691_v31 = vmul.f32 %v8308_v40, %v11143_v60  ;;  %v6834_v3 = vrot.slane %v6649_v16, 3  ;;  %v6840_v18 = vrot.slane %v6652_v12, 3  ;;  %v6620_v12 = vld [vmem:[%s9019_s16 + $0x118] sm:$0xf] }
 0x586   : > { %6983 = vst.msk [vmem:[%s11171_s12 + $0x88] sm:$0xff] %vm755_vm1, %v6947_v62  ;;  %v6731_v54 = vadd.f32 %v11149_v51, %v6688_v39  ;;  %v6689_v48 = vmul.f32 %v8309_v19, %v11143_v60  ;;  %v6846_v2 = vrot.slane %v6655_v30, 3  ;;  %v6653_v25 = vunpack.c.l.bf16 %v6616_v6  ;;  %v11533_v30 = vld [vmem:[#allocation12_spill] sm:$0xff] }
 0x587   : > { %v6916_v41 = vadd.f32 %v6831_v15, %v6733_v28  ;;  %v6734_v24 = vadd.f32 %v11149_v51, %v6691_v31  ;;  %v6844_v15 = vrot.slane %v6654_v9, 3  ;;  %v6835_v50 = vsel %vm6258_vm15, %v6832_v52, %v6834_v3 }
 0x588   : > { %v6914_v17 = vadd.f32 %v6827_v20, %v6731_v54  ;;  %v6732_v47 = vadd.f32 %v11149_v51, %v6689_v48  ;;  %v8268_v46 = vpop.f32.mrb[16].mxu1  ;;  %v6841_v10 = vsel %vm6258_vm15, %v6838_v36, %v6840_v18  ;;  %v6656_v53 = vunpack.c.h.bf16 %v6616_v6 }
 0x589   : > { %v6952_v37 = vmax.f32 %v6916_v41, 0.0  ;;  %v6917_v63 = vadd.f32 %v6833_v23, %v6734_v24  ;;  %v8310_v57 = vadd.f32 %v8268_v46, %v11527_v38  ;;  %v6504_v27 = vpop.f32.mrb[17].mxu1  ;;  %v6837_v40 = vsel %vm6258_vm15, %v6834_v3, %v6836_v4  ;;  %v11531_v4 = vld [vmem:[#allocation10_spill] sm:$0xff] }
 0x58a   : > { %v6950_v33 = vmax.f32 %v6914_v17, 0.0  ;;  %v6915_v43 = vadd.f32 %v6829_v0, %v6732_v47  ;;  %v8311_v34 = vadd.f32 %v6504_v27, %v11528_v49  ;;  %v8269_v22 = vpop.f32.mrb[18].mxu1  ;;  %v6847_v39 = vsel %vm6258_vm15, %v6844_v15, %v6846_v2  ;;  %v11532_v0 = vld [vmem:[#allocation11_spill] sm:$0xff] }
 0x58b   : > { %6988 = vst.msk [vmem:[%s11171_s12 + $0xb0] sm:$0xff] %vm755_vm1, %v6952_v37  ;;  %v6953_v11 = vmax.f32 %v6917_v63, 0.0  ;;  %v6694_v8 = vmul.f32 %v8310_v57, %v11143_v60  ;;  %v8312_v42 = vadd.f32 %v8269_v22, %v11529_v14  ;;  %v6507_v1 = vpop.f32.mrb[19].mxu1  ;;  %v6842_v20 = vrot.slane %v6653_v25, 3  ;;  %v6623_v47 = vld [vmem:[%s9019_s16 + $0x130] sm:$0x3] }
 0x58c   : > { %6986 = vst.msk [vmem:[%s11171_s12 + $0xa0] sm:$0xff] %vm755_vm1, %v6950_v33  ;;  %v6951_v58 = vmax.f32 %v6915_v43, 0.0  ;;  %v6692_v35 = vmul.f32 %v8311_v34, %v11143_v60  ;;  %v8313_v32 = vadd.f32 %v6507_v1, %v11530_v55  ;;  %v6848_v48 = vrot.slane %v6656_v53, 3  ;;  %v11534_v55 = vld [vmem:[#allocation13_spill] sm:$0xff]  ;;  %v11535_v25 = vld [vmem:[#allocation14_spill] sm:$0xff] }
 0x58d   : > { %6989 = vst.msk [vmem:[%s11171_s12 + $0xb8] sm:$0xff] %vm755_vm1, %v6953_v11  ;;  %v6737_v45 = vadd.f32 %v11149_v51, %v6694_v8  ;;  %v6695_v56 = vmul.f32 %v8312_v42, %v11143_v60  ;;  %v6658_v17 = vunpack.c.l.bf16 %v6621_v21  ;;  %v6659_v63 = vunpack.c.h.bf16 %v6621_v21 }
 0x58e   : > { %6987 = vst.msk [vmem:[%s11171_s12 + $0xa8] sm:$0xff] %vm755_vm1, %v6951_v58  ;;  %v6735_v29 = vadd.f32 %v11149_v51, %v6692_v35  ;;  %v6693_v13 = vmul.f32 %v8313_v32, %v11143_v60  ;;  %v6843_v57 = vsel %vm6258_vm15, %v6840_v18, %v6842_v20  ;;  %v6657_v3 = vunpack.c.l.bf16 %v6620_v12 }
 0x58f   : > { %v6920_v5 = vadd.f32 %v6839_v61, %v6737_v45  ;;  %v6738_v44 = vadd.f32 %v11149_v51, %v6695_v56  ;;  %v6849_v43 = vsel %vm6258_vm15, %v6846_v2, %v6848_v48  ;;  %v6660_v34 = vunpack.c.l.bf16 %v6623_v47 }
 0x590   : > { %v6918_v7 = vadd.f32 %v6835_v50, %v6735_v29  ;;  %v6736_v52 = vadd.f32 %v11149_v51, %v6693_v13  ;;  %v8272_v62 = vpop.f32.mrb[20].mxu1  ;;  %v6845_v11 = vsel %vm6258_vm15, %v6842_v20, %v6844_v15  ;;  %v6852_v42 = vrot.slane %v6658_v17, 3 }
 0x591   : > { %v6956_v19 = vmax.f32 %v6920_v5, 0.0  ;;  %v6921_v26 = vadd.f32 %v6841_v10, %v6738_v44  ;;  %v8314_v36 = vadd.f32 %v8272_v62, %v10899_v59  ;;  %v6520_v28 = vpop.f32.mrb[21].mxu1  ;;  %v6854_v1 = vrot.slane %v6659_v63, 3  ;;  %v11536_v5 = vld [vmem:[#allocation22_spill] sm:$0xff] }
 0x592   : > { %v6954_v31 = vmax.f32 %v6918_v7, 0.0  ;;  %v6919_v16 = vadd.f32 %v6837_v40, %v6736_v52  ;;  %v8315_v54 = vadd.f32 %v6520_v28, %v11531_v4  ;;  %v8273_v23 = vpop.f32.mrb[22].mxu1  ;;  %v6850_v45 = vrot.slane %v6657_v3, 3 }
 0x593   : > { %6992 = vst.msk [vmem:[%s11171_s12 + $0xd0] sm:$0xff] %vm755_vm1, %v6956_v19  ;;  %v6957_v41 = vmax.f32 %v6921_v26, 0.0  ;;  %v6698_v24 = vmul.f32 %v8314_v36, %v11143_v60  ;;  %v8316_v9 = vadd.f32 %v8273_v23, %v11532_v0  ;;  %v6523_v59 = vpop.f32.mrb[23].mxu1  ;;  %v6856_v10 = vrot.slane %v6660_v34, 3 }
 0x594   : > { %6990 = vst.msk [vmem:[%s11171_s12 + $0xc0] sm:$0xff] %vm755_vm1, %v6954_v31  ;;  %v6955_v46 = vmax.f32 %v6919_v16, 0.0  ;;  %v6696_v61 = vmul.f32 %v8315_v54, %v11143_v60  ;;  %v8317_v37 = vadd.f32 %v6523_v59, %v11533_v30  ;;  %v6855_v52 = vsel %vm6258_vm15, %v6852_v42, %v6854_v1 }
 0x595   : > { %6993 = vst.msk [vmem:[%s11171_s12 + $0xd8] sm:$0xff] %vm755_vm1, %v6957_v41  ;;  %v6741_v38 = vadd.f32 %v11149_v51, %v6698_v24  ;;  %v6699_v27 = vmul.f32 %v8316_v9, %v11143_v60  ;;  %v6851_v26 = vsel %vm6258_vm15, %v6848_v48, %v6850_v45  ;;  %v6857_v20 = vsel %vm6258_vm15, %v6854_v1, %v6856_v10 }
 0x596   : > { %6991 = vst.msk [vmem:[%s11171_s12 + $0xc8] sm:$0xff] %vm755_vm1, %v6955_v46  ;;  %v6739_v33 = vadd.f32 %v11149_v51, %v6696_v61  ;;  %v6697_v49 = vmul.f32 %v8317_v37, %v11143_v60  ;;  %v6853_v54 = vsel %vm6258_vm15, %v6850_v45, %v6852_v42 }
 0x597   : > { %v6924_v22 = vadd.f32 %v6847_v39, %v6741_v38  ;;  %v6742_v6 = vadd.f32 %v11149_v51, %v6699_v27  ;;  %v11537_v39 = vld [vmem:[#allocation15_spill] sm:$0xff] }
 0x598   : > { %v6922_v8 = vadd.f32 %v6843_v57, %v6739_v33  ;;  %v6740_v18 = vadd.f32 %v11149_v51, %v6697_v49  ;;  %v8276_v14 = vpop.f32.mrb[24].mxu1 }
 0x599   : > { %v6960_v58 = vmax.f32 %v6924_v22, 0.0  ;;  %v6925_v35 = vadd.f32 %v6849_v43, %v6742_v6  ;;  %v8318_v32 = vadd.f32 %v8276_v14, %v11534_v55  ;;  %v6536_v2 = vpop.f32.mrb[25].mxu1 }
 0x59a   : > { %v6958_v50 = vmax.f32 %v6922_v8, 0.0  ;;  %v6923_v56 = vadd.f32 %v6845_v11, %v6740_v18  ;;  %v8319_v29 = vadd.f32 %v6536_v2, %v11535_v25  ;;  %v8277_v15 = vpop.f32.mrb[26].mxu1 }
 0x59b   : > { %6996 = vst.msk [vmem:[%s11171_s12 + $0xf0] sm:$0xff] %vm755_vm1, %v6960_v58  ;;  %v6961_v13 = vmax.f32 %v6925_v35, 0.0  ;;  %v6702_v53 = vmul.f32 %v8318_v32, %v11143_v60  ;;  %v8320_v44 = vadd.f32 %v8277_v15, %v11536_v5  ;;  %v6539_v40 = vpop.f32.mrb[27].mxu1 }
 0x59c   : > { %6994 = vst.msk [vmem:[%s11171_s12 + $0xe0] sm:$0xff] %vm755_vm1, %v6958_v50  ;;  %v6959_v7 = vmax.f32 %v6923_v56, 0.0  ;;  %v6700_v62 = vmul.f32 %v8319_v29, %v11143_v60  ;;  %v8321_v21 = vadd.f32 %v6539_v40, %v11537_v39 }
 0x59d   : > { %6997 = vst.msk [vmem:[%s11171_s12 + $0xf8] sm:$0xff] %vm755_vm1, %v6961_v13  ;;  %v6745_v19 = vadd.f32 %v11149_v51, %v6702_v53  ;;  %v6703_v36 = vmul.f32 %v8320_v44, %v11143_v60 }
 0x59e   : > { %6995 = vst.msk [vmem:[%s11171_s12 + $0xe8] sm:$0xff] %vm755_vm1, %v6959_v7  ;;  %v6743_v28 = vadd.f32 %v11149_v51, %v6700_v62  ;;  %v6701_v31 = vmul.f32 %v8321_v21, %v11143_v60 }
 0x59f   : > { %v6928_v16 = vadd.f32 %v6855_v52, %v6745_v19  ;;  %v6746_v4 = vadd.f32 %v11149_v51, %v6703_v36 }
 0x5a0   : > { %v6926_v23 = vadd.f32 %v6851_v26, %v6743_v28  ;;  %v6744_v48 = vadd.f32 %v11149_v51, %v6701_v31 }
 0x5a1   : > { %v6964_v12 = vmax.f32 %v6928_v16, 0.0  ;;  %v6929_v41 = vadd.f32 %v6857_v20, %v6746_v4 }
 0x5a2   : > { %v6962_v24 = vmax.f32 %v6926_v23, 0.0  ;;  %v6927_v0 = vadd.f32 %v6853_v54, %v6744_v48 }
 0x5a3   : > { %7000 = vst.msk [vmem:[%s11171_s12 + $0x110] sm:$0xff] %vm755_vm1, %v6964_v12  ;;  %v6965_v9 = vmax.f32 %v6929_v41, 0.0 }
 0x5a4   : > { %6998 = vst.msk [vmem:[%s11171_s12 + $0x100] sm:$0xff] %vm755_vm1, %v6962_v24  ;;  %v6963_v59 = vmax.f32 %v6927_v0, 0.0 }
 0x5a5   : > { %7001 = vst.msk [vmem:[%s11171_s12 + $0x118] sm:$0xff] %vm755_vm1, %v6965_v9 }
 0x5a6   : > { %6999 = vst.msk [vmem:[%s11171_s12 + $0x108] sm:$0xff] %vm755_vm1, %v6963_v59 }
 0x5a7 PF: > { %s18_s27 = sadd.s32 1, %s8943_s27  }
 0x5a8   : > { %p15_p4 = scmp.ge.s32.totalorder %s18_s27, 4  }
 0x5aa   :  { %17 = sbr.rel (!%p15_p4) target bundleno = 1 (0x1), region = 92 }

</bundles_post_ra>
